<compile_context>
chip_gen: v5e
topology: v5e:2x2
jax: 0.10.0
libtpu: 0.0.40
codegen_flags: <defaults>
</compile_context>

<pallas_src>
import functools

import jax
import jax.numpy as jnp
from jax import lax
from jax.experimental import pallas as pl
from jax.experimental.pallas import tpu as pltpu


def fcnhead_kernel(xf_ref, w1_ref, shift_ref, w2t_ref, b2_ref, o_ref,
                   acc_ref, *, H, W):
    """Fused FCNHead for one image and one input-channel (K) tile.

    Grid = (N, Cin // TK): axis 0 "parallel" over images, axis 1 "arbitrary"
    reduction over input-channel tiles.

    xf_ref    : (1, (H+3)*(W+2), TK)  bf16  flattened zero-padded NHWC tile
    w1_ref    : (9, TK, Cinter)       bf16  3x3 weights (BN scale folded in)
    shift_ref : (1, Cinter)           f32   folded BN shift = beta - mean*scale
    w2t_ref   : (Cout, Cinter)        bf16  1x1 conv weights, pre-transposed
    b2_ref    : (Cout, 1)             f32   1x1 conv bias (column vector)
    o_ref     : (1, Cout, H*(W+2))    f32   NCHW-ordered output, wrap cols kept
    acc_ref   : (H*(W+2), Cinter)     f32   persistent VMEM accumulator
    """
    Wp = W + 2
    HW2 = H * Wp
    k = pl.program_id(1)

    @pl.when(k == 0)
    def _init():
        acc_ref[...] = jnp.zeros_like(acc_ref)

    # --- 3x3 conv: 9 sublane-offset views of the flat padded slab (MXU). ---
    # Partial products are summed in registers -> one acc read-modify-write per
    # grid step instead of 9.  (The dx=1,2 views have unaligned sublane starts;
    # if the Mosaic dump shows per-tap relayouts, switch to 3 aligned dy views
    # plus pltpu.roll along the sublane axis for the dx shifts.)
    part = None
    for t in range(9):
        dy, dx = divmod(t, 3)
        patch = xf_ref[0, pl.ds(dy * Wp + dx, HW2), :]            # bf16 view
        c = jnp.dot(patch, w1_ref[t], preferred_element_type=jnp.float32)
        part = c if part is None else part + c
    acc_ref[...] += part

    # --- Epilogue on the last K tile: BN shift + ReLU + 1x1 conv + store. ---
    @pl.when(k == pl.num_programs(1) - 1)
    def _finalize():
        # BN scale already folded into w1.  Dropout2d(0.1) is identity at eval.
        # TODO(synk): training-mode channel dropout not implemented.
        y = jnp.maximum(acc_ref[...] + shift_ref[...], 0.0)
        # 1x1 conv, transposed output (Cout, H*Wp): lane-dense store, already
        # NCHW ordered.  Wrap columns are over-computed (~3% extra MXU work at
        # production sizes) and dropped by a wrapper-side slice, which is far
        # cheaper than an in-kernel sublane relayout every grid step.
        out = lax.dot_general(
            w2t_ref[...], y.astype(w2t_ref.dtype),
            dimension_numbers=(((1,), (1,)), ((), ())),
            preferred_element_type=jnp.float32)
        o_ref[0] = (out + b2_ref[...]).astype(o_ref.dtype)


def _vmem_capacity_bytes():
    """Per-generation VMEM capacity (v5e/v6e: 128 MiB, v7x: 64 MiB)."""
    try:
        cap = getattr(pltpu.get_tpu_info(), "vmem_capacity_bytes", None)
        if cap:
            return int(cap)
    except Exception:
        pass
    return 64 << 20  # conservative fallback (v7x per-TensorCore VMEM)


def _per_step_vmem_bytes(H, W, slab_rows, tk, Cinter, Cout):
    """Rough per-grid-step VMEM footprint for a given Cin tile size."""
    hw2 = H * (W + 2)
    inp = 2 * slab_rows * tk * 2                 # double-buffered bf16 input
    w1b = 2 * 9 * tk * Cinter * 2                # double-buffered bf16 w1
    small = 2 * (Cinter * 4 + Cout * Cinter * 2 + Cout * 4)
    outb = 2 * Cout * hw2 * 4                    # double-buffered f32 output
    acc = hw2 * Cinter * 4                       # persistent accumulator
    temps = 3 * hw2 * Cinter * 4 + hw2 * Cinter * 2 + Cout * hw2 * 4
    return inp + w1b + small + outb + acc + temps


def _pick_k_tile(Cin, H, W, Cinter, Cout, budget):
    """Largest Cin tile (full Cin, else a 128-multiple divisor) that fits."""
    slab_rows = (H + 3) * (W + 2)
    candidates = [Cin] + [m for m in (1024, 512, 256, 128)
                          if m < Cin and Cin % m == 0]
    for tk in candidates:
        if _per_step_vmem_bytes(H, W, slab_rows, tk, Cinter, Cout) <= budget:
            return tk
    return candidates[-1]


def fcn_head_forward(x_nchw, w1, bn_gamma, bn_beta, bn_mean, bn_var, w2, b2,
                     eps=1e-5):
    """x_nchw: (N, Cin, H, W) f32.  Returns (N, Cout, H, W) f32 (PyTorch layout)."""
    N, Cin, H, W = x_nchw.shape
    Cinter = w1.shape[3]
    Cout = w2.shape[1]
    Wp = W + 2
    slab_rows = (H + 3) * Wp

    # Glue (fusible into the pallas_call input via allow_input_fusion):
    # NCHW -> NHWC, 1px zero-pad (+1 extra bottom row so the over-computed tap
    # views stay in bounds), flatten spatial dims, cast MXU operand to bf16.
    x_nhwc = jnp.transpose(x_nchw, (0, 2, 3, 1)).astype(jnp.bfloat16)
    x_pad = jnp.pad(x_nhwc, ((0, 0), (1, 2), (1, 1), (0, 0)))
    x_flat = x_pad.reshape(N, slab_rows, Cin)

    # Fold BN (inference): scale is folded into the 3x3 weights in f32 (then
    # cast to bf16); only the additive shift remains inside the kernel.
    scale = (bn_gamma.astype(jnp.float32) /
             jnp.sqrt(bn_var.astype(jnp.float32) + eps))
    shift = (bn_beta.astype(jnp.float32) -
             bn_mean.astype(jnp.float32) * scale).reshape(1, Cinter)
    w1_t = (w1.astype(jnp.float32) * scale[None, None, None, :]
            ).reshape(9, Cin, Cinter).astype(jnp.bfloat16)
    w2_t = jnp.transpose(w2).astype(jnp.bfloat16)           # (Cout, Cinter)
    b2_c = b2.reshape(Cout, 1).astype(jnp.float32)

    # Per-generation VMEM budget minus headroom for Mosaic-internal scratch;
    # pick the largest Cin tile that fits.
    cap = _vmem_capacity_bytes()
    budget = max(cap - (12 << 20), 24 << 20)
    tk = _pick_k_tile(Cin, H, W, Cinter, Cout, budget)
    n_k = Cin // tk
    est = _per_step_vmem_bytes(H, W, slab_rows, tk, Cinter, Cout)
    vmem_limit = int(max(32 << 20, min(cap - (4 << 20), est + (8 << 20))))

    kernel = functools.partial(fcnhead_kernel, H=H, W=W)

    out_flat = pl.pallas_call(
        kernel,
        out_shape=jax.ShapeDtypeStruct((N, Cout, H * Wp), jnp.float32),
        grid_spec=pltpu.PrefetchScalarGridSpec(
            num_scalar_prefetch=0,
            grid=(N, n_k),
            in_specs=[
                pl.BlockSpec((1, slab_rows, tk), lambda n, k: (n, 0, k)),
                pl.BlockSpec((9, tk, Cinter), lambda n, k: (0, k, 0)),
                pl.BlockSpec((1, Cinter), lambda n, k: (0, 0)),
                pl.BlockSpec((Cout, Cinter), lambda n, k: (0, 0)),
                pl.BlockSpec((Cout, 1), lambda n, k: (0, 0)),
            ],
            out_specs=pl.BlockSpec((1, Cout, H * Wp), lambda n, k: (n, 0, 0)),
            scratch_shapes=[pltpu.VMEM((H * Wp, Cinter), jnp.float32)],
        ),
        compiler_params=pltpu.CompilerParams(
            dimension_semantics=("parallel", "arbitrary"),
            vmem_limit_bytes=vmem_limit,
            allow_input_fusion=[True, False, False, False, False],
        ),
    )(x_flat, w1_t, shift, w2_t, b2_c)

    # Output is already NCHW-ordered; drop the 2 over-computed wrap columns per
    # spatial row with a wrapper-side slice (XLA fuses it into the consumer).
    # TODO(synk): for v7x batch-1 inference, add a second "parallel" row-tile
    # grid axis (with a 2-row halo) so both TensorCores get work.
    return out_flat.reshape(N, Cout, H, Wp)[:, :, :, :W]


def _reference(x_nchw, w1, bn_gamma, bn_beta, bn_mean, bn_var, w2, b2,
               eps=1e-5):
    # Pure-JAX f32 reference (NCHW, mirrors the PyTorch module at eval time).
    y = lax.conv_general_dilated(
        x_nchw, jnp.transpose(w1, (3, 2, 0, 1)),  # HWIO -> OIHW
        window_strides=(1, 1), padding="SAME",
        dimension_numbers=("NCHW", "OIHW", "NCHW"))
    scale = (bn_gamma / jnp.sqrt(bn_var + eps))[None, :, None, None]
    shift = (bn_beta - bn_mean * bn_gamma / jnp.sqrt(bn_var + eps))[None, :, None, None]
    y = jnp.maximum(y * scale + shift, 0.0)
    y = lax.conv_general_dilated(
        y, jnp.transpose(w2, (1, 0))[:, :, None, None],
        window_strides=(1, 1), padding="VALID",
        dimension_numbers=("NCHW", "OIHW", "NCHW"))
    return y + b2[None, :, None, None]


if __name__ == "__main__":
    # Small shapes consistent with the module: inter_channels = in_channels // 4.
    # (Note: tiny Cinter wastes MXU/VPU lanes; production FCNHead uses
    # Cin=2048, Cinter=512 where this layout is efficient.)
    N, Cin, H, W = 2, 16, 16, 16
    Cout = 8
    Cinter = Cin // 4

    key = jax.random.PRNGKey(0)
    k = jax.random.split(key, 8)
    x = jax.random.normal(k[0], (N, Cin, H, W), jnp.float32)

    # Deterministic synthetic parameters (shapes from __init__).
    w1 = 0.1 * jax.random.normal(k[1], (3, 3, Cin, Cinter), jnp.float32)   # HWIO
    bn_gamma = 1.0 + 0.05 * jax.random.normal(k[2], (Cinter,), jnp.float32)
    bn_beta = 0.05 * jax.random.normal(k[3], (Cinter,), jnp.float32)
    bn_mean = 0.05 * jax.random.normal(k[4], (Cinter,), jnp.float32)
    bn_var = jnp.abs(jax.random.normal(k[5], (Cinter,), jnp.float32)) + 0.5
    w2 = 0.1 * jax.random.normal(k[6], (Cinter, Cout), jnp.float32)
    b2 = 0.05 * jax.random.normal(k[7], (Cout,), jnp.float32)

    out = fcn_head_forward(x, w1, bn_gamma, bn_beta, bn_mean, bn_var, w2, b2)
    out = jax.block_until_ready(out)

    ref = _reference(x, w1, bn_gamma, bn_beta, bn_mean, bn_var, w2, b2)
    assert out.shape == (N, Cout, H, W), out.shape
    # bf16 MXU operands vs f32 reference -> loose tolerance (accumulation is f32).
    max_err = float(jnp.max(jnp.abs(out - ref)))
    assert jnp.allclose(out, ref, atol=6e-2, rtol=6e-2), max_err

    print("KERNEL_OK")
</pallas_src>

<mosaic_0001>
module attributes {stable_mosaic.version = 11 : i64} {
  func.func @fcnhead_kernel(%arg0: i32, %arg1: i32, %arg2: memref<1x342x16xbf16, #tpu.memory_space<vmem>>, %arg3: memref<9x16x4xbf16, #tpu.memory_space<vmem>>, %arg4: memref<1x4xf32, #tpu.memory_space<vmem>>, %arg5: memref<8x4xbf16, #tpu.memory_space<vmem>>, %arg6: memref<8x1xf32, #tpu.memory_space<vmem>>, %arg7: memref<1x8x288xf32, #tpu.memory_space<vmem>>, %arg8: memref<288x4xf32, #tpu.memory_space<vmem>>) attributes {dimension_semantics = [#tpu.dimension_semantics<parallel>, #tpu.dimension_semantics<arbitrary>], iteration_bounds = array<i64: 2, 1>, scalar_prefetch = 0 : i64, scratch_operands = 1 : i64, tpu.core_type = #tpu.core_type<tc>, window_params = [{transform_indices = @transform_0, window_bounds = array<i64: 1, 342, 16>}, {transform_indices = @transform_1, window_bounds = array<i64: 9, 16, 4>}, {pipeline_mode = #tpu.pipeline_mode<synchronous>, transform_indices = @transform_2, window_bounds = array<i64: 1, 4>}, {pipeline_mode = #tpu.pipeline_mode<synchronous>, transform_indices = @transform_3, window_bounds = array<i64: 8, 4>}, {pipeline_mode = #tpu.pipeline_mode<synchronous>, transform_indices = @transform_4, window_bounds = array<i64: 8, 1>}, {transform_indices = @transform_5, window_bounds = array<i64: 1, 8, 288>}]} {
    %c0_i32 = arith.constant 0 : i32
    %0 = arith.cmpi eq, %arg1, %c0_i32 : i32
    %1 = arith.extui %0 : i1 to i32
    %c0_i32_0 = arith.constant 0 : i32
    %2 = arith.cmpi ne, %1, %c0_i32_0 : i32
    scf.if %2 {
      %cst_54 = arith.constant 0.000000e+00 : f32
      %62 = vector.broadcast %cst_54 : f32 to vector<288x4xf32>
      %c0_55 = arith.constant 0 : index
      %c0_56 = arith.constant 0 : index
      %63 = vector.load %arg8[%c0_55, %c0_56] : memref<288x4xf32, #tpu.memory_space<vmem>>, vector<288x4xf32>
      tpu.vector_store %arg8[%c0_55, %c0_56], %62 {strides = array<i32>} : memref<288x4xf32, #tpu.memory_space<vmem>>, vector<288x4xf32>,
    } else {
    }
    %c0 = arith.constant 0 : index
    %c0_1 = arith.constant 0 : index
    %c0_2 = arith.constant 0 : index
    %3 = vector.load %arg2[%c0, %c0_1, %c0_2] : memref<1x342x16xbf16, #tpu.memory_space<vmem>>, vector<1x288x16xbf16>
    %4 = vector.shape_cast %3 : vector<1x288x16xbf16> to vector<288x16xbf16>
    %c0_3 = arith.constant 0 : index
    %c0_4 = arith.constant 0 : index
    %c0_5 = arith.constant 0 : index
    %5 = vector.load %arg3[%c0_3, %c0_4, %c0_5] : memref<9x16x4xbf16, #tpu.memory_space<vmem>>, vector<1x16x4xbf16>
    %6 = vector.shape_cast %5 : vector<1x16x4xbf16> to vector<16x4xbf16>
    %cst = arith.constant dense<0.000000e+00> : vector<288x4xf32>
    %7 = tpu.matmul %4, %6, %cst {dimension_numbers = #tpu.dot_dimension_numbers<[1], [0], [0], [1], [0, 0, 1, 1], [], []>} : vector<288x16xbf16>, vector<16x4xbf16>, vector<288x4xf32> -> vector<288x4xf32>
    %c0_6 = arith.constant 0 : index
    %c1 = arith.constant 1 : index
    %c0_7 = arith.constant 0 : index
    %8 = vector.load %arg2[%c0_6, %c1, %c0_7] : memref<1x342x16xbf16, #tpu.memory_space<vmem>>, vector<1x288x16xbf16>
    %9 = vector.shape_cast %8 : vector<1x288x16xbf16> to vector<288x16xbf16>
    %c1_8 = arith.constant 1 : index
    %c0_9 = arith.constant 0 : index
    %c0_10 = arith.constant 0 : index
    %10 = vector.load %arg3[%c1_8, %c0_9, %c0_10] : memref<9x16x4xbf16, #tpu.memory_space<vmem>>, vector<1x16x4xbf16>
    %11 = vector.shape_cast %10 : vector<1x16x4xbf16> to vector<16x4xbf16>
    %cst_11 = arith.constant dense<0.000000e+00> : vector<288x4xf32>
    %12 = tpu.matmul %9, %11, %cst_11 {dimension_numbers = #tpu.dot_dimension_numbers<[1], [0], [0], [1], [0, 0, 1, 1], [], []>} : vector<288x16xbf16>, vector<16x4xbf16>, vector<288x4xf32> -> vector<288x4xf32>
    %13 = arith.addf %7, %12 : vector<288x4xf32>
    %c0_12 = arith.constant 0 : index
    %c2 = arith.constant 2 : index
    %c0_13 = arith.constant 0 : index
    %14 = vector.load %arg2[%c0_12, %c2, %c0_13] : memref<1x342x16xbf16, #tpu.memory_space<vmem>>, vector<1x288x16xbf16>
    %15 = vector.shape_cast %14 : vector<1x288x16xbf16> to vector<288x16xbf16>
    %c2_14 = arith.constant 2 : index
    %c0_15 = arith.constant 0 : index
    %c0_16 = arith.constant 0 : index
    %16 = vector.load %arg3[%c2_14, %c0_15, %c0_16] : memref<9x16x4xbf16, #tpu.memory_space<vmem>>, vector<1x16x4xbf16>
    %17 = vector.shape_cast %16 : vector<1x16x4xbf16> to vector<16x4xbf16>
    %cst_17 = arith.constant dense<0.000000e+00> : vector<288x4xf32>
    %18 = tpu.matmul %15, %17, %cst_17 {dimension_numbers = #tpu.dot_dimension_numbers<[1], [0], [0], [1], [0, 0, 1, 1], [], []>} : vector<288x16xbf16>, vector<16x4xbf16>, vector<288x4xf32> -> vector<288x4xf32>
    %19 = arith.addf %13, %18 : vector<288x4xf32>
    %c0_18 = arith.constant 0 : index
    %c18 = arith.constant 18 : index
    %c0_19 = arith.constant 0 : index
    %20 = vector.load %arg2[%c0_18, %c18, %c0_19] : memref<1x342x16xbf16, #tpu.memory_space<vmem>>, vector<1x288x16xbf16>
    %21 = vector.shape_cast %20 : vector<1x288x16xbf16> to vector<288x16xbf16>
    %c3 = arith.constant 3 : index
    %c0_20 = arith.constant 0 : index
    %c0_21 = arith.constant 0 : index
    %22 = vector.load %arg3[%c3, %c0_20, %c0_21] : memref<9x16x4xbf16, #tpu.memory_space<vmem>>, vector<1x16x4xbf16>
    %23 = vector.shape_cast %22 : vector<1x16x4xbf16> to vector<16x4xbf16>
    %cst_22 = arith.constant dense<0.000000e+00> : vector<288x4xf32>
    %24 = tpu.matmul %21, %23, %cst_22 {dimension_numbers = #tpu.dot_dimension_numbers<[1], [0], [0], [1], [0, 0, 1, 1], [], []>} : vector<288x16xbf16>, vector<16x4xbf16>, vector<288x4xf32> -> vector<288x4xf32>
    %25 = arith.addf %19, %24 : vector<288x4xf32>
    %c0_23 = arith.constant 0 : index
    %c19 = arith.constant 19 : index
    %c0_24 = arith.constant 0 : index
    %26 = vector.load %arg2[%c0_23, %c19, %c0_24] : memref<1x342x16xbf16, #tpu.memory_space<vmem>>, vector<1x288x16xbf16>
    %27 = vector.shape_cast %26 : vector<1x288x16xbf16> to vector<288x16xbf16>
    %c4 = arith.constant 4 : index
    %c0_25 = arith.constant 0 : index
    %c0_26 = arith.constant 0 : index
    %28 = vector.load %arg3[%c4, %c0_25, %c0_26] : memref<9x16x4xbf16, #tpu.memory_space<vmem>>, vector<1x16x4xbf16>
    %29 = vector.shape_cast %28 : vector<1x16x4xbf16> to vector<16x4xbf16>
    %cst_27 = arith.constant dense<0.000000e+00> : vector<288x4xf32>
    %30 = tpu.matmul %27, %29, %cst_27 {dimension_numbers = #tpu.dot_dimension_numbers<[1], [0], [0], [1], [0, 0, 1, 1], [], []>} : vector<288x16xbf16>, vector<16x4xbf16>, vector<288x4xf32> -> vector<288x4xf32>
    %31 = arith.addf %25, %30 : vector<288x4xf32>
    %c0_28 = arith.constant 0 : index
    %c20 = arith.constant 20 : index
    %c0_29 = arith.constant 0 : index
    %32 = vector.load %arg2[%c0_28, %c20, %c0_29] : memref<1x342x16xbf16, #tpu.memory_space<vmem>>, vector<1x288x16xbf16>
    %33 = vector.shape_cast %32 : vector<1x288x16xbf16> to vector<288x16xbf16>
    %c5 = arith.constant 5 : index
    %c0_30 = arith.constant 0 : index
    %c0_31 = arith.constant 0 : index
    %34 = vector.load %arg3[%c5, %c0_30, %c0_31] : memref<9x16x4xbf16, #tpu.memory_space<vmem>>, vector<1x16x4xbf16>
    %35 = vector.shape_cast %34 : vector<1x16x4xbf16> to vector<16x4xbf16>
    %cst_32 = arith.constant dense<0.000000e+00> : vector<288x4xf32>
    %36 = tpu.matmul %33, %35, %cst_32 {dimension_numbers = #tpu.dot_dimension_numbers<[1], [0], [0], [1], [0, 0, 1, 1], [], []>} : vector<288x16xbf16>, vector<16x4xbf16>, vector<288x4xf32> -> vector<288x4xf32>
    %37 = arith.addf %31, %36 : vector<288x4xf32>
    %c0_33 = arith.constant 0 : index
    %c36 = arith.constant 36 : index
    %c0_34 = arith.constant 0 : index
    %38 = vector.load %arg2[%c0_33, %c36, %c0_34] : memref<1x342x16xbf16, #tpu.memory_space<vmem>>, vector<1x288x16xbf16>
    %39 = vector.shape_cast %38 : vector<1x288x16xbf16> to vector<288x16xbf16>
    %c6 = arith.constant 6 : index
    %c0_35 = arith.constant 0 : index
    %c0_36 = arith.constant 0 : index
    %40 = vector.load %arg3[%c6, %c0_35, %c0_36] : memref<9x16x4xbf16, #tpu.memory_space<vmem>>, vector<1x16x4xbf16>
    %41 = vector.shape_cast %40 : vector<1x16x4xbf16> to vector<16x4xbf16>
    %cst_37 = arith.constant dense<0.000000e+00> : vector<288x4xf32>
    %42 = tpu.matmul %39, %41, %cst_37 {dimension_numbers = #tpu.dot_dimension_numbers<[1], [0], [0], [1], [0, 0, 1, 1], [], []>} : vector<288x16xbf16>, vector<16x4xbf16>, vector<288x4xf32> -> vector<288x4xf32>
    %43 = arith.addf %37, %42 : vector<288x4xf32>
    %c0_38 = arith.constant 0 : index
    %c37 = arith.constant 37 : index
    %c0_39 = arith.constant 0 : index
    %44 = vector.load %arg2[%c0_38, %c37, %c0_39] : memref<1x342x16xbf16, #tpu.memory_space<vmem>>, vector<1x288x16xbf16>
    %45 = vector.shape_cast %44 : vector<1x288x16xbf16> to vector<288x16xbf16>
    %c7 = arith.constant 7 : index
    %c0_40 = arith.constant 0 : index
    %c0_41 = arith.constant 0 : index
    %46 = vector.load %arg3[%c7, %c0_40, %c0_41] : memref<9x16x4xbf16, #tpu.memory_space<vmem>>, vector<1x16x4xbf16>
    %47 = vector.shape_cast %46 : vector<1x16x4xbf16> to vector<16x4xbf16>
    %cst_42 = arith.constant dense<0.000000e+00> : vector<288x4xf32>
    %48 = tpu.matmul %45, %47, %cst_42 {dimension_numbers = #tpu.dot_dimension_numbers<[1], [0], [0], [1], [0, 0, 1, 1], [], []>} : vector<288x16xbf16>, vector<16x4xbf16>, vector<288x4xf32> -> vector<288x4xf32>
    %49 = arith.addf %43, %48 : vector<288x4xf32>
    %c0_43 = arith.constant 0 : index
    %c38 = arith.constant 38 : index
    %c0_44 = arith.constant 0 : index
    %50 = vector.load %arg2[%c0_43, %c38, %c0_44] : memref<1x342x16xbf16, #tpu.memory_space<vmem>>, vector<1x288x16xbf16>
    %51 = vector.shape_cast %50 : vector<1x288x16xbf16> to vector<288x16xbf16>
    %c8 = arith.constant 8 : index
    %c0_45 = arith.constant 0 : index
    %c0_46 = arith.constant 0 : index
    %52 = vector.load %arg3[%c8, %c0_45, %c0_46] : memref<9x16x4xbf16, #tpu.memory_space<vmem>>, vector<1x16x4xbf16>
    %53 = vector.shape_cast %52 : vector<1x16x4xbf16> to vector<16x4xbf16>
    %cst_47 = arith.constant dense<0.000000e+00> : vector<288x4xf32>
    %54 = tpu.matmul %51, %53, %cst_47 {dimension_numbers = #tpu.dot_dimension_numbers<[1], [0], [0], [1], [0, 0, 1, 1], [], []>} : vector<288x16xbf16>, vector<16x4xbf16>, vector<288x4xf32> -> vector<288x4xf32>
    %55 = arith.addf %49, %54 : vector<288x4xf32>
    %c0_48 = arith.constant 0 : index
    %c0_49 = arith.constant 0 : index
    %56 = vector.load %arg8[%c0_48, %c0_49] : memref<288x4xf32, #tpu.memory_space<vmem>>, vector<288x4xf32>
    %57 = arith.addf %56, %55 : vector<288x4xf32>
    %c0_50 = arith.constant 0 : index
    %c0_51 = arith.constant 0 : index
    %58 = vector.load %arg8[%c0_50, %c0_51] : memref<288x4xf32, #tpu.memory_space<vmem>>, vector<288x4xf32>
    tpu.vector_store %arg8[%c0_50, %c0_51], %57 {strides = array<i32>} : memref<288x4xf32, #tpu.memory_space<vmem>>, vector<288x4xf32>,
    %c0_i32_52 = arith.constant 0 : i32
    %59 = arith.cmpi eq, %arg1, %c0_i32_52 : i32
    %60 = arith.extui %59 : i1 to i32
    %c0_i32_53 = arith.constant 0 : i32
    %61 = arith.cmpi ne, %60, %c0_i32_53 : i32
    scf.if %61 {
      %c0_54 = arith.constant 0 : index
      %c0_55 = arith.constant 0 : index
      %62 = vector.load %arg8[%c0_54, %c0_55] : memref<288x4xf32, #tpu.memory_space<vmem>>, vector<288x4xf32>
      %c0_56 = arith.constant 0 : index
      %c0_57 = arith.constant 0 : index
      %63 = vector.load %arg4[%c0_56, %c0_57] : memref<1x4xf32, #tpu.memory_space<vmem>>, vector<1x4xf32>
      %64 = vector.broadcast %63 : vector<1x4xf32> to vector<288x4xf32>
      %65 = arith.addf %62, %64 : vector<288x4xf32>
      %cst_58 = arith.constant 0.000000e+00 : f32
      %66 = vector.broadcast %cst_58 : f32 to vector<288x4xf32>
      %67 = arith.maximumf %65, %66 : vector<288x4xf32>
      %c0_59 = arith.constant 0 : index
      %c0_60 = arith.constant 0 : index
      %68 = vector.load %arg5[%c0_59, %c0_60] : memref<8x4xbf16, #tpu.memory_space<vmem>>, vector<8x4xbf16>
      %69 = arith.truncf %67 : vector<288x4xf32> to vector<288x4xbf16>
      %cst_61 = arith.constant dense<0.000000e+00> : vector<8x288xf32>
      %70 = tpu.matmul %68, %69, %cst_61 {dimension_numbers = #tpu.dot_dimension_numbers<[1], [1], [0], [0], [0, 0, 1, 0], [], []>} : vector<8x4xbf16>, vector<288x4xbf16>, vector<8x288xf32> -> vector<8x288xf32>
      %c0_62 = arith.constant 0 : index
      %c0_63 = arith.constant 0 : index
      %71 = vector.load %arg6[%c0_62, %c0_63] : memref<8x1xf32, #tpu.memory_space<vmem>>, vector<8x1xf32>
      %72 = vector.broadcast %71 : vector<8x1xf32> to vector<8x288xf32>
      %73 = arith.addf %70, %72 : vector<8x288xf32>
      %c0_64 = arith.constant 0 : index
      %c0_65 = arith.constant 0 : index
      %c0_66 = arith.constant 0 : index
      %74 = vector.load %arg7[%c0_64, %c0_65, %c0_66] : memref<1x8x288xf32, #tpu.memory_space<vmem>>, vector<1x8x288xf32>
      %75 = vector.shape_cast %74 : vector<1x8x288xf32> to vector<8x288xf32>
      %76 = vector.shape_cast %73 : vector<8x288xf32> to vector<1x8x288xf32>
      tpu.vector_store %arg7[%c0_64, %c0_65, %c0_66], %76 {strides = array<i32>} : memref<1x8x288xf32, #tpu.memory_space<vmem>>, vector<1x8x288xf32>,
    } else {
    }
    return
  }
  func.func @transform_0(%arg0: i32, %arg1: i32) -> (i32, i32, i32) {
    %c0_i32 = arith.constant 0 : i32
    %c0_i32_0 = arith.constant 0 : i32
    return %arg0, %c0_i32, %arg1 : i32, i32, i32
  }
  func.func @transform_1(%arg0: i32, %arg1: i32) -> (i32, i32, i32) {
    %c0_i32 = arith.constant 0 : i32
    %c0_i32_0 = arith.constant 0 : i32
    %c0_i32_1 = arith.constant 0 : i32
    return %c0_i32, %arg1, %c0_i32_0 : i32, i32, i32
  }
  func.func @transform_2(%arg0: i32, %arg1: i32) -> (i32, i32) {
    %c0_i32 = arith.constant 0 : i32
    %c0_i32_0 = arith.constant 0 : i32
    %c0_i32_1 = arith.constant 0 : i32
    return %c0_i32, %c0_i32_0 : i32, i32
  }
  func.func @transform_3(%arg0: i32, %arg1: i32) -> (i32, i32) {
    %c0_i32 = arith.constant 0 : i32
    %c0_i32_0 = arith.constant 0 : i32
    %c0_i32_1 = arith.constant 0 : i32
    return %c0_i32, %c0_i32_0 : i32, i32
  }
  func.func @transform_4(%arg0: i32, %arg1: i32) -> (i32, i32) {
    %c0_i32 = arith.constant 0 : i32
    %c0_i32_0 = arith.constant 0 : i32
    %c0_i32_1 = arith.constant 0 : i32
    return %c0_i32, %c0_i32_0 : i32, i32
  }
  func.func @transform_5(%arg0: i32, %arg1: i32) -> (i32, i32, i32) {
    %c0_i32 = arith.constant 0 : i32
    %c0_i32_0 = arith.constant 0 : i32
    %c0_i32_1 = arith.constant 0 : i32
    return %arg0, %c0_i32, %c0_i32_0 : i32, i32, i32
  }
}

</mosaic_0001>

<bundles_post_ra>
// kernel: tpu_custom_call.1
= control target key start
LH: loop header
LB: loop body
LE: loop exit
PB: predicated region body
PF: predicated region fallthrough
CT: control target
= control target key end

     0   :  { %10 = vsyncpa [#allocation4], 0  ;;  %s5651_s0 = inlined_call_operand.vmem [shape: bf16[2,342,16], index: 0, kind: input, shape index: {}]   ;;  %s5652_s1 = inlined_call_operand.vmem [shape: bf16[9,16,4], index: 1, kind: input, shape index: {}]   ;;  %s5653_s2 = inlined_call_operand.vmem [shape: f32[1,4], index: 2, kind: input, shape index: {}]   ;;  %s5654_s3 = inlined_call_operand.vmem [shape: bf16[8,4], index: 3, kind: input, shape index: {}]   ;;  %s5655_s4 = inlined_call_operand.vmem [shape: f32[8,1], index: 4, kind: input, shape index: {}]   ;;  %s5656_s5 = inlined_call_operand.hbm [shape: f32[2,8,288], index: 5, kind: output, shape index: {}]  }
   0x1   :  { %12 = vsyncpa [#allocation4 + $0x1], 0  ;;  %s4239_s18 = smov 0   ;;  %s4241_s19 = smov 0  }
   0x2   :  { %s4243_s20 = smov 0   ;;  %s4245_s21 = smov 0  }
   0x3   :  { %s4247_s22 = smov 0   ;;  %s4249_s23 = smov 0  }
   0x4 LB: > { %s3545_s24 = sadd.s32 4294967295, %s4205_s23   ;;  %s3546_s25 = sadd.s32 4294967294, %s4205_s23   ;;  %s4205_s23 = sphi %s4249_s23, %s18_s23   ;;  %s4201_s22 = sphi %s4247_s22, %s5707_s22   ;;  %s4197_s21 = sphi %s4245_s21, %s5706_s21   ;;  %s4193_s20 = sphi %s4243_s20, %s5705_s20   ;;  %s4189_s19 = sphi %s4241_s19, %s5704_s19   ;;  %s4185_s18 = sphi %s4239_s18, %s5703_s18  }
   0x5   : > { %s30_s26 = sadd.s32 1, %s4201_s22  ;;  %s154_s27 = sadd.s32 1, %s4193_s20 }
   0x6   : > { %p32_p0 = scmp.ge.s32.totalorder %s30_s26, 2  ;;  %p164_p1 = scmp.ne.s32.totalorder %s4193_s20, %s4189_s19 }
   0x7   : > { %p165_p2 = scmp.eq.s32.totalorder %s3545_s24, 1  ;;  %p170_p3 = scmp.ne.s32.totalorder %s4189_s19, %s4185_s18 }
   0x8   : > { %s5709_s26 = smov (%p32_p0, %s30_s26), 0  ;;  %p171_p5 = scmp.eq.s32.totalorder %s3546_s25, 1 }
   0x9   : > { %p4279_p4 = por %p165_p2, %p164_p1  ;;  %s151_s29 = ssub.s32 %s4201_s22, %s5709_s26 }
   0xa   : > { %p3550_p6 = scmp.ge.s32.totalorder %s4205_s23, 1  ;;  %p152_p7 = scmp.eq.s32.totalorder %s151_s29, 0 }
   0xb   : > { %p4286_p8 = por %p171_p5, %p170_p3  ;;  %p218_p9 = scmp.lt.s32.totalorder %s4205_s23, 3 }
   0xc   : > { %s4292_s6 = scalar_select %p152_p7, %s4193_s20, %s154_s27  }
   0xd   : > { %p219_p10 = pnand %p3550_p6, %p218_p9 }
   0xf   : > { %222 = sbr.rel (%p219_p10) target bundleno = 1015 (0x3f7), region = 40 }
  0x14   : > { %v3994_v0 = vld [vmem:[%s5652_s1 + $0x8] sm:$0xff]  ;;  %p254_p11 = scmp.lt.s32.totalorder %s4197_s21, 1  ;;  %vm445_vm0 = vsmask.f32 7424  ;;  %vm600_vm1 = vcmask 130048   ;;  %vm902_vm2 = vcmask 1046528  }
  0x15   : > { %662 = vmatpush.bf16.msra.mxu0 %v3994_v0  ;;  %4043 = vmatpush.bf16.msra.mxu1 %v3994_v0  ;;  %vm1507_vm3 = vsmask.f32 6400  ;;  %vm2485_vm4 = vsmask.f32 5376  ;;  %vm1880_vm5 = vcmask 1045504   ;;  %vm2858_vm6 = vcmask 1044480  }
  0x16   : > { %s255_s9 = scalar_select %p254_p11, %s4197_s21, 1  ;;  %4044 = vmatpush.bf16.msra.mxu2 %v3994_v0  ;;  %4045 = vmatpush.bf16.msra.mxu3 %v3994_v0  ;;  %vm273_vm7 = vcmask 31744   ;;  %vm3438_vm8 = vcmask 261120  }
  0x17   : > { %s251_s29 = sand.u32 1, %s4189_s19   ;;  %s4147_s25 = scalar_lea.hbm %s5656_s5, 48 }
  0x18   : > { %s4047_s10 = smul.u32 172, %s255_s9 }
  0x19   : > { %s4046_s7 = smul.u32 24, %s251_s29 }
  0x1a   : > { %s4302_s13 = scalar_lea.vmem %s5651_s0, %s4047_s10  ;;  %s4048_s9 = smul.u32 24, %s4197_s21 }
  0x1b   : > { %v4305_v1 = vld [vmem:[%s4302_s13] sm:$0xff]   ;;  %v4308_v2 = vld [vmem:[%s4302_s13 + $0x8] sm:$0xff]  ;;  %v4311_v3 = vld [vmem:[%s4302_s13 + $0x30] sm:$0xff]  ;;  %s253_s8 = scalar_lea.vmem [#allocation3], %s4046_s7 }
  0x1c   : > { %v447_v4 = vshrl.u32 %v4305_v1, 16  ;;  %v449_v5 = vshll.u32 %v4305_v1, 16  ;;  %v4316_v6 = vld [vmem:[%s4302_s13 + $0x38] sm:$0xff]  ;;  %v4322_v8 = vld [vmem:[%s4302_s13 + $0x60] sm:$0xff]  ;;  %v454_v9 = vshll.u32 %v4308_v2, 16  ;;  %v494_v10 = vshll.u32 %v4311_v3, 16  ;;  %s3452_s12 = scalar_lea.hbm %s5656_s5, %s4048_s9 }
  0x1d   : > { %v4319_v7 = vld [vmem:[%s4302_s13 + $0x58] sm:$0xff]  ;;  %v498_v11 = vshrl.u32 %v4311_v3, 16  ;;  %v502_v13 = vshll.u32 %v4316_v6, 16  ;;  %v542_v18 = vshll.u32 %v4322_v8, 16  ;;  %v4343_v28 = vld [vmem:[%s4302_s13 + $0x10] sm:$0xff]  ;;  %v4347_v29 = vld [vmem:[%s4302_s13 + $0x40] sm:$0xff] }
  0x1e   : > { %v451_v12 = vrot.slane %v449_v5, 1  ;;  %v534_v14 = vshll.u32 %v4319_v7, 16  ;;  %v538_v15 = vshrl.u32 %v4319_v7, 16  ;;  %v456_v16 = vrot.slane %v454_v9, 1  ;;  %v4350_v30 = vld [vmem:[%s4302_s13 + $0x68] sm:$0xff]  ;;  %v4359_v37 = vld [vmem:[%s4302_s13 + $0x80] sm:$0xff] }
  0x1f   : > { %v4330_v17 = vrot.slane %v494_v10, 1  ;;  %v504_v20 = vrot.slane %v502_v13, 1  ;;  %v544_v23 = vrot.slane %v542_v18, 1  ;;  %v458_v31 = vshrl.u32 %v4308_v2, 16  ;;  %v3992_v42 = vld [vmem:[%s4302_s13 + $0x88] sm:$0xff]  ;;  %v4374_v55 = vld [vmem:[%s4302_s13 + $0x18] sm:$0xff] }
  0x20   : > { %v452_v19 = vor.u32 %v451_v12, %v447_v4  ;;  %v4333_v21 = vrot.slane %v534_v14, 1  ;;  %v462_v32 = vshll.u32 %v4343_v28, 16  ;;  %v506_v33 = vshrl.u32 %v4316_v6, 16  ;;  %v4379_v56 = vld [vmem:[%s4302_s13 + $0x48] sm:$0xff]  ;;  %v4382_v57 = vld [vmem:[%s4302_s13 + $0x70] sm:$0xff]  ;;  %s3454_s14 = sshll.u32 %s253_s8, 4  ;;  %s3455_s14 = int_to_ptr.vmem [resolvable:$true] %s3454_s14 }
  0x21   : > { %v500_v22 = vor.u32 %v498_v11, %v4330_v17  ;;  %v510_v34 = vshll.u32 %v4347_v29, 16  ;;  %v546_v35 = vshrl.u32 %v4322_v8, 16  ;;  %v550_v36 = vshll.u32 %v4350_v30, 16  ;;  %v4387_v60 = vld [vmem:[%s4302_s13 + $0x50] sm:$0xff]  ;;  %v4396_v14 = vld [vmem:[%s4302_s13 + $0x28] sm:$0xff]  ;;  %s3456_s15 = sshll.u32 %s3452_s12, 4  ;;  %s3457_s15 = int_to_ptr.hbm [resolvable:$true] %s3456_s15 }
  0x22   : > { %v457_v24 = vsel %vm445_vm0, %v452_v19, %v456_v16  ;;  %v540_v25 = vor.u32 %v538_v15, %v4333_v21  ;;  %v460_v38 = vor.u32 %v458_v31, %v456_v16  ;;  %v464_v39 = vrot.slane %v462_v32, 1  ;;  %v348_v4 = vld [vmem:[%s4302_s13 + $0x90] sm:$0x1]  ;;  %s4141_s16 = sshra.s32 %s3457_s15, 4  ;;  %s4142_s16 = int_to_ptr.hbm [resolvable:$true] %s4141_s16 }
  0x23   : > { %3626 = vmatmul.msk.bf16.vlgmr.msra.gmra.mxu0 %vm600_vm1, %v457_v24  ;;  %v505_v26 = vsel %vm445_vm0, %v500_v22, %v504_v20  ;;  %v508_v40 = vor.u32 %v506_v33, %v504_v20  ;;  %v512_v41 = vrot.slane %v510_v34, 1  ;;  %v574_v43 = vshll.u32 %v4359_v37, 16  ;;  %s4143_s17 = scalar_lea.hbm %s4142_s16, 24  ;;  %p4148_p1 = scmp.lt.s32.totalorder %s4142_s16, %s5656_s5 }
  0x24   : > { %3632 = vmatmul.msk.bf16.vlgmr.msra.gmra.mxu1 %vm600_vm1, %v505_v26  ;;  %v545_v27 = vsel %vm445_vm0, %v540_v25, %v544_v23  ;;  %v548_v44 = vor.u32 %v546_v35, %v544_v23  ;;  %v552_v45 = vrot.slane %v550_v36, 1  ;;  %v578_v47 = vshrl.u32 %v4359_v37, 16  ;;  %v4410_v35 = vld [vmem:[%s4302_s13 + $0x20] sm:$0xff]  ;;  %p4144_p12 = scmp.ne.s32.totalorder %s4142_s16, %s4143_s17  ;;  %p4149_p2 = scmp.lt.s32.totalorder %s4147_s25, %s4143_s17 }
  0x25   : > { %3637 = vmatmul.msk.bf16.vlgmr.msra.gmra.mxu2 %vm600_vm1, %v545_v27  ;;  %v4363_v46 = vrot.slane %v574_v43, 1  ;;  %v582_v48 = vshll.u32 %v3992_v42, 16  ;;  %v465_v49 = vsel %vm445_vm0, %v460_v38, %v464_v39  ;;  %v513_v50 = vsel %vm445_vm0, %v508_v40, %v512_v41  ;;  %v3993_v40 = vld [vmem:[%s5652_s1] sm:$0xff] }
  0x26   : > { %v553_v53 = vsel %vm445_vm0, %v548_v44, %v552_v45  ;;  %v466_v58 = vshrl.u32 %v4343_v28, 16  ;;  %v470_v59 = vshll.u32 %v4374_v55, 16  ;;  %v514_v61 = vshrl.u32 %v4347_v29, 16  ;;  %803 = vmatpush.bf16.msrb.mxu1 %v3993_v40  ;;  %p4145_p13 = pnand %p4144_p12, %p4279_p4  ;;  %p4150_p3 = por %p4149_p2, %p4148_p1 }
  0x27   : > { %v580_v51 = vor.u32 %v578_v47, %v4363_v46  ;;  %v584_v52 = vrot.slane %v582_v48, 1  ;;  %v518_v62 = vshll.u32 %v4379_v56, 16  ;;  %v554_v63 = vshrl.u32 %v4350_v30, 16 }
  0x28   : > { %v558_v0 = vshll.u32 %v4382_v57, 16  ;;  %v425_v5 = vunpack.c.l.b16 %v348_v4  ;;  %v468_v9 = vor.u32 %v466_v58, %v464_v39  ;;  %v472_v10 = vrot.slane %v470_v59, 1  ;;  %v4013_v39 = vld [vmem:[%s5652_s1 + $0x18] sm:$0xff]  ;;  %p4146_p0 = pneg %p4145_p13 }
  0x29   : > { %v585_v54 = vsel %vm445_vm0, %v580_v51, %v584_v52  ;;  %v526_v11 = vshll.u32 %v4387_v60, 16  ;;  %v516_v12 = vor.u32 %v514_v61, %v512_v41  ;;  %v520_v13 = vrot.slane %v518_v62, 1  ;;  %v3995_v41 = vld [vmem:[%s5652_s1 + $0x10] sm:$0xff]  ;;  %1372 = vmatpush.bf16.msrb.mxu3 %v4013_v39 }
  0x2a   : > { %3642 = vmatmul.msk.bf16.vlgmr.msra.gmra.mxu3 %vm600_vm1, %v585_v54  ;;  %v4398_v15 = vpack.c.b16 %v425_v5, %v425_v5  ;;  %v556_v16 = vor.u32 %v554_v63, %v552_v45  ;;  %v560_v18 = vrot.slane %v558_v0, 1  ;;  %v586_v19 = vshrl.u32 %v3992_v42, 16  ;;  %1007 = vmatpush.bf16.msrb.mxu2 %v3995_v41  ;;  %v4438_v54 = vld [vmem:[%s4302_s13 + $0xc] sm:$0xf]  ;;  %v3996_v0 = vld [vmem:[%s4302_s13 + $0x10] sm:$0xff]  ;;  %p4151_p5 = pnand %p4150_p3, %p4146_p0 }
  0x2b   : > { %v473_v22 = vsel %vm445_vm0, %v468_v9, %v472_v10  ;;  %v528_v23 = vrot.slane %v526_v11, 1  ;;  %v530_v24 = vshrl.u32 %v4387_v60, 16  ;;  %v521_v25 = vsel %vm445_vm0, %v516_v12, %v520_v13 }
  0x2c   : > { %v590_v20 = vshll.u32 %v4398_v15, 16  ;;  %v486_v26 = vshll.u32 %v4396_v14, 16  ;;  %v588_v27 = vor.u32 %v586_v19, %v584_v52  ;;  %v561_v32 = vsel %vm445_vm0, %v556_v16, %v560_v18 }
  0x2d   : > { %v532_v33 = vor.u32 %v530_v24, %v528_v23  ;;  %v490_v42 = vshrl.u32 %v4396_v14, 16  ;;  %v474_v44 = vshrl.u32 %v4374_v55, 16  ;;  %v478_v45 = vshll.u32 %v4410_v35, 16 }
  0x2e   : > { %v592_v31 = vrot.slane %v590_v20, 1  ;;  %v488_v38 = vrot.slane %v486_v26, 1  ;;  %v522_v47 = vshrl.u32 %v4379_v56, 16  ;;  %v5657_v61 = vunpack.c.l.b16 %v4438_v54 }
  0x2f   : > { %v537_v36 = vsel %vm445_vm0, %v532_v33, %v4333_v21  ;;  %v4427_v21 = vld [vmem:[%s4302_s13 + $0x78] sm:$0xff]  ;;  %v476_v51 = vor.u32 %v474_v44, %v472_v10  ;;  %v480_v52 = vrot.slane %v478_v45, 1  ;;  %v1269_v10 = vrot.slane %v3996_v0, 1 }
  0x30   : > { %v593_v34 = vsel %vm445_vm0, %v588_v27, %v592_v31  ;;  %v492_v43 = vor.u32 %v490_v42, %v488_v38  ;;  %v524_v58 = vor.u32 %v522_v47, %v520_v13  ;;  %v4014_v13 = vld [vmem:[%s5652_s1 + $0x20] sm:$0xff]  ;;  %v482_v16 = vshrl.u32 %v4410_v35, 16 }
  0x31   : > { %v481_v4 = vsel %vm445_vm0, %v476_v51, %v480_v52  ;;  %1745 = vmatpush.bf16.msrb.mxu0 %v4014_v13  ;;  %v570_v19 = vshrl.u32 %v4427_v21, 16  ;;  %v4040_v27 = vld [vmem:[%s4302_s13] sm:$0xf0]  ;;  %v4041_v31 = vld [vmem:[%s4302_s13] sm:$0xe]  ;;  %v1517_v42 = vshrl.u32 %v3996_v0, 16 }
  0x32   : > { %v497_v48 = vsel %vm445_vm0, %v492_v43, %v4330_v17  ;;  %v529_v5 = vsel %vm445_vm0, %v524_v58, %v528_v23  ;;  %v484_v20 = vor.u32 %v482_v16, %v480_v52  ;;  %v4042_v33 = vor.u32 %v4041_v31, %v4040_v27  ;;  %v3999_v52 = vld [vmem:[%s4302_s13 + $0x28] sm:$0xff] }
  0x33   : > { %3627 = vmatmul.msk.bf16.gmra.mxu0 %vm600_vm1, %v465_v49  ;;  %v562_v49 = vshrl.u32 %v4382_v57, 16  ;;  %v1520_v43 = vshll.u32 %v3996_v0, 16  ;;  %v1519_v47 = vrot.slane %v1517_v42, 1  ;;  %v4519_v42 = vld [vmem:[%s4302_s13 + $0x40] sm:$0xff] }
  0x34   : > { %3633 = vmatmul.msk.bf16.gmra.mxu1 %vm600_vm1, %v513_v50  ;;  %v566_v50 = vshll.u32 %v4427_v21, 16  ;;  %v489_v24 = vsel %vm445_vm0, %v484_v20, %v488_v38  ;;  %v903_v39 = vrot.slane %v4042_v33, 1  ;;  %v904_v38 = vrot.slane %v4308_v2, 1 }
  0x35   : > { %3638 = vmatmul.msk.bf16.gmra.mxu2 %vm600_vm1, %v553_v53  ;;  %v1135_v53 = vld [vmem:[%s4302_s13 + $0x8] sm:$0xe]  ;;  %v564_v62 = vor.u32 %v562_v49, %v560_v18  ;;  %v3997_v18 = vld [vmem:[%s4302_s13 + $0x18] sm:$0xff]  ;;  %v1522_v49 = vrot.slane %v1520_v43, 2  ;;  %v1547_v33 = vshll.u32 %v3999_v52, 16 }
  0x36   : > { %v1212_v59 = vunpack.c.l.b16 %v1135_v53  ;;  %v568_v63 = vrot.slane %v566_v50, 1  ;;  %v1275_v53 = vrot.slane %v3999_v52, 1 }
  0x37   : > { %v1523_v51 = vor.u32 %v1522_v49, %v1519_v47  ;;  %v1281_v47 = vrot.slane %v4519_v42, 1 }
  0x38   : > { %v1249_v17 = vpack.c.b16 %v5657_v61, %v1212_v59  ;;  %v569_v11 = vsel %vm445_vm0, %v564_v62, %v568_v63  ;;  %v572_v23 = vor.u32 %v570_v19, %v568_v63  ;;  %v1526_v62 = vshrl.u32 %v3997_v18, 16 }
  0x39   : > { %v1529_v63 = vshll.u32 %v3997_v18, 16 }
  0x3a   : > { %3643 = vmatmul.msk.bf16.gmra.mxu3 %vm600_vm1, %v593_v34  ;;  %v1268_v9 = vrot.slane %v1249_v17, 1  ;;  %v577_v26 = vsel %vm445_vm0, %v572_v23, %v4363_v46  ;;  %v905_v46 = vsel %vm902_vm2, %v903_v39, %v904_v38  ;;  %v1512_v41 = vshll.u32 %v1249_v17, 16  ;;  %v4001_v23 = vld [vmem:[%s4302_s13 + $0x38] sm:$0xff] }
  0x3b   : > { %v1528_v0 = vrot.slane %v1526_v62, 1  ;;  %v1279_v27 = vrot.slane %v4001_v23, 1 }
  0x3c   : > { %v1270_v12 = vsel %vm902_vm2, %v1268_v9, %v1269_v10  ;;  %v1514_v45 = vrot.slane %v1512_v41, 2  ;;  %v4000_v9 = vld [vmem:[%s4302_s13 + $0x30] sm:$0xff]  ;;  %v912_v41 = vrot.slane %v4396_v14, 1 }
  0x43   : > { %3628 = vmatmul.msk.bf16.gmra.mxu0 %vm600_vm1, %v473_v22  ;;  %v1271_v22 = vrot.slane %v3997_v18, 1 }
  0x44   : > { %3634 = vmatmul.msk.bf16.gmra.mxu1 %vm600_vm1, %v521_v25 }
  0x45   : > { %3639 = vmatmul.msk.bf16.gmra.mxu2 %vm600_vm1, %v561_v32  ;;  %v1272_v25 = vsel %vm902_vm2, %v1269_v10, %v1271_v22  ;;  %v3998_v32 = vld [vmem:[%s4302_s13 + $0x20] sm:$0xff] }
  0x46   : > { %v1273_v34 = vrot.slane %v3998_v32, 1  ;;  %v1535_v13 = vshrl.u32 %v3998_v32, 16  ;;  %v1538_v16 = vshll.u32 %v3998_v32, 16  ;;  %v1544_v32 = vshrl.u32 %v3999_v52, 16 }
  0x48   : > { %v1274_v40 = vsel %vm902_vm2, %v1271_v22, %v1273_v34  ;;  %v1276_v59 = vsel %vm902_vm2, %v1273_v34, %v1275_v53  ;;  %v1537_v18 = vrot.slane %v1535_v13, 1  ;;  %v1540_v19 = vrot.slane %v1538_v16, 2 }
  0x49   : > { %v910_v22 = vrot.slane %v4410_v35, 1  ;;  %v1562_v13 = vshrl.u32 %v4001_v23, 16  ;;  %v1565_v16 = vshll.u32 %v4001_v23, 16  ;;  %v4577_v23 = vld [vmem:[%s4302_s13 + $0x50] sm:$0xff] }
  0x4a   : > { %3764 = vmatmul.msk.bf16.vlgmr.msrb.gmra.mxu3 %vm600_vm1, %v1270_v12  ;;  %v1541_v20 = vor.u32 %v1540_v19, %v1537_v18 }
  0x4b   : > { %v913_v49 = vsel %vm902_vm2, %v910_v22, %v912_v41 }
  0x53   : > { %3629 = vmatmul.msk.bf16.gmra.mxu0 %vm600_vm1, %v481_v4 }
  0x54   : > { %3635 = vmatmul.msk.bf16.gmra.mxu1 %vm600_vm1, %v529_v5  ;;  %v908_v5 = vrot.slane %v4374_v55, 1 }
  0x55   : > { %3640 = vmatmul.msk.bf16.gmra.mxu2 %vm600_vm1, %v569_v11  ;;  %v1277_v11 = vrot.slane %v4000_v9, 1 }
  0x57   : > { %v1280_v31 = vsel %vm902_vm2, %v1277_v11, %v1279_v27 }
  0x5a   : > { %3765 = vmatmul.msk.bf16.gmra.mxu3 %vm600_vm1, %v1272_v25 }
  0x63   : > { %3630 = vmatmul.msk.bf16.gmra.mxu0 %vm600_vm1, %v489_v24 }
  0x64   : > { %3636 = vmatmul.msk.bf16.gmra.mxu1 %vm600_vm1, %v537_v36  ;;  %v1509_v36 = vshrl.u32 %v1249_v17, 16  ;;  %v1531_v17 = vrot.slane %v1529_v63, 2 }
  0x65   : > { %3641 = vmatmul.msk.bf16.gmra.mxu2 %vm600_vm1, %v577_v26 }
  0x66   : > { %v1511_v44 = vrot.slane %v1509_v36, 1  ;;  %v1532_v4 = vor.u32 %v1531_v17, %v1528_v0  ;;  %v914_v0 = vrot.slane %v4311_v3, 1  ;;  %v4548_v17 = vld [vmem:[%s4302_s13 + $0x48] sm:$0xff] }
  0x68   : > { %v1515_v50 = vor.u32 %v1514_v45, %v1511_v44  ;;  %v1533_v10 = vsel %vm1507_vm3, %v1523_v51, %v1532_v4  ;;  %v1542_v25 = vsel %vm1507_vm3, %v1532_v4, %v1541_v20 }
  0x6a   : > { %3766 = vmatmul.msk.bf16.gmra.mxu3 %vm600_vm1, %v1274_v40  ;;  %v1549_v40 = vrot.slane %v1547_v33, 2 }
  0x73   : > { %3631 = vmatmul.msk.bf16.gmra.mxu0 %vm600_vm1, %v497_v48  ;;  %v906_v48 = vrot.slane %v4343_v28, 1 }
  0x74   : > { %3648 = vmatmul.msk.bf16.vlgmr.msrb.gmra.mxu1 %vm600_vm1, %v4305_v1  ;;  %v1524_v1 = vsel %vm1507_vm3, %v1515_v50, %v1523_v51  ;;  %v1282_v50 = vsel %vm902_vm2, %v1279_v27, %v1281_v47  ;;  %v1553_v51 = vshrl.u32 %v4000_v9, 16 }
  0x75   : > { %3672 = vmatmul.msk.bf16.vlgmr.msrb.gmra.mxu2 %vm600_vm1, %v905_v46  ;;  %v907_v58 = vsel %vm902_vm2, %v904_v38, %v906_v48  ;;  %v909_v12 = vsel %vm902_vm2, %v906_v48, %v908_v5  ;;  %v1546_v38 = vrot.slane %v1544_v32, 1  ;;  %v1556_v48 = vshll.u32 %v4000_v9, 16 }
  0x77   : > { %v1550_v36 = vor.u32 %v1549_v40, %v1546_v38 }
  0x79   : > { %v1551_v44 = vsel %vm1507_vm3, %v1541_v20, %v1550_v36 }
  0x7a   : > { %3767 = vmatmul.msk.bf16.gmra.mxu3 %vm600_vm1, %v1276_v59  ;;  %v1558_v59 = vrot.slane %v1556_v48, 2 }
  0x83   : > { %3788 = vmatmul.msk.bf16.vlgmr.msrb.gmra.mxu0 %vm600_vm1, %v1524_v1 }
  0x84   : > { %3649 = vmatmul.msk.bf16.gmra.mxu1 %vm600_vm1, %v4308_v2  ;;  %v1278_v2 = vsel %vm902_vm2, %v1275_v53, %v1277_v11  ;;  %v1283_v11 = vrot.slane %v4548_v17, 1 }
  0x85   : > { %3673 = vmatmul.msk.bf16.gmra.mxu2 %vm600_vm1, %v907_v58  ;;  %v1555_v58 = vrot.slane %v1553_v51, 1 }
  0x87   : > { %v1559_v63 = vor.u32 %v1558_v59, %v1555_v58 }
  0x89   : > { %v1560_v9 = vsel %vm1507_vm3, %v1550_v36, %v1559_v63  ;;  %v1285_v36 = vrot.slane %v4577_v23, 1 }
  0x8a   : > { %3768 = vmatmul.msk.bf16.gmra.mxu3 %vm600_vm1, %v1278_v2  ;;  %v1284_v2 = vsel %vm902_vm2, %v1281_v47, %v1283_v11  ;;  %v1571_v47 = vshrl.u32 %v4519_v42, 16 }
  0x8c   : > { %v1573_v58 = vrot.slane %v1571_v47, 1 }
  0x93   : > { %3789 = vmatmul.msk.bf16.gmra.mxu0 %vm600_vm1, %v1533_v10 }
  0x94   : > { %3650 = vmatmul.msk.bf16.gmra.mxu1 %vm600_vm1, %v4343_v28  ;;  %v911_v28 = vsel %vm902_vm2, %v908_v5, %v910_v22  ;;  %v1564_v22 = vrot.slane %v1562_v13, 1 }
  0x95   : > { %3674 = vmatmul.msk.bf16.gmra.mxu2 %vm600_vm1, %v909_v12  ;;  %v915_v12 = vsel %vm902_vm2, %v912_v41, %v914_v0 }
  0x9a   : > { %3769 = vmatmul.msk.bf16.gmra.mxu3 %vm600_vm1, %v1280_v31  ;;  %v916_v31 = vrot.slane %v4316_v6, 1 }
  0x9c   : > { %v917_v41 = vsel %vm902_vm2, %v914_v0, %v916_v31 }
  0xa0   : > { %v4499_v24 = vpop.f32.mrf.mxu0 }
  0xa1   : > { %v4502_v26 = vpop.f32.mrf.mxu1 }
  0xa3   : > { %3790 = vmatmul.msk.bf16.gmra.mxu0 %vm600_vm1, %v1542_v25  ;;  %v1567_v25 = vrot.slane %v1565_v16, 2 }
  0xa4   : > { %3651 = vmatmul.msk.bf16.gmra.mxu1 %vm600_vm1, %v4374_v55 }
  0xa5   : > { %3675 = vmatmul.msk.bf16.gmra.mxu2 %vm600_vm1, %v911_v28  ;;  %v1568_v28 = vor.u32 %v1567_v25, %v1564_v22 }
  0xa7   : > { %v1569_v38 = vsel %vm1507_vm3, %v1559_v63, %v1568_v28 }
  0xa8   : > { %v4511_v34 = vpop.f32.mrf.mxu0  ;;  %v4513_v39 = vpop.f32.mrf.mxu2 }
  0xa9   : > { %v4515_v46 = vpop.f32.mrf.mxu1 }
  0xaa   : > { %3770 = vmatmul.msk.bf16.gmra.mxu3 %vm600_vm1, %v1282_v50 }
  0xad   : > { %v4536_v52 = vpop.f32.mrf.mxu3 }
  0xae   : > { %5664 = vst [vmem:[#allocation6_spill] sm:$0xff] %v4536_v52 }
  0xb0   : > { %v4521_v55 = vpop.f32.mrf.mxu0  ;;  %v4523_v43 = vpop.f32.mrf.mxu2 }
  0xb1   : > { %v4526_v45 = vpop.f32.mrf.mxu1 }
  0xb3   : > { %3791 = vmatmul.msk.bf16.gmra.mxu0 %vm600_vm1, %v1551_v44  ;;  %v1286_v44 = vsel %vm902_vm2, %v1283_v11, %v1285_v36  ;;  %v4604_v11 = vld [vmem:[%s4302_s13 + $0x58] sm:$0xff] }
  0xb4   : > { %3652 = vmatmul.msk.bf16.gmra.mxu1 %vm600_vm1, %v4410_v35  ;;  %v1287_v16 = vrot.slane %v4604_v11, 1 }
  0xb5   : > { %3676 = vmatmul.msk.bf16.gmra.mxu2 %vm600_vm1, %v913_v49  ;;  %v4545_v35 = vpop.f32.mrf.mxu3  ;;  %v1574_v49 = vshll.u32 %v4519_v42, 16 }
  0xb6   : > { %5665 = vst [vmem:[#allocation7_spill] sm:$0xff] %v4545_v35  ;;  %v1288_v25 = vsel %vm902_vm2, %v1285_v36, %v1287_v16 }
  0xb7   : > { %v1576_v59 = vrot.slane %v1574_v49, 2 }
  0xb8   : > { %v4538_v1 = vpop.f32.mrf.mxu0  ;;  %v4540_v53 = vpop.f32.mrf.mxu2 }
  0xb9   : > { %v4542_v62 = vpop.f32.mrf.mxu1  ;;  %v1577_v0 = vor.u32 %v1576_v59, %v1573_v58 }
  0xba   : > { %3771 = vmatmul.msk.bf16.gmra.mxu3 %vm600_vm1, %v1284_v2 }
  0xbb   : > { %v1578_v2 = vsel %vm1507_vm3, %v1568_v28, %v1577_v0 }
  0xbd   : > { %v4565_v18 = vpop.f32.mrf.mxu3 }
  0xbe   : > { %5666 = vst [vmem:[#allocation8_spill] sm:$0xff] %v4565_v18 }
  0xc0   : > { %v4550_v4 = vpop.f32.mrf.mxu0  ;;  %v4552_v5 = vpop.f32.mrf.mxu2 }
  0xc1   : > { %v4555_v10 = vpop.f32.mrf.mxu1 }
  0xc3   : > { %3792 = vmatmul.msk.bf16.gmra.mxu0 %vm600_vm1, %v1560_v9 }
  0xc4   : > { %3653 = vmatmul.msk.bf16.gmra.mxu1 %vm600_vm1, %v4396_v14 }
  0xc5   : > { %3677 = vmatmul.msk.bf16.gmra.mxu2 %vm600_vm1, %v915_v12  ;;  %v4574_v14 = vpop.f32.mrf.mxu3 }
  0xc6   : > { %5668 = vst [vmem:[#allocation10_spill] sm:$0xff] %v4574_v14 }
  0xc8   : > { %v4567_v19 = vpop.f32.mrf.mxu0  ;;  %v4569_v20 = vpop.f32.mrf.mxu2 }
  0xc9   : > { %5667 = vst [vmem:[#allocation9_spill] sm:$0xff] %v4569_v20  ;;  %v4571_v27 = vpop.f32.mrf.mxu1 }
  0xca   : > { %3772 = vmatmul.msk.bf16.gmra.mxu3 %vm600_vm1, %v1286_v44 }
  0xcd   : > { %v1374_v50 = vpop.f32.mrf.mxu3 }
  0xd0   : > { %v4579_v32 = vpop.f32.mrf.mxu0  ;;  %v4581_v33 = vpop.f32.mrf.mxu2 }
  0xd1   : > { %5669 = vst [vmem:[#allocation11_spill] sm:$0xff] %v4581_v33  ;;  %v4584_v40 = vpop.f32.mrf.mxu1 }
  0xd3   : > { %3793 = vmatmul.msk.bf16.gmra.mxu0 %vm600_vm1, %v1569_v38  ;;  %v1580_v38 = vshrl.u32 %v4548_v17, 16 }
  0xd4   : > { %3654 = vmatmul.msk.bf16.gmra.mxu1 %vm600_vm1, %v4311_v3  ;;  %v918_v3 = vrot.slane %v4347_v29, 1 }
  0xd5   : > { %3678 = vmatmul.msk.bf16.gmra.mxu2 %vm600_vm1, %v917_v41  ;;  %v1376_v9 = vpop.f32.mrf.mxu3  ;;  %v1583_v41 = vshll.u32 %v4548_v17, 16  ;;  %v1582_v47 = vrot.slane %v1580_v38, 1 }
  0xd6   : > { %v919_v22 = vsel %vm902_vm2, %v916_v31, %v918_v3 }
  0xd7   : > { %v1585_v49 = vrot.slane %v1583_v41, 2 }
  0xd8   : > { %v4596_v51 = vpop.f32.mrf.mxu0  ;;  %v4598_v48 = vpop.f32.mrf.mxu2 }
  0xd9   : > { %5670 = vst [vmem:[#allocation12_spill] sm:$0xff] %v4598_v48  ;;  %v4600_v63 = vpop.f32.mrf.mxu1  ;;  %v1586_v36 = vor.u32 %v1585_v49, %v1582_v47  ;;  %v1589_v47 = vshrl.u32 %v4577_v23, 16  ;;  %v1592_v49 = vshll.u32 %v4577_v23, 16  ;;  %v922_v23 = vrot.slane %v4387_v60, 1 }
  0xda   : > { %3773 = vmatmul.msk.bf16.gmra.mxu3 %vm600_vm1, %v1288_v25 }
  0xdb   : > { %v1594_v35 = vrot.slane %v1592_v49, 2 }
  0xdd   : > { %v1379_v28 = vpop.f32.mrf.mxu3 }
  0xe0   : > { %v4606_v42 = vpop.f32.mrf.mxu0  ;;  %v4608_v12 = vpop.f32.mrf.mxu2 }
  0xe1   : > { %5671 = vst [vmem:[#allocation13_spill] sm:$0xff] %v4608_v12  ;;  %v4611_v13 = vpop.f32.mrf.mxu1 }
  0xe3   : > { %3794 = vmatmul.msk.bf16.gmra.mxu0 %vm600_vm1, %v1578_v2  ;;  %v4633_v2 = vld [vmem:[%s4302_s13 + $0x60] sm:$0xff] }
  0xe4   : > { %3655 = vmatmul.msk.bf16.gmra.mxu1 %vm600_vm1, %v4316_v6  ;;  %v920_v6 = vrot.slane %v4379_v56, 1  ;;  %v1289_v14 = vrot.slane %v4633_v2, 1 }
  0xe5   : > { %3679 = vmatmul.msk.bf16.gmra.mxu2 %vm600_vm1, %v919_v22  ;;  %v4630_v59 = vpop.f32.mrf.mxu3  ;;  %v1587_v22 = vsel %vm1507_vm3, %v1577_v0, %v1586_v36 }
  0xe6   : > { %v921_v38 = vsel %vm902_vm2, %v918_v3, %v920_v6  ;;  %v1290_v41 = vsel %vm902_vm2, %v1287_v16, %v1289_v14  ;;  %v1591_v16 = vrot.slane %v1589_v47, 1 }
  0xe8   : > { %v4623_v44 = vpop.f32.mrf.mxu0  ;;  %v4625_v31 = vpop.f32.mrf.mxu2 }
  0xe9   : > { %5672 = vst [vmem:[#allocation14_spill] sm:$0xff] %v4625_v31  ;;  %v4627_v58 = vpop.f32.mrf.mxu1  ;;  %v1595_v31 = vor.u32 %v1594_v35, %v1591_v16 }
  0xea   : > { %3774 = vmatmul.msk.bf16.gmra.mxu3 %vm600_vm1, %v1290_v41 }
  0xeb   : > { %v1596_v48 = vsel %vm1507_vm3, %v1586_v36, %v1595_v31  ;;  %v1601_v36 = vshll.u32 %v4604_v11, 16 }
  0xed   : > { %v4651_v18 = vpop.f32.mrf.mxu3 }
  0xf0   : > { %v4635_v17 = vpop.f32.mrf.mxu0  ;;  %v4637_v25 = vpop.f32.mrf.mxu2 }
  0xf1   : > { %5673 = vst [vmem:[#allocation15_spill] sm:$0xff] %v4637_v25  ;;  %v805_v61 = vpop.f32.mrf.mxu1 }
  0xf2   : > { %v806_v0 = vadd.f32 %v805_v61, %v4499_v24 }
  0xf3   : > { %3795 = vmatmul.msk.bf16.gmra.mxu0 %vm600_vm1, %v1587_v22 }
  0xf4   : > { %3656 = vmatmul.msk.bf16.gmra.mxu1 %vm600_vm1, %v4347_v29 }
  0xf5   : > { %3680 = vmatmul.msk.bf16.gmra.mxu2 %vm600_vm1, %v921_v38  ;;  %v4657_v41 = vpop.f32.mrf.mxu3  ;;  %v4660_v38 = vld [vmem:[%s4302_s13 + $0x68] sm:$0xff] }
  0xf6   : > { %v1291_v49 = vrot.slane %v4660_v38, 1 }
  0xf8   : > { %v4653_v3 = vpop.f32.mrf.mxu0  ;;  %v1009_v22 = vpop.f32.mrf.mxu2 }
  0xf9   : > { %v1099_v52 = vadd.f32 %v1009_v22, %v806_v0  ;;  %v807_v29 = vpop.f32.mrf.mxu1 }
  0xfa   : > { %v808_v12 = vadd.f32 %v807_v29, %v4511_v34  ;;  %v1292_v34 = vsel %vm902_vm2, %v1289_v14, %v1291_v49  ;;  %v1603_v14 = vrot.slane %v1601_v36, 2 }
  0xfb   : > { %v1464_v25 = vadd.f32 %v1374_v50, %v1099_v52  ;;  %v923_v52 = vsel %vm902_vm2, %v920_v6, %v922_v23  ;;  %v1598_v50 = vshrl.u32 %v4604_v11, 16  ;;  %3775 = vmatmul.msk.bf16.gmra.mxu3 %vm600_vm1, %v1292_v34  ;;  %v924_v11 = vrot.slane %v4319_v7, 1 }
  0xfd   : > { %v4676_v6 = vpop.f32.mrf.mxu3 }
 0x100   : > { %v1011_v61 = vpop.f32.mrf.mxu2  ;;  %v1747_v24 = vpop.f32.mrf.mxu0 }
 0x101   : > { %v1100_v33 = vadd.f32 %v1011_v61, %v808_v12  ;;  %v4663_v20 = vadd.f32 %v1747_v24, %v1464_v25  ;;  %v810_v47 = vpop.f32.mrf.mxu1  ;;  %v4685_v24 = vld [vmem:[%s4302_s13 + $0x70] sm:$0xff] }
 0x102   : > { %v811_v12 = vadd.f32 %v810_v47, %v4521_v55  ;;  %v1293_v36 = vrot.slane %v4685_v24, 1 }
 0x103   : > { %3796 = vmatmul.msk.bf16.gmra.mxu0 %vm600_vm1, %v1596_v48  ;;  %v1465_v35 = vadd.f32 %v1376_v9, %v1100_v33  ;;  %v1600_v9 = vrot.slane %v1598_v50, 1 }
 0x104   : > { %3657 = vmatmul.msk.bf16.gmra.mxu1 %vm600_vm1, %v4379_v56 }
 0x105   : > { %3681 = vmatmul.msk.bf16.gmra.mxu2 %vm600_vm1, %v923_v52  ;;  %v1604_v16 = vor.u32 %v1603_v14, %v1600_v9  ;;  %v4682_v61 = vpop.f32.mrf.mxu3 }
 0x107   : > { %v1605_v52 = vsel %vm1507_vm3, %v1595_v31, %v1604_v16  ;;  %v1610_v31 = vshll.u32 %v4633_v2, 16 }
 0x108   : > { %v1014_v48 = vpop.f32.mrf.mxu2  ;;  %v1749_v33 = vpop.f32.mrf.mxu0 }
 0x109   : > { %v1101_v25 = vadd.f32 %v1014_v48, %v811_v12  ;;  %v4678_v0 = vadd.f32 %v1749_v33, %v1465_v35  ;;  %v812_v56 = vpop.f32.mrf.mxu1  ;;  %v1294_v12 = vsel %vm902_vm2, %v1291_v49, %v1293_v36  ;;  %v1607_v48 = vshrl.u32 %v4633_v2, 16 }
 0x10a   : > { %v813_v29 = vadd.f32 %v812_v56, %v4538_v1  ;;  %v1612_v49 = vrot.slane %v1610_v31, 2 }
 0x10b   : > { %v1466_v22 = vadd.f32 %v1379_v28, %v1101_v25  ;;  %v925_v28 = vsel %vm902_vm2, %v922_v23, %v924_v11  ;;  %3776 = vmatmul.msk.bf16.gmra.mxu3 %vm600_vm1, %v1294_v12  ;;  %v1609_v14 = vrot.slane %v1607_v48, 1 }
 0x10d   : > { %v4702_v33 = vpop.f32.mrf.mxu3  ;;  %v1613_v2 = vor.u32 %v1612_v49, %v1609_v14 }
 0x110   : > { %v1016_v55 = vpop.f32.mrf.mxu2  ;;  %v1752_v47 = vpop.f32.mrf.mxu0 }
 0x111   : > { %v1102_v34 = vadd.f32 %v1016_v55, %v813_v29  ;;  %v4688_v50 = vadd.f32 %v1752_v47, %v1466_v22  ;;  %v815_v35 = vpop.f32.mrf.mxu1  ;;  %v926_v29 = vrot.slane %v4322_v8, 1 }
 0x112   : > { %v816_v23 = vadd.f32 %v815_v35, %v4550_v4  ;;  %v4712_v4 = vld [vmem:[%s4302_s13 + $0x78] sm:$0xff]  ;;  %v1614_v35 = vsel %vm1507_vm3, %v1604_v16, %v1613_v2  ;;  %v1619_v16 = vshll.u32 %v4660_v38, 16 }
 0x113   : > { %3797 = vmatmul.msk.bf16.gmra.mxu0 %vm600_vm1, %v1605_v52  ;;  %v1467_v1 = vadd.f32 %v4630_v59, %v1102_v34  ;;  %v1295_v48 = vrot.slane %v4712_v4, 1 }
 0x114   : > { %3658 = vmatmul.msk.bf16.gmra.mxu1 %vm600_vm1, %v4387_v60 }
 0x115   : > { %3682 = vmatmul.msk.bf16.gmra.mxu2 %vm600_vm1, %v925_v28  ;;  %v4709_v47 = vpop.f32.mrf.mxu3  ;;  %v1296_v31 = vsel %vm902_vm2, %v1293_v36, %v1295_v48  ;;  %v1621_v36 = vrot.slane %v1619_v16, 2  ;;  %v1625_v16 = vshrl.u32 %v4685_v24, 16 }
 0x118   : > { %v1019_v9 = vpop.f32.mrf.mxu2  ;;  %v1754_v59 = vpop.f32.mrf.mxu0 }
 0x119   : > { %v1103_v25 = vadd.f32 %v1019_v9, %v816_v23  ;;  %v4704_v56 = vadd.f32 %v1754_v59, %v1467_v1  ;;  %v817_v60 = vpop.f32.mrf.mxu1  ;;  %v1616_v23 = vshrl.u32 %v4660_v38, 16 }
 0x11a   : > { %v818_v55 = vadd.f32 %v817_v60, %v4567_v19 }
 0x11b   : > { %v1468_v22 = vadd.f32 %v4651_v18, %v1103_v25  ;;  %v927_v18 = vsel %vm902_vm2, %v924_v11, %v926_v29  ;;  %3777 = vmatmul.msk.bf16.gmra.mxu3 %vm600_vm1, %v1296_v31  ;;  %v1618_v14 = vrot.slane %v1616_v23, 1 }
 0x11d   : > { %v4729_v9 = vpop.f32.mrf.mxu3  ;;  %v1622_v38 = vor.u32 %v1621_v36, %v1618_v14 }
 0x120   : > { %v1021_v52 = vpop.f32.mrf.mxu2  ;;  %v1757_v34 = vpop.f32.mrf.mxu0 }
 0x121   : > { %v1104_v28 = vadd.f32 %v1021_v52, %v818_v55  ;;  %v4715_v12 = vadd.f32 %v1757_v34, %v1468_v22  ;;  %v820_v1 = vpop.f32.mrf.mxu1  ;;  %v928_v22 = vrot.slane %v4350_v30, 1 }
 0x122   : > { %v821_v11 = vadd.f32 %v820_v1, %v4579_v32  ;;  %v4739_v32 = vld [vmem:[%s4302_s13 + $0x80] sm:$0xff] }
 0x123   : > { %3798 = vmatmul.msk.bf16.gmra.mxu0 %vm600_vm1, %v1614_v35  ;;  %v1469_v19 = vadd.f32 %v4657_v41, %v1104_v28  ;;  %v1623_v28 = vsel %vm1507_vm3, %v1613_v2, %v1622_v38  ;;  %v1297_v31 = vrot.slane %v4739_v32, 1  ;;  %v1628_v2 = vshll.u32 %v4685_v24, 16 }
 0x124   : > { %3659 = vmatmul.msk.bf16.gmra.mxu1 %vm600_vm1, %v4319_v7 }
 0x125   : > { %3683 = vmatmul.msk.bf16.gmra.mxu2 %vm600_vm1, %v927_v18  ;;  %v4736_v52 = vpop.f32.mrf.mxu3  ;;  %v1298_v23 = vsel %vm902_vm2, %v1295_v48, %v1297_v31  ;;  %v1630_v48 = vrot.slane %v1628_v2, 2 }
 0x128   : > { %v1024_v59 = vpop.f32.mrf.mxu2  ;;  %v1759_v41 = vpop.f32.mrf.mxu0 }
 0x129   : > { %v1105_v49 = vadd.f32 %v1024_v59, %v821_v11  ;;  %v4731_v25 = vadd.f32 %v1759_v41, %v1469_v19  ;;  %v822_v7 = vpop.f32.mrf.mxu1  ;;  %v1627_v41 = vrot.slane %v1625_v16, 1  ;;  %v1634_v16 = vshrl.u32 %v4712_v4, 16 }
 0x12a   : > { %v823_v55 = vadd.f32 %v822_v7, %v4596_v51  ;;  %v930_v7 = vrot.slane %v4382_v57, 1 }
 0x12b   : > { %v1470_v60 = vadd.f32 %v4676_v6, %v1105_v49  ;;  %v929_v6 = vsel %vm902_vm2, %v926_v29, %v928_v22  ;;  %3778 = vmatmul.msk.bf16.gmra.mxu3 %vm600_vm1, %v1298_v23  ;;  %v1631_v24 = vor.u32 %v1630_v48, %v1627_v41 }
 0x12d   : > { %v4756_v11 = vpop.f32.mrf.mxu3 }
 0x130   : > { %v1026_v34 = vpop.f32.mrf.mxu2  ;;  %v1762_v35 = vpop.f32.mrf.mxu0 }
 0x131   : > { %v1106_v1 = vadd.f32 %v1026_v34, %v823_v55  ;;  %v4742_v18 = vadd.f32 %v1762_v35, %v1470_v60  ;;  %v825_v19 = vpop.f32.mrf.mxu1 }
 0x132   : > { %v826_v29 = vadd.f32 %v825_v19, %v4606_v42  ;;  %v4766_v42 = vld [vmem:[%s4302_s13 + $0x88] sm:$0xff] }
 0x133   : > { %3799 = vmatmul.msk.bf16.gmra.mxu0 %vm600_vm1, %v1623_v28  ;;  %v1471_v51 = vadd.f32 %v4682_v61, %v1106_v1  ;;  %v1632_v28 = vsel %vm1507_vm3, %v1622_v38, %v1631_v24  ;;  %v1637_v38 = vshll.u32 %v4712_v4, 16 }
 0x134   : > { %3660 = vmatmul.msk.bf16.gmra.mxu1 %vm600_vm1, %v4322_v8 }
 0x135   : > { %3684 = vmatmul.msk.bf16.gmra.mxu2 %vm600_vm1, %v929_v6  ;;  %v4763_v55 = vpop.f32.mrf.mxu3 }
 0x138   : > { %v1029_v59 = vpop.f32.mrf.mxu2  ;;  %v1764_v61 = vpop.f32.mrf.mxu0 }
 0x139   : > { %v1107_v14 = vadd.f32 %v1029_v59, %v826_v29  ;;  %v4758_v36 = vadd.f32 %v1764_v61, %v1471_v51  ;;  %v827_v8 = vpop.f32.mrf.mxu1  ;;  %v1299_v51 = vrot.slane %v4766_v42, 1  ;;  %v1636_v59 = vrot.slane %v1634_v16, 1 }
 0x13a   : > { %v828_v60 = vadd.f32 %v827_v8, %v4623_v44 }
 0x13b   : > { %v1472_v49 = vadd.f32 %v4702_v33, %v1107_v14  ;;  %v931_v33 = vsel %vm902_vm2, %v928_v22, %v930_v7  ;;  %v1300_v23 = vsel %vm902_vm2, %v1297_v31, %v1299_v51  ;;  %v1639_v31 = vrot.slane %v1637_v38, 2 }
 0x13c   : > { %3779 = vmatmul.msk.bf16.gmra.mxu3 %vm600_vm1, %v1300_v23  ;;  %v932_v14 = vrot.slane %v4427_v21, 1  ;;  %v1643_v23 = vshrl.u32 %v4739_v32, 16 }
 0x13d   : > { %v4783_v2 = vpop.f32.mrf.mxu3  ;;  %v1640_v4 = vor.u32 %v1639_v31, %v1636_v59  ;;  %v4034_v59 = vld [vmem:[%s5652_s1 + $0x38] sm:$0xff] }
 0x13e   : > { %2723 = vmatpush.bf16.msra.mxu3 %v4034_v59 }
 0x140   : > { %v1031_v34 = vpop.f32.mrf.mxu2  ;;  %v1767_v35 = vpop.f32.mrf.mxu0 }
 0x141   : > { %v1108_v1 = vadd.f32 %v1031_v34, %v828_v60  ;;  %v4769_v19 = vadd.f32 %v1767_v35, %v1472_v49  ;;  %v830_v6 = vpop.f32.mrf.mxu1  ;;  %v1641_v35 = vsel %vm1507_vm3, %v1631_v24, %v1640_v4  ;;  %v1646_v24 = vshll.u32 %v4739_v32, 16  ;;  %v4033_v32 = vld [vmem:[%s5652_s1 + $0x30] sm:$0xff] }
 0x142   : > { %v831_v22 = vadd.f32 %v830_v6, %v4635_v17  ;;  %v4793_v17 = vld [vmem:[%s4302_s13 + $0x90] sm:$0xff]  ;;  %2350 = vmatpush.bf16.msra.mxu2 %v4033_v32 }
 0x143   : > { %3800 = vmatmul.msk.bf16.gmra.mxu0 %vm600_vm1, %v1632_v28  ;;  %v1473_v44 = vadd.f32 %v4709_v47, %v1108_v1 }
 0x144   : > { %3661 = vmatmul.msk.bf16.gmra.mxu1 %vm600_vm1, %v4350_v30 }
 0x145   : > { %3685 = vmatmul.msk.bf16.gmra.mxu2 %vm600_vm1, %v931_v33  ;;  %v4790_v49 = vpop.f32.mrf.mxu3  ;;  %v1301_v33 = vrot.slane %v4793_v17, 1 }
 0x148   : > { %v1034_v29 = vpop.f32.mrf.mxu2  ;;  %v1769_v47 = vpop.f32.mrf.mxu0 }
 0x149   : > { %v1109_v61 = vadd.f32 %v1034_v29, %v831_v22  ;;  %v4785_v41 = vadd.f32 %v1769_v47, %v1473_v44  ;;  %v832_v30 = vpop.f32.mrf.mxu1  ;;  %v1302_v44 = vsel %vm902_vm2, %v1299_v51, %v1301_v33  ;;  %v1645_v22 = vrot.slane %v1643_v23, 1 }
 0x14a   : > { %v833_v8 = vadd.f32 %v832_v30, %v4653_v3  ;;  %v1648_v51 = vrot.slane %v1646_v24, 2  ;;  %v1171_v30 = vld [vmem:[%s4302_s13 + $0x98] sm:$0x1] }
 0x14b   : > { %v1474_v48 = vadd.f32 %v4729_v9, %v1109_v61  ;;  %v933_v9 = vsel %vm902_vm2, %v930_v7, %v932_v14 }
 0x14c   : > { %3780 = vmatmul.msk.bf16.gmra.mxu3 %vm600_vm1, %v1302_v44  ;;  %v1649_v61 = vor.u32 %v1648_v51, %v1645_v22 }
 0x14d   : > { %v4810_v7 = vpop.f32.mrf.mxu3 }
 0x150   : > { %v1036_v60 = vpop.f32.mrf.mxu2  ;;  %v1772_v34 = vpop.f32.mrf.mxu0 }
 0x151   : > { %v1110_v28 = vadd.f32 %v1036_v60, %v833_v8  ;;  %v4796_v1 = vadd.f32 %v1772_v34, %v1474_v48  ;;  %v835_v6 = vpop.f32.mrf.mxu1  ;;  %v1248_v48 = vunpack.c.l.b16 %v1171_v30  ;;  %v934_v8 = vrot.slane %v4359_v37, 1 }
 0x152   : > { %v836_v16 = vadd.f32 %v835_v6, %v4502_v26  ;;  %v4015_v26 = vld [vmem:[%s5652_s1 + $0x28] sm:$0xff] }
 0x153   : > { %3801 = vmatmul.msk.bf16.gmra.mxu0 %vm600_vm1, %v1641_v35  ;;  %v1475_v3 = vadd.f32 %v4736_v52, %v1110_v28  ;;  %1985 = vmatpush.bf16.msra.mxu1 %v4015_v26  ;;  %v1267_v35 = vpack.c.b16 %v1248_v48, %v1248_v48  ;;  %v935_v24 = vsel %vm902_vm2, %v932_v14, %v934_v8 }
 0x154   : > { %3662 = vmatmul.msk.bf16.gmra.mxu1 %vm600_vm1, %v4382_v57 }
 0x155   : > { %3686 = vmatmul.msk.bf16.gmra.mxu2 %vm600_vm1, %v933_v9  ;;  %v4827_v34 = vpop.f32.mrf.mxu3  ;;  %v1650_v9 = vsel %vm1507_vm3, %v1640_v4, %v1649_v61  ;;  %v1303_v23 = vrot.slane %v1267_v35, 1  ;;  %v1652_v4 = vshrl.u32 %v4766_v42, 16 }
 0x157   : > { %v1654_v22 = vrot.slane %v1652_v4, 1 }
 0x158   : > { %v1039_v38 = vpop.f32.mrf.mxu2  ;;  %v1774_v52 = vpop.f32.mrf.mxu0 }
 0x159   : > { %v1111_v29 = vadd.f32 %v1039_v38, %v836_v16  ;;  %v4812_v47 = vadd.f32 %v1774_v52, %v1475_v3  ;;  %v837_v57 = vpop.f32.mrf.mxu1  ;;  %v4035_v16 = vld [vmem:[%s5652_s1 + $0x40] sm:$0xff]  ;;  %v1655_v38 = vshll.u32 %v4766_v42, 16 }
 0x15a   : > { %v838_v60 = vadd.f32 %v837_v57, %v4515_v46  ;;  %v1304_v46 = vsel %vm902_vm2, %v1301_v33, %v1303_v23  ;;  %2963 = vmatpush.bf16.msra.mxu0 %v4035_v16 }
 0x15b   : > { %v1476_v31 = vadd.f32 %v4756_v11, %v1111_v29  ;;  %v1657_v51 = vrot.slane %v1655_v38, 2  ;;  %v4850_v29 = vld [vmem:[%s4302_s13 + $0x14] sm:$0xf] }
 0x15c   : > { %3781 = vmatmul.msk.bf16.gmra.mxu3 %vm600_vm1, %v1304_v46  ;;  %v2191_v26 = vunpack.c.l.b16 %v4850_v29 }
 0x15d   : > { %v4846_v14 = vpop.f32.mrf.mxu3  ;;  %v1658_v30 = vor.u32 %v1657_v51, %v1654_v22 }
 0x15f   : > { %v1659_v16 = vsel %vm1507_vm3, %v1649_v61, %v1658_v30  ;;  %v1661_v61 = vshrl.u32 %v4793_v17, 16 }
 0x160   : > { %v1041_v28 = vpop.f32.mrf.mxu2  ;;  %v1777_v6 = vpop.f32.mrf.mxu0 }
 0x161   : > { %v1112_v3 = vadd.f32 %v1041_v28, %v838_v60  ;;  %v4830_v44 = vadd.f32 %v1777_v6, %v1476_v31  ;;  %v840_v11 = vpop.f32.mrf.mxu1  ;;  %v4866_v28 = vld [vmem:[%s4302_s13 + $0x88] sm:$0xff] }
 0x162   : > { %v936_v6 = vrot.slane %v4866_v28, 1 }
 0x163   : > { %3802 = vmatmul.msk.bf16.gmra.mxu0 %vm600_vm1, %v1650_v9  ;;  %v1477_v37 = vadd.f32 %v4763_v55, %v1112_v3  ;;  %v841_v55 = vadd.f32 %v840_v11, %v4526_v45  ;;  %v4857_v45 = vld [vmem:[%s4302_s13 + $0x18] sm:$0xff] }
 0x164   : > { %3663 = vmatmul.msk.bf16.gmra.mxu1 %vm600_vm1, %v4427_v21  ;;  %v2113_v21 = vld [vmem:[%s4302_s13 + $0x10] sm:$0xc]  ;;  %v2495_v60 = vshrl.u32 %v4857_v45, 16  ;;  %v2498_v35 = vshll.u32 %v4857_v45, 16  ;;  %v937_v51 = vsel %vm902_vm2, %v934_v8, %v936_v6 }
 0x165   : > { %3687 = vmatmul.msk.bf16.gmra.mxu2 %vm600_vm1, %v935_v24  ;;  %v2190_v59 = vunpack.c.l.b16 %v2113_v21  ;;  %v4872_v11 = vpop.f32.mrf.mxu3 }
 0x166   : > { %v2497_v23 = vrot.slane %v2495_v60, 2  ;;  %v2500_v24 = vrot.slane %v2498_v35, 3  ;;  %v1663_v35 = vrot.slane %v1661_v61, 1 }
 0x167   : > { %v4861_v48 = vpack.c.b16 %v2191_v26, %v2190_v59 }
 0x168   : > { %v1044_v33 = vpop.f32.mrf.mxu2  ;;  %v1779_v52 = vpop.f32.mrf.mxu0  ;;  %v2501_v22 = vor.u32 %v2500_v24, %v2497_v23  ;;  %v1500_v24 = vld [vmem:[%s4302_s13 + $0x98] sm:$0x3] }
 0x169   : > { %v1113_v57 = vadd.f32 %v1044_v33, %v841_v55  ;;  %v4852_v42 = vadd.f32 %v1779_v52, %v1477_v37  ;;  %v842_v32 = vpop.f32.mrf.mxu1  ;;  %v2487_v9 = vshrl.u32 %v4861_v48, 16  ;;  %v2490_v3 = vshll.u32 %v4861_v48, 16 }
 0x16b   : > { %v1478_v31 = vadd.f32 %v4783_v2, %v1113_v57  ;;  %v843_v2 = vadd.f32 %v842_v32, %v4542_v62  ;;  %v2489_v4 = vrot.slane %v2487_v9, 2  ;;  %v2492_v38 = vrot.slane %v2490_v3, 3  ;;  %v4109_v57 = vld [vmem:[%s4302_s13 + $0x80] sm:$0xff] }
 0x16c   : > { %v1664_v32 = vshll.u32 %v4793_v17, 16 }
 0x16d   : > { %v2493_v62 = vor.u32 %v2492_v38, %v2489_v4  ;;  %v938_v38 = vrot.slane %v4398_v15, 1  ;;  %v1873_v15 = vld [vmem:[%s4302_s13 + $0x8] sm:$0xc] }
 0x16e   : > { %v1666_v9 = vrot.slane %v1664_v32, 2 }
 0x16f   : > { %v2502_v59 = vsel %vm2485_vm4, %v2493_v62, %v2501_v22 }
 0x170   : > { %v1046_v37 = vpop.f32.mrf.mxu2  ;;  %v1782_v46 = vpop.f32.mrf.mxu0  ;;  %3928 = vmatmul.msk.bf16.vlgmr.msra.gmra.mxu3 %vm600_vm1, %v2502_v59 }
 0x171   : > { %v1114_v55 = vadd.f32 %v1046_v37, %v843_v2  ;;  %v4875_v33 = vadd.f32 %v1782_v46, %v1478_v31  ;;  %v845_v52 = vpop.f32.mrf.mxu1  ;;  %v4888_v31 = vpop.f32.mrf.mxu3  ;;  %v4895_v37 = vld [vmem:[%s4302_s13 + $0x20] sm:$0xff]  ;;  %v1667_v46 = vor.u32 %v1666_v9, %v1663_v35 }
 0x172   : > { %v846_v8 = vadd.f32 %v845_v52, %v4555_v10  ;;  %v2504_v4 = vshrl.u32 %v4895_v37, 16  ;;  %v2507_v10 = vshll.u32 %v4895_v37, 16  ;;  %v2249_v29 = vrot.slane %v4895_v37, 2 }
 0x173   : > { %3803 = vmatmul.msk.bf16.gmra.mxu0 %vm600_vm1, %v1659_v16  ;;  %v1479_v21 = vadd.f32 %v4790_v49, %v1114_v55  ;;  %v1505_v16 = vunpack.c.l.b16 %v1500_v24 }
 0x174   : > { %3664 = vmatmul.msk.bf16.gmra.mxu1 %vm600_vm1, %v4109_v57  ;;  %v2509_v62 = vrot.slane %v2507_v10, 3  ;;  %v5674_v10 = vunpack.c.l.b16 %v4438_v54 }
 0x175   : > { %3688 = vmatmul.msk.bf16.gmra.mxu2 %vm600_vm1, %v937_v51  ;;  %v2506_v51 = vrot.slane %v2504_v4, 2  ;;  %v4904_v61 = vpack.c.b16 %v1505_v16, %v1505_v16 }
 0x177   : > { %v1673_v9 = vshll.u32 %v4904_v61, 16 }
 0x178   : > { %v1049_v49 = vpop.f32.mrf.mxu2  ;;  %v1784_v60 = vpop.f32.mrf.mxu0 }
 0x179   : > { %v1115_v3 = vadd.f32 %v1049_v49, %v846_v8  ;;  %v4890_v2 = vadd.f32 %v1784_v60, %v1479_v21  ;;  %v847_v23 = vpop.f32.mrf.mxu1  ;;  %v4901_v52 = vpop.f32.mrf.mxu3  ;;  %v2510_v49 = vor.u32 %v2509_v62, %v2506_v51  ;;  %v939_v60 = vsel %vm902_vm2, %v936_v6, %v938_v38  ;;  %v4928_v51 = vld [vmem:[%s4302_s13 + $0x28] sm:$0xff] }
 0x17a   : > { %v848_v55 = vadd.f32 %v847_v23, %v4571_v27 }
 0x17b   : > { %v1480_v17 = vadd.f32 %v4810_v7, %v1115_v3  ;;  %v1668_v7 = vsel %vm1507_vm3, %v1658_v30, %v1667_v46  ;;  %v2511_v35 = vsel %vm2485_vm4, %v2501_v22, %v2510_v49  ;;  %v1670_v30 = vshrl.u32 %v4904_v61, 16 }
 0x17c   : > { %v1878_v3 = vunpack.c.l.b16 %v1873_v15 }
 0x17d   : > { %v1672_v24 = vrot.slane %v1670_v30, 1 }
 0x17e   : > { %v1879_v38 = vpack.c.b16 %v5674_v10, %v1878_v3 }
 0x180   : > { %v1051_v21 = vpop.f32.mrf.mxu2  ;;  %v1787_v57 = vpop.f32.mrf.mxu0  ;;  %3929 = vmatmul.msk.bf16.gmra.mxu3 %vm600_vm1, %v2511_v35 }
 0x181   : > { %v1116_v32 = vadd.f32 %v1051_v21, %v848_v55  ;;  %v4906_v59 = vadd.f32 %v1787_v57, %v1480_v17  ;;  %v850_v8 = vpop.f32.mrf.mxu1  ;;  %v4920_v23 = vpop.f32.mrf.mxu3  ;;  %v1675_v17 = vrot.slane %v1673_v9, 2  ;;  %v1881_v21 = vrot.slane %v1879_v38, 2 }
 0x182   : > { %v851_v6 = vadd.f32 %v850_v8, %v4584_v40  ;;  %v4110_v40 = vld [vmem:[%s4302_s13 + $0x10] sm:$0xff]  ;;  %v2246_v8 = vrot.slane %v4861_v48, 2 }
 0x183   : > { %3804 = vmatmul.msk.bf16.gmra.mxu0 %vm600_vm1, %v1668_v7  ;;  %v1481_v27 = vadd.f32 %v4827_v34, %v1116_v32  ;;  %v1676_v62 = vor.u32 %v1675_v17, %v1672_v24  ;;  %v1882_v57 = vrot.slane %v4110_v40, 2  ;;  %v2513_v7 = vshrl.u32 %v4928_v51, 16  ;;  %v2851_v24 = vld [vmem:[%s4302_s13 + $0x10] sm:$0x8] }
 0x184   : > { %3665 = vmatmul.msk.bf16.gmra.mxu1 %vm600_vm1, %v4866_v28  ;;  %v2516_v32 = vshll.u32 %v4928_v51, 16 }
 0x185   : > { %3689 = vmatmul.msk.bf16.gmra.mxu2 %vm600_vm1, %v939_v60  ;;  %v2247_v60 = vrot.slane %v4857_v45, 2  ;;  %v1677_v9 = vsel %vm1507_vm3, %v1667_v46, %v1676_v62  ;;  %v2856_v46 = vunpack.c.l.b16 %v2851_v24 }
 0x187   : > { %v2248_v17 = vsel %vm1880_vm5, %v2246_v8, %v2247_v60  ;;  %v2857_v62 = vpack.c.b16 %v2191_v26, %v2856_v46  ;;  %v2860_v8 = vrot.slane %v4857_v45, 3 }
 0x188   : > { %v1054_v34 = vpop.f32.mrf.mxu2  ;;  %v1789_v22 = vpop.f32.mrf.mxu0 }
 0x189   : > { %v1117_v28 = vadd.f32 %v1054_v34, %v851_v6  ;;  %v4922_v16 = vadd.f32 %v1789_v22, %v1481_v27  ;;  %v852_v4 = vpop.f32.mrf.mxu1  ;;  %v4936_v15 = vpop.f32.mrf.mxu3  ;;  %v2518_v27 = vrot.slane %v2516_v32, 3  ;;  %v1883_v22 = vsel %vm1880_vm5, %v1881_v21, %v1882_v57 }
 0x18a   : > { %v853_v54 = vadd.f32 %v852_v4, %v4600_v63  ;;  %v2859_v32 = vrot.slane %v2857_v62, 3 }
 0x18b   : > { %v1482_v55 = vadd.f32 %v4846_v14, %v1117_v28  ;;  %v2515_v14 = vrot.slane %v2513_v7, 2  ;;  %v4959_v7 = vld [vmem:[%s4302_s13 + $0x30] sm:$0xff] }
 0x18d   : > { %v2519_v48 = vor.u32 %v2518_v27, %v2515_v14  ;;  %v2522_v14 = vshrl.u32 %v4959_v7, 16  ;;  %v2525_v27 = vshll.u32 %v4959_v7, 16 }
 0x18f   : > { %v2520_v28 = vsel %vm2485_vm4, %v2510_v49, %v2519_v48 }
 0x190   : > { %v1056_v35 = vpop.f32.mrf.mxu2  ;;  %v1792_v30 = vpop.f32.mrf.mxu0  ;;  %3930 = vmatmul.msk.bf16.gmra.mxu3 %vm600_vm1, %v2520_v28  ;;  %v2250_v28 = vsel %vm1880_vm5, %v2247_v60, %v2249_v29 }
 0x191   : > { %v1118_v3 = vadd.f32 %v1056_v35, %v853_v54  ;;  %v4939_v6 = vadd.f32 %v1792_v30, %v1482_v55  ;;  %v855_v34 = vpop.f32.mrf.mxu1  ;;  %v4951_v10 = vpop.f32.mrf.mxu3  ;;  %v2524_v30 = vrot.slane %v2522_v14, 2  ;;  %v2251_v14 = vrot.slane %v4928_v51, 2 }
 0x192   : > { %v856_v4 = vadd.f32 %v855_v34, %v4611_v13  ;;  %v4111_v13 = vld [vmem:[%s4302_s13 + $0x18] sm:$0xff]  ;;  %v2861_v34 = vsel %vm2858_vm6, %v2859_v32, %v2860_v8 }
 0x193   : > { %3805 = vmatmul.msk.bf16.gmra.mxu0 %vm600_vm1, %v1677_v9  ;;  %v1483_v63 = vadd.f32 %v4872_v11, %v1118_v3  ;;  %v1884_v54 = vrot.slane %v4111_v13, 2 }
 0x194   : > { %3812 = vmatmul.msk.bf16.vlgmr.msra.gmra.mxu1 %vm600_vm1, %v1883_v22 }
 0x195   : > { %3904 = vmatmul.msk.bf16.vlgmr.msra.gmra.mxu2 %vm600_vm1, %v2248_v17  ;;  %v1885_v17 = vsel %vm1880_vm5, %v1882_v57, %v1884_v54 }
 0x198   : > { %v1059_v38 = vpop.f32.mrf.mxu2  ;;  %v1794_v55 = vpop.f32.mrf.mxu0 }
 0x199   : > { %v1119_v11 = vadd.f32 %v1059_v38, %v856_v4  ;;  %v4955_v21 = vadd.f32 %v1794_v55, %v1483_v63  ;;  %v857_v49 = vpop.f32.mrf.mxu1  ;;  %v4967_v35 = vpop.f32.mrf.mxu3 }
 0x19a   : > { %v858_v26 = vadd.f32 %v857_v49, %v4627_v58  ;;  %v4987_v49 = vld [vmem:[%s4302_s13 + $0x38] sm:$0xff] }
 0x19b   : > { %v1484_v40 = vadd.f32 %v4888_v31, %v1119_v11  ;;  %v2527_v31 = vrot.slane %v2525_v27, 3  ;;  %v2531_v13 = vshrl.u32 %v4987_v49, 16 }
 0x19d   : > { %v2528_v63 = vor.u32 %v2527_v31, %v2524_v30  ;;  %v2533_v30 = vrot.slane %v2531_v13, 2  ;;  %v2253_v13 = vrot.slane %v4959_v7, 2 }
 0x19f   : > { %v2529_v46 = vsel %vm2485_vm4, %v2519_v48, %v2528_v63  ;;  %v2862_v48 = vrot.slane %v4895_v37, 3 }
 0x1a0   : > { %v1061_v9 = vpop.f32.mrf.mxu2  ;;  %v1797_v3 = vpop.f32.mrf.mxu0  ;;  %3931 = vmatmul.msk.bf16.gmra.mxu3 %vm600_vm1, %v2529_v46 }
 0x1a1   : > { %v1120_v45 = vadd.f32 %v1061_v9, %v858_v26  ;;  %v4970_v22 = vadd.f32 %v1797_v3, %v1484_v40  ;;  %v860_v24 = vpop.f32.mrf.mxu1  ;;  %v4981_v57 = vpop.f32.mrf.mxu3  ;;  %v4112_v40 = vld [vmem:[%s4302_s13 + $0x20] sm:$0xff]  ;;  %v2863_v3 = vsel %vm2858_vm6, %v2860_v8, %v2862_v48 }
 0x1a2   : > { %v861_v4 = vadd.f32 %v860_v24, %v4513_v39  ;;  %v1886_v32 = vrot.slane %v4112_v40, 2  ;;  %v2534_v39 = vshll.u32 %v4987_v49, 16 }
 0x1a3   : > { %3952 = vmatmul.msk.bf16.vlgmr.msra.gmra.mxu0 %vm600_vm1, %v2861_v34  ;;  %v1485_v58 = vadd.f32 %v4901_v52, %v1120_v45 }
 0x1a4   : > { %3813 = vmatmul.msk.bf16.gmra.mxu1 %vm600_vm1, %v1885_v17  ;;  %v2536_v31 = vrot.slane %v2534_v39, 3  ;;  %v1887_v24 = vsel %vm1880_vm5, %v1884_v54, %v1886_v32 }
 0x1a5   : > { %3905 = vmatmul.msk.bf16.gmra.mxu2 %vm600_vm1, %v2250_v28  ;;  %v2252_v28 = vsel %vm1880_vm5, %v2249_v29, %v2251_v14 }
 0x1a6   : > { %v2537_v17 = vor.u32 %v2536_v31, %v2533_v30 }
 0x1a8   : > { %v1064_v38 = vpop.f32.mrf.mxu2  ;;  %v1799_v55 = vpop.f32.mrf.mxu0 }
 0x1a9   : > { %v1121_v60 = vadd.f32 %v1064_v38, %v861_v4  ;;  %v4983_v62 = vadd.f32 %v1799_v55, %v1485_v58  ;;  %v862_v11 = vpop.f32.mrf.mxu1  ;;  %v4995_v26 = vpop.f32.mrf.mxu3  ;;  %v2538_v58 = vsel %vm2485_vm4, %v2528_v63, %v2537_v17  ;;  %v2864_v63 = vrot.slane %v4928_v51, 3 }
 0x1aa   : > { %v863_v27 = vadd.f32 %v862_v11, %v4523_v43  ;;  %v4113_v11 = vld [vmem:[%s4302_s13 + $0x28] sm:$0xff] }
 0x1ab   : > { %v1486_v52 = vadd.f32 %v4920_v23, %v1121_v60  ;;  %v5015_v60 = vld [vmem:[%s4302_s13 + $0x40] sm:$0xff] }
 0x1ac   : > { %v2540_v40 = vshrl.u32 %v5015_v60, 16 }
 0x1ae   : > { %v2542_v30 = vrot.slane %v2540_v40, 2 }
 0x1b0   : > { %v1066_v9 = vpop.f32.mrf.mxu2  ;;  %v1802_v23 = vpop.f32.mrf.mxu0  ;;  %3932 = vmatmul.msk.bf16.gmra.mxu3 %vm600_vm1, %v2538_v58 }
 0x1b1   : > { %v1122_v34 = vadd.f32 %v1066_v9, %v863_v27  ;;  %v4998_v37 = vadd.f32 %v1802_v23, %v1486_v52  ;;  %v865_v45 = vpop.f32.mrf.mxu1  ;;  %v5009_v54 = vpop.f32.mrf.mxu3  ;;  %v1888_v52 = vrot.slane %v4113_v11, 2  ;;  %v2865_v23 = vsel %vm2858_vm6, %v2862_v48, %v2864_v63  ;;  %v5675_v48 = vld [vmem:[#allocation9_spill] sm:$0xff] }
 0x1b2   : > { %v866_v8 = vadd.f32 %v865_v45, %v4540_v53  ;;  %v2543_v53 = vshll.u32 %v5015_v60, 16 }
 0x1b3   : > { %3953 = vmatmul.msk.bf16.gmra.mxu0 %vm600_vm1, %v2863_v3  ;;  %v1487_v43 = vadd.f32 %v4936_v15, %v1122_v34  ;;  %v1889_v45 = vsel %vm1880_vm5, %v1886_v32, %v1888_v52 }
 0x1b4   : > { %3814 = vmatmul.msk.bf16.gmra.mxu1 %vm600_vm1, %v1887_v24  ;;  %v2545_v31 = vrot.slane %v2543_v53, 3 }
 0x1b5   : > { %3906 = vmatmul.msk.bf16.gmra.mxu2 %vm600_vm1, %v2252_v28  ;;  %v2254_v28 = vsel %vm1880_vm5, %v2251_v14, %v2253_v13 }
 0x1b6   : > { %v2546_v24 = vor.u32 %v2545_v31, %v2542_v30  ;;  %v5676_v30 = vld [vmem:[#allocation11_spill] sm:$0xff] }
 0x1b8   : > { %v1069_v46 = vpop.f32.mrf.mxu2  ;;  %v1804_v4 = vpop.f32.mrf.mxu0 }
 0x1b9   : > { %v1123_v29 = vadd.f32 %v1069_v46, %v866_v8  ;;  %v5011_v38 = vadd.f32 %v1804_v4, %v1487_v43  ;;  %v867_v55 = vpop.f32.mrf.mxu1  ;;  %v5023_v27 = vpop.f32.mrf.mxu3  ;;  %v2547_v43 = vsel %vm2485_vm4, %v2537_v17, %v2546_v24  ;;  %v2866_v17 = vrot.slane %v4959_v7, 3 }
 0x1ba   : > { %v868_v39 = vadd.f32 %v867_v55, %v4552_v5  ;;  %v5043_v55 = vld [vmem:[%s4302_s13 + $0x48] sm:$0xff] }
 0x1bb   : > { %v1488_v15 = vadd.f32 %v4951_v10, %v1123_v29  ;;  %v2549_v40 = vshrl.u32 %v5043_v55, 16  ;;  %v2552_v53 = vshll.u32 %v5043_v55, 16 }
 0x1c0   : > { %v1071_v9 = vpop.f32.mrf.mxu2  ;;  %v1807_v10 = vpop.f32.mrf.mxu0  ;;  %3933 = vmatmul.msk.bf16.gmra.mxu3 %vm600_vm1, %v2547_v43 }
 0x1c1   : > { %v1124_v3 = vadd.f32 %v1071_v9, %v868_v39  ;;  %v5026_v51 = vadd.f32 %v1807_v10, %v1488_v15  ;;  %v870_v34 = vpop.f32.mrf.mxu1  ;;  %v5037_v32 = vpop.f32.mrf.mxu3  ;;  %v4114_v15 = vld [vmem:[%s4302_s13 + $0x30] sm:$0xff]  ;;  %v2255_v39 = vrot.slane %v4987_v49, 2  ;;  %v2551_v10 = vrot.slane %v2549_v40, 2 }
 0x1c2   : > { %v871_v58 = vadd.f32 %v870_v34, %v5675_v48  ;;  %v1890_v11 = vrot.slane %v4114_v15, 2  ;;  %v2867_v34 = vsel %vm2858_vm6, %v2864_v63, %v2866_v17  ;;  %v5677_v63 = vld [vmem:[#allocation12_spill] sm:$0xff]  ;;  %v5071_v40 = vld [vmem:[%s4302_s13 + $0x50] sm:$0xff] }
 0x1c3   : > { %3954 = vmatmul.msk.bf16.gmra.mxu0 %vm600_vm1, %v2865_v23  ;;  %v1489_v5 = vadd.f32 %v4967_v35, %v1124_v3  ;;  %v2554_v23 = vrot.slane %v2552_v53, 3  ;;  %v2256_v48 = vsel %vm1880_vm5, %v2253_v13, %v2255_v39  ;;  %v4115_v53 = vld [vmem:[%s4302_s13 + $0x38] sm:$0xff] }
 0x1c4   : > { %3815 = vmatmul.msk.bf16.gmra.mxu1 %vm600_vm1, %v1889_v45 }
 0x1c5   : > { %3907 = vmatmul.msk.bf16.gmra.mxu2 %vm600_vm1, %v2254_v28  ;;  %v2555_v43 = vor.u32 %v2554_v23, %v2551_v10  ;;  %v2561_v10 = vshll.u32 %v5071_v40, 16  ;;  %v2257_v23 = vrot.slane %v5015_v60, 2 }
 0x1c8   : > { %v1074_v8 = vpop.f32.mrf.mxu2  ;;  %v1809_v46 = vpop.f32.mrf.mxu0 }
 0x1c9   : > { %v1125_v14 = vadd.f32 %v1074_v8, %v871_v58  ;;  %v5039_v4 = vadd.f32 %v1809_v46, %v1489_v5  ;;  %v872_v29 = vpop.f32.mrf.mxu1  ;;  %v5051_v9 = vpop.f32.mrf.mxu3  ;;  %v1891_v5 = vsel %vm1880_vm5, %v1888_v52, %v1890_v11  ;;  %v2556_v8 = vsel %vm2485_vm4, %v2546_v24, %v2555_v43 }
 0x1ca   : > { %v873_v31 = vadd.f32 %v872_v29, %v5676_v30  ;;  %v2868_v24 = vrot.slane %v4987_v49, 3  ;;  %v1892_v30 = vrot.slane %v4115_v53, 2 }
 0x1cb   : > { %v1490_v35 = vadd.f32 %v4981_v57, %v1125_v14 }
 0x1d0   : > { %v1076_v3 = vpop.f32.mrf.mxu2  ;;  %v1812_v57 = vpop.f32.mrf.mxu0  ;;  %3934 = vmatmul.msk.bf16.gmra.mxu3 %vm600_vm1, %v2556_v8 }
 0x1d1   : > { %v1126_v45 = vadd.f32 %v1076_v3, %v873_v31  ;;  %v5054_v7 = vadd.f32 %v1812_v57, %v1490_v35  ;;  %v875_v28 = vpop.f32.mrf.mxu1  ;;  %v5065_v52 = vpop.f32.mrf.mxu3  ;;  %v2558_v31 = vshrl.u32 %v5071_v40, 16  ;;  %v5678_v3 = vld [vmem:[#allocation13_spill] sm:$0xff] }
 0x1d2   : > { %v876_v46 = vadd.f32 %v875_v28, %v5677_v63  ;;  %v2563_v28 = vrot.slane %v2561_v10, 3  ;;  %v1893_v63 = vsel %vm1880_vm5, %v1890_v11, %v1892_v30 }
 0x1d3   : > { %3955 = vmatmul.msk.bf16.gmra.mxu0 %vm600_vm1, %v2867_v34  ;;  %v1491_v58 = vadd.f32 %v4995_v26, %v1126_v45  ;;  %v2560_v45 = vrot.slane %v2558_v31, 2 }
 0x1d4   : > { %3816 = vmatmul.msk.bf16.gmra.mxu1 %vm600_vm1, %v1891_v5 }
 0x1d5   : > { %3908 = vmatmul.msk.bf16.gmra.mxu2 %vm600_vm1, %v2256_v48  ;;  %v2869_v48 = vsel %vm2858_vm6, %v2866_v17, %v2868_v24  ;;  %v5679_v17 = vld [vmem:[#allocation14_spill] sm:$0xff] }
 0x1d8   : > { %v1079_v14 = vpop.f32.mrf.mxu2  ;;  %v1814_v29 = vpop.f32.mrf.mxu0 }
 0x1d9   : > { %v1127_v13 = vadd.f32 %v1079_v14, %v876_v46  ;;  %v5067_v35 = vadd.f32 %v1814_v29, %v1491_v58  ;;  %v877_v15 = vpop.f32.mrf.mxu1  ;;  %v5079_v34 = vpop.f32.mrf.mxu3  ;;  %v2564_v46 = vor.u32 %v2563_v28, %v2560_v45  ;;  %v2258_v14 = vsel %vm1880_vm5, %v2255_v39, %v2257_v23 }
 0x1da   : > { %v878_v57 = vadd.f32 %v877_v15, %v5678_v3  ;;  %v5099_v3 = vld [vmem:[%s4302_s13 + $0x58] sm:$0xff] }
 0x1db   : > { %v1492_v26 = vadd.f32 %v5009_v54, %v1127_v13  ;;  %v2565_v13 = vsel %vm2485_vm4, %v2555_v43, %v2564_v46  ;;  %v2870_v43 = vrot.slane %v5015_v60, 3  ;;  %v2567_v28 = vshrl.u32 %v5099_v3, 16 }
 0x1e0   : > { %v1081_v5 = vpop.f32.mrf.mxu2  ;;  %v1817_v54 = vpop.f32.mrf.mxu0  ;;  %3935 = vmatmul.msk.bf16.gmra.mxu3 %vm600_vm1, %v2565_v13  ;;  %v2871_v13 = vsel %vm2858_vm6, %v2868_v24, %v2870_v43  ;;  %v5682_v24 = vld [vmem:[#allocation6_spill] sm:$0xff] }
 0x1e1   : > { %v1128_v58 = vadd.f32 %v1081_v5, %v878_v57  ;;  %v5082_v49 = vadd.f32 %v1817_v54, %v1492_v26  ;;  %v880_v8 = vpop.f32.mrf.mxu1  ;;  %v5093_v11 = vpop.f32.mrf.mxu3  ;;  %v4116_v57 = vld [vmem:[%s4302_s13 + $0x40] sm:$0xff]  ;;  %v2570_v5 = vshll.u32 %v5099_v3, 16  ;;  %v2259_v54 = vrot.slane %v5043_v55, 2 }
 0x1e2   : > { %v881_v15 = vadd.f32 %v880_v8, %v5679_v17  ;;  %v1894_v45 = vrot.slane %v4116_v57, 2 }
 0x1e3   : > { %3956 = vmatmul.msk.bf16.gmra.mxu0 %vm600_vm1, %v2869_v48  ;;  %v1493_v29 = vadd.f32 %v5023_v27, %v1128_v58  ;;  %v5680_v48 = vld [vmem:[#allocation15_spill] sm:$0xff] }
 0x1e4   : > { %3817 = vmatmul.msk.bf16.gmra.mxu1 %vm600_vm1, %v1893_v63  ;;  %v2569_v63 = vrot.slane %v2567_v28, 2 }
 0x1e5   : > { %3909 = vmatmul.msk.bf16.gmra.mxu2 %vm600_vm1, %v2258_v14  ;;  %v2572_v14 = vrot.slane %v2570_v5, 3 }
 0x1e8   : > { %v1084_v26 = vpop.f32.mrf.mxu2  ;;  %v1819_v53 = vpop.f32.mrf.mxu0 }
 0x1e9   : > { %v1129_v39 = vadd.f32 %v1084_v26, %v881_v15  ;;  %v5095_v31 = vadd.f32 %v1819_v53, %v1493_v29  ;;  %v882_v10 = vpop.f32.mrf.mxu1  ;;  %v5107_v8 = vpop.f32.mrf.mxu3  ;;  %v1895_v26 = vsel %vm1880_vm5, %v1892_v30, %v1894_v45  ;;  %v2573_v53 = vor.u32 %v2572_v14, %v2569_v63 }
 0x1ea   : > { %v883_v58 = vadd.f32 %v882_v10, %v5680_v48  ;;  %v2872_v63 = vrot.slane %v5043_v55, 3  ;;  %v4207_v14 = vmov 0.0  }
 0x1eb   : > { %v1494_v27 = vadd.f32 %v5037_v32, %v1129_v39  ;;  %v2260_v39 = vsel %vm1880_vm5, %v2257_v23, %v2259_v54  ;;  %v2574_v57 = vsel %vm2485_vm4, %v2564_v46, %v2573_v53  ;;  %v5127_v46 = vld [vmem:[%s4302_s13 + $0x60] sm:$0xff]  ;;  %274 = vst.msk [vmem:[#allocation2] sm:$0xff] %vm273_vm7, %v4207_v14 }
 0x1ec   : > { %275 = vst.msk [vmem:[#allocation2 + $0x8] sm:$0xff] %vm273_vm7, %v4207_v14 }
 0x1ed   : > { %276 = vst.msk [vmem:[#allocation2 + $0x10] sm:$0xff] %vm273_vm7, %v4207_v14 }
 0x1ee   : > { %277 = vst.msk [vmem:[#allocation2 + $0x18] sm:$0xff] %vm273_vm7, %v4207_v14 }
 0x1ef   : > { %278 = vst.msk [vmem:[#allocation2 + $0x20] sm:$0xff] %vm273_vm7, %v4207_v14 }
 0x1f0   : > { %v1086_v29 = vpop.f32.mrf.mxu2  ;;  %v1822_v32 = vpop.f32.mrf.mxu0  ;;  %3936 = vmatmul.msk.bf16.gmra.mxu3 %vm600_vm1, %v2574_v57  ;;  %279 = vst.msk [vmem:[#allocation2 + $0x28] sm:$0xff] %vm273_vm7, %v4207_v14 }
 0x1f1   : > { %v1130_v17 = vadd.f32 %v1086_v29, %v883_v58  ;;  %v5110_v60 = vadd.f32 %v1822_v32, %v1494_v27  ;;  %v885_v15 = vpop.f32.mrf.mxu1  ;;  %v5133_v29 = vld [vmem:[%s4302_s13 + $0x48] sm:$0xff]  ;;  %280 = vst.msk [vmem:[#allocation2 + $0x30] sm:$0xff] %vm273_vm7, %v4207_v14 }
 0x1f2   : > { %v886_v27 = vadd.f32 %v885_v15, %v5682_v24  ;;  %v5659_v32 = vrot.slane %v5133_v29, 2  ;;  %v5684_v15 = vld [vmem:[#allocation7_spill] sm:$0xff]  ;;  %281 = vst.msk [vmem:[#allocation2 + $0x38] sm:$0xff] %vm273_vm7, %v4207_v14 }
 0x1f3   : > { %5681 = vst [vmem:[#allocation9_spill] sm:$0xff] %v5110_v60  ;;  %3957 = vmatmul.msk.bf16.gmra.mxu0 %vm600_vm1, %v2871_v13  ;;  %v1495_v10 = vadd.f32 %v5051_v9, %v1130_v17  ;;  %v5123_v58 = vpop.f32.mrf.mxu3  ;;  %v2576_v13 = vshrl.u32 %v5127_v46, 16  ;;  %v5658_v17 = vrot.slane %v5071_v40, 2 }
 0x1f4   : > { %3818 = vmatmul.msk.bf16.gmra.mxu1 %vm600_vm1, %v1895_v26  ;;  %282 = vst.msk [vmem:[#allocation2 + $0x40] sm:$0xff] %vm273_vm7, %v4207_v14 }
 0x1f5   : > { %3910 = vmatmul.msk.bf16.gmra.mxu2 %vm600_vm1, %v2260_v39  ;;  %v2578_v39 = vrot.slane %v2576_v13, 2  ;;  %283 = vst.msk [vmem:[#allocation2 + $0x48] sm:$0xff] %vm273_vm7, %v4207_v14 }
 0x1f6   : > { %284 = vst.msk [vmem:[#allocation2 + $0x50] sm:$0xff] %vm273_vm7, %v4207_v14 }
 0x1f7   : > { %285 = vst.msk [vmem:[#allocation2 + $0x58] sm:$0xff] %vm273_vm7, %v4207_v14 }
 0x1f8   : > { %v1089_v30 = vpop.f32.mrf.mxu2  ;;  %v1824_v28 = vpop.f32.mrf.mxu0  ;;  %286 = vst.msk [vmem:[#allocation2 + $0x60] sm:$0xff] %vm273_vm7, %v4207_v14 }
 0x1f9   : > { %v1131_v5 = vadd.f32 %v1089_v30, %v886_v27  ;;  %v5121_v23 = vadd.f32 %v1824_v28, %v1495_v10  ;;  %v887_v48 = vpop.f32.mrf.mxu1  ;;  %v2873_v27 = vsel %vm2858_vm6, %v2870_v43, %v2872_v63  ;;  %v2262_v43 = vsel %vm1880_vm5, %v2259_v54, %v5658_v17  ;;  %287 = vst.msk [vmem:[#allocation2 + $0x68] sm:$0xff] %vm273_vm7, %v4207_v14 }
 0x1fa   : > { %v888_v26 = vadd.f32 %v887_v48, %v5684_v15  ;;  %v1897_v48 = vsel %vm1880_vm5, %v1894_v45, %v5659_v32  ;;  %288 = vst.msk [vmem:[#allocation2 + $0x70] sm:$0xff] %vm273_vm7, %v4207_v14 }
 0x1fb   : > { %5683 = vst [vmem:[#allocation11_spill] sm:$0xff] %v5121_v23  ;;  %v1496_v9 = vadd.f32 %v5065_v52, %v1131_v5  ;;  %v2579_v52 = vshll.u32 %v5127_v46, 16  ;;  %v5156_v15 = vpop.f32.mrf.mxu3 }
 0x1fc   : > { %289 = vst.msk [vmem:[#allocation2 + $0x78] sm:$0xff] %vm273_vm7, %v4207_v14 }
 0x1fd   : > { %v2581_v10 = vrot.slane %v2579_v52, 3  ;;  %290 = vst.msk [vmem:[#allocation2 + $0x80] sm:$0xff] %vm273_vm7, %v4207_v14 }
 0x1fe   : > { %291 = vst.msk [vmem:[#allocation2 + $0x88] sm:$0xff] %vm273_vm7, %v4207_v14 }
 0x1ff   : > { %v2582_v13 = vor.u32 %v2581_v10, %v2578_v39  ;;  %292 = vst.msk [vmem:[#allocation2 + $0x90] sm:$0xff] %vm273_vm7, %v4207_v14 }
 0x200   : > { %v1091_v57 = vpop.f32.mrf.mxu2  ;;  %v1827_v24 = vpop.f32.mrf.mxu0  ;;  %293 = vst.msk [vmem:[#allocation2 + $0x98] sm:$0xff] %vm273_vm7, %v4207_v14 }
 0x201   : > { %v1132_v30 = vadd.f32 %v1091_v57, %v888_v26  ;;  %v5151_v28 = vadd.f32 %v1827_v24, %v1496_v9  ;;  %v890_v5 = vpop.f32.mrf.mxu1  ;;  %v2583_v45 = vsel %vm2485_vm4, %v2573_v53, %v2582_v13  ;;  %294 = vst.msk [vmem:[#allocation2 + $0xa0] sm:$0xff] %vm273_vm7, %v4207_v14 }
 0x202   : > { %3937 = vmatmul.msk.bf16.gmra.mxu3 %vm600_vm1, %v2583_v45  ;;  %v5688_v45 = vld [vmem:[#allocation10_spill] sm:$0xff]  ;;  %295 = vst.msk [vmem:[#allocation2 + $0xa8] sm:$0xff] %vm273_vm7, %v4207_v14 }
 0x203   : > { %5685 = vst [vmem:[#allocation12_spill] sm:$0xff] %v5151_v28  ;;  %3958 = vmatmul.msk.bf16.gmra.mxu0 %vm600_vm1, %v2873_v27  ;;  %v1497_v9 = vadd.f32 %v5079_v34, %v1132_v30  ;;  %v5686_v34 = vld [vmem:[#allocation8_spill] sm:$0xff]  ;;  %v5188_v57 = vpop.f32.mrf.mxu3  ;;  %v5196_v27 = vld [vmem:[%s4302_s13 + $0x68] sm:$0xff]  ;;  %v5660_v30 = vrot.slane %v5071_v40, 3 }
 0x204   : > { %3819 = vmatmul.msk.bf16.gmra.mxu1 %vm600_vm1, %v1897_v48  ;;  %v891_v54 = vadd.f32 %v890_v5, %v5686_v34  ;;  %v5202_v5 = vld [vmem:[%s4302_s13 + $0x50] sm:$0xff]  ;;  %296 = vst.msk [vmem:[#allocation2 + $0xb0] sm:$0xff] %vm273_vm7, %v4207_v14 }
 0x205   : > { %3911 = vmatmul.msk.bf16.gmra.mxu2 %vm600_vm1, %v2262_v43  ;;  %v5661_v48 = vrot.slane %v5202_v5, 2  ;;  %v2585_v43 = vshrl.u32 %v5196_v27, 16  ;;  %v2875_v17 = vsel %vm2858_vm6, %v2872_v63, %v5660_v30  ;;  %v5691_v63 = vrot.slane %v5099_v3, 2  ;;  %297 = vst.msk [vmem:[#allocation2 + $0xb8] sm:$0xff] %vm273_vm7, %v4207_v14 }
 0x206   : > { %v5692_v30 = vrot.slane %v5071_v40, 2  ;;  %298 = vst.msk [vmem:[#allocation2 + $0xc0] sm:$0xff] %vm273_vm7, %v4207_v14  ;;  %v5695_v28 = vrot.slane %v5202_v5, 2  ;;  %v3092_v5 = vld [vmem:[#allocation2 + $0x8] sm:$0xff] }
 0x207   : > { %299 = vst.msk [vmem:[#allocation2 + $0xc8] sm:$0xff] %vm273_vm7, %v4207_v14 }
 0x208   : > { %v1094_v53 = vpop.f32.mrf.mxu2  ;;  %v1829_v52 = vpop.f32.mrf.mxu0  ;;  %300 = vst.msk [vmem:[#allocation2 + $0xd0] sm:$0xff] %vm273_vm7, %v4207_v14 }
 0x209   : > { %v1133_v26 = vadd.f32 %v1094_v53, %v891_v54  ;;  %v5184_v39 = vadd.f32 %v1829_v52, %v1497_v9  ;;  %v892_v10 = vpop.f32.mrf.mxu1  ;;  %v2587_v54 = vrot.slane %v2585_v43, 2  ;;  %v5690_v43 = vrot.slane %v5133_v29, 2  ;;  %301 = vst.msk [vmem:[#allocation2 + $0xd8] sm:$0xff] %vm273_vm7, %v4207_v14 }
 0x20a   : > { %v893_v34 = vadd.f32 %v892_v10, %v5688_v45  ;;  %302 = vst.msk [vmem:[#allocation2 + $0xe0] sm:$0xff] %vm273_vm7, %v4207_v14 }
 0x20b   : > { %5687 = vst [vmem:[#allocation13_spill] sm:$0xff] %v5184_v39  ;;  %v1498_v24 = vadd.f32 %v5093_v11, %v1133_v26  ;;  %v2588_v11 = vshll.u32 %v5196_v27, 16  ;;  %v5231_v45 = vpop.f32.mrf.mxu3 }
 0x20c   : > { %303 = vst.msk [vmem:[#allocation2 + $0xe8] sm:$0xff] %vm273_vm7, %v4207_v14 }
 0x20d   : > { %v2590_v53 = vrot.slane %v2588_v11, 3  ;;  %v1899_v11 = vsel %vm1880_vm5, %v5690_v43, %v5661_v48  ;;  %304 = vst.msk [vmem:[#allocation2 + $0xf0] sm:$0xff] %vm273_vm7, %v4207_v14 }
 0x20e   : > { %305 = vst.msk [vmem:[#allocation2 + $0xf8] sm:$0xff] %vm273_vm7, %v4207_v14 }
 0x20f   : > { %v2591_v55 = vor.u32 %v2590_v53, %v2587_v54  ;;  %306 = vst.msk [vmem:[#allocation2 + $0x100] sm:$0xff] %vm273_vm7, %v4207_v14 }
 0x210   : > { %v1096_v52 = vpop.f32.mrf.mxu2  ;;  %v1832_v26 = vpop.f32.mrf.mxu0  ;;  %307 = vst.msk [vmem:[#allocation2 + $0x108] sm:$0xff] %vm273_vm7, %v4207_v14 }
 0x211   : > { %v1134_v9 = vadd.f32 %v1096_v52, %v893_v34  ;;  %v5222_v32 = vadd.f32 %v1832_v26, %v1498_v24  ;;  %v1987_v10 = vpop.f32.mrf.mxu1  ;;  %v2264_v24 = vsel %vm1880_vm5, %v5692_v30, %v5691_v63  ;;  %v2592_v34 = vsel %vm2485_vm4, %v2582_v13, %v2591_v55  ;;  %v5270_v52 = vld [vmem:[%s4302_s13 + $0x70] sm:$0xff]  ;;  %v4119_v26 = vld [vmem:[%s4302_s13 + $0x58] sm:$0xff]  ;;  %308 = vst.msk [vmem:[#allocation2 + $0x110] sm:$0xff] %vm273_vm7, %v4207_v14 }
 0x212   : > { %3938 = vmatmul.msk.bf16.gmra.mxu3 %vm600_vm1, %v2592_v34  ;;  %v2077_v13 = vadd.f32 %v1987_v10, %v4663_v20  ;;  %v2876_v20 = vrot.slane %v5099_v3, 3  ;;  %v1900_v10 = vrot.slane %v4119_v26, 2  ;;  %v2594_v43 = vshrl.u32 %v5270_v52, 16  ;;  %309 = vst.msk [vmem:[#allocation2 + $0x118] sm:$0xff] %vm273_vm7, %v4207_v14 }
 0x213   : > { %5689 = vst [vmem:[#allocation14_spill] sm:$0xff] %v5222_v32  ;;  %3959 = vmatmul.msk.bf16.gmra.mxu0 %vm600_vm1, %v2875_v17  ;;  %v1499_v29 = vadd.f32 %v5107_v8, %v1134_v9  ;;  %v5263_v54 = vpop.f32.mrf.mxu3  ;;  %v2265_v63 = vrot.slane %v5127_v46, 2  ;;  %v5694_v26 = vrot.slane %v5071_v40, 3 }
 0x214   : > { %3820 = vmatmul.msk.bf16.gmra.mxu1 %vm600_vm1, %v1899_v11  ;;  %v2597_v11 = vshll.u32 %v5270_v52, 16 }
 0x215   : > { %3912 = vmatmul.msk.bf16.gmra.mxu2 %vm600_vm1, %v2264_v24  ;;  %v2877_v48 = vsel %vm2858_vm6, %v5694_v26, %v2876_v20 }
 0x216   : > { %v2599_v34 = vrot.slane %v2597_v11, 3 }
 0x218   : > { %v1834_v8 = vpop.f32.mrf.mxu0  ;;  %v2352_v17 = vpop.f32.mrf.mxu2 }
 0x219   : > { %v5259_v30 = vadd.f32 %v1834_v8, %v1499_v29  ;;  %v1989_v9 = vpop.f32.mrf.mxu1  ;;  %v2442_v53 = vadd.f32 %v2352_v17, %v2077_v13  ;;  %v2596_v29 = vrot.slane %v2594_v43, 2  ;;  %v3091_v13 = vld [vmem:[#allocation2] sm:$0xff]  ;;  %v5696_v43 = vrot.slane %v5099_v3, 2 }
 0x21b   : > { %5693 = vst [vmem:[#allocation15_spill] sm:$0xff] %v5259_v30  ;;  %v2815_v24 = vadd.f32 %v5123_v58, %v2442_v53  ;;  %v2078_v30 = vadd.f32 %v1989_v9, %v4678_v0  ;;  %v1901_v58 = vsel %vm1880_vm5, %v5695_v28, %v1900_v10  ;;  %v5293_v53 = vpop.f32.mrf.mxu3  ;;  %v2600_v14 = vor.u32 %v2599_v34, %v2596_v29  ;;  %v5309_v29 = vld [vmem:[%s4302_s13 + $0x78] sm:$0xff]  ;;  %v4120_v34 = vld [vmem:[%s4302_s13 + $0x60] sm:$0xff] }
 0x21c   : > { %v2266_v11 = vsel %vm1880_vm5, %v5696_v43, %v2265_v63  ;;  %v3093_v43 = vld [vmem:[#allocation2 + $0x10] sm:$0xff] }
 0x21d   : > { %v2601_v0 = vsel %vm2485_vm4, %v2591_v55, %v2600_v14 }
 0x220   : > { %v2354_v8 = vpop.f32.mrf.mxu2  ;;  %v2965_v17 = vpop.f32.mrf.mxu0 }
 0x221   : > { %v3055_v32 = vadd.f32 %v2965_v17, %v2815_v24  ;;  %v1992_v39 = vpop.f32.mrf.mxu1  ;;  %v2443_v23 = vadd.f32 %v2354_v8, %v2078_v30  ;;  %v1902_v8 = vrot.slane %v4120_v34, 2 }
 0x222   : > { %3939 = vmatmul.msk.bf16.gmra.mxu3 %vm600_vm1, %v2601_v0 }
 0x223   : > { %v3127_v60 = vadd.f32 %v3091_v13, %v3055_v32  ;;  %3960 = vmatmul.msk.bf16.gmra.mxu0 %vm600_vm1, %v2877_v48  ;;  %v2816_v40 = vadd.f32 %v5156_v15, %v2443_v23  ;;  %v2079_v32 = vadd.f32 %v1992_v39, %v4688_v50  ;;  %v5306_v9 = vpop.f32.mrf.mxu3  ;;  %v2603_v23 = vshrl.u32 %v5309_v29, 16 }
 0x224   : > { %3821 = vmatmul.msk.bf16.gmra.mxu1 %vm600_vm1, %v1901_v58  ;;  %v2606_v15 = vshll.u32 %v5309_v29, 16  ;;  %v2267_v50 = vrot.slane %v5196_v27, 2 }
 0x225   : > { %3164 = vst.msk [vmem:[#allocation2] sm:$0xff] %vm273_vm7, %v3127_v60  ;;  %3913 = vmatmul.msk.bf16.gmra.mxu2 %vm600_vm1, %v2266_v11  ;;  %v2878_v60 = vrot.slane %v5127_v46, 3  ;;  %v2605_v17 = vrot.slane %v2603_v23, 2 }
 0x226   : > { %v2608_v13 = vrot.slane %v2606_v15, 3 }
 0x227   : > { %v2879_v11 = vsel %vm2858_vm6, %v2876_v20, %v2878_v60 }
 0x228   : > { %v2357_v3 = vpop.f32.mrf.mxu2  ;;  %v2967_v28 = vpop.f32.mrf.mxu0 }
 0x229   : > { %v3056_v48 = vadd.f32 %v2967_v28, %v2816_v40  ;;  %v1994_v30 = vpop.f32.mrf.mxu1  ;;  %v2444_v55 = vadd.f32 %v2357_v3, %v2079_v32  ;;  %v1903_v3 = vsel %vm1880_vm5, %v1900_v10, %v1902_v8  ;;  %v2268_v32 = vsel %vm1880_vm5, %v2265_v63, %v2267_v50  ;;  %v3094_v63 = vld [vmem:[#allocation2 + $0x18] sm:$0xff] }
 0x22a   : > { %v2080_v46 = vadd.f32 %v1994_v30, %v4704_v56 }
 0x22b   : > { %v3128_v24 = vadd.f32 %v3092_v5, %v3056_v48  ;;  %v2817_v39 = vadd.f32 %v5188_v57, %v2444_v55  ;;  %v5321_v28 = vpop.f32.mrf.mxu3  ;;  %v2609_v5 = vor.u32 %v2608_v13, %v2605_v17  ;;  %v2880_v17 = vrot.slane %v5196_v27, 3  ;;  %v4121_v13 = vld [vmem:[%s4302_s13 + $0x68] sm:$0xff] }
 0x22d   : > { %3165 = vst.msk [vmem:[#allocation2 + $0x8] sm:$0xff] %vm273_vm7, %v3128_v24  ;;  %v2610_v55 = vsel %vm2485_vm4, %v2600_v14, %v2609_v5 }
 0x230   : > { %v2359_v26 = vpop.f32.mrf.mxu2  ;;  %v2970_v58 = vpop.f32.mrf.mxu0 }
 0x231   : > { %v3057_v0 = vadd.f32 %v2970_v58, %v2817_v39  ;;  %v1997_v40 = vpop.f32.mrf.mxu1  ;;  %v2445_v48 = vadd.f32 %v2359_v26, %v2080_v46  ;;  %v5335_v39 = vld [vmem:[%s4302_s13 + $0x80] sm:$0xff]  ;;  %v1904_v26 = vrot.slane %v4121_v13, 2 }
 0x232   : > { %3940 = vmatmul.msk.bf16.gmra.mxu3 %vm600_vm1, %v2610_v55  ;;  %v2081_v30 = vadd.f32 %v1997_v40, %v4715_v12  ;;  %v2615_v58 = vshll.u32 %v5335_v39, 16  ;;  %v2269_v12 = vrot.slane %v5270_v52, 2 }
 0x233   : > { %v3129_v57 = vadd.f32 %v3093_v43, %v3057_v0  ;;  %3961 = vmatmul.msk.bf16.gmra.mxu0 %vm600_vm1, %v2879_v11  ;;  %v2818_v56 = vadd.f32 %v5231_v45, %v2445_v48  ;;  %v5332_v23 = vpop.f32.mrf.mxu3  ;;  %v2612_v45 = vshrl.u32 %v5335_v39, 16  ;;  %v1905_v55 = vsel %vm1880_vm5, %v1902_v8, %v1904_v26 }
 0x234   : > { %3822 = vmatmul.msk.bf16.gmra.mxu1 %vm600_vm1, %v1903_v3  ;;  %v2617_v46 = vrot.slane %v2615_v58, 3  ;;  %v3095_v3 = vld [vmem:[#allocation2 + $0x20] sm:$0xff]  ;;  %v2882_v58 = vrot.slane %v5270_v52, 3 }
 0x235   : > { %3166 = vst.msk [vmem:[#allocation2 + $0x10] sm:$0xff] %vm273_vm7, %v3129_v57  ;;  %3914 = vmatmul.msk.bf16.gmra.mxu2 %vm600_vm1, %v2268_v32  ;;  %v2614_v11 = vrot.slane %v2612_v45, 2  ;;  %v2881_v32 = vsel %vm2858_vm6, %v2878_v60, %v2880_v17  ;;  %v5361_v45 = vld [vmem:[%s4302_s13 + $0x88] sm:$0xff] }
 0x238   : > { %v2362_v20 = vpop.f32.mrf.mxu2  ;;  %v2972_v10 = vpop.f32.mrf.mxu0 }
 0x239   : > { %v3058_v24 = vadd.f32 %v2972_v10, %v2818_v56  ;;  %v1999_v34 = vpop.f32.mrf.mxu1  ;;  %v2446_v14 = vadd.f32 %v2362_v20, %v2081_v30  ;;  %v2618_v20 = vor.u32 %v2617_v46, %v2614_v11  ;;  %v2270_v10 = vsel %vm1880_vm5, %v2267_v50, %v2269_v12  ;;  %v3096_v50 = vld [vmem:[#allocation2 + $0x28] sm:$0xff] }
 0x23a   : > { %v2082_v27 = vadd.f32 %v1999_v34, %v4731_v25  ;;  %v2624_v46 = vshll.u32 %v5361_v45, 16 }
 0x23b   : > { %v3130_v15 = vadd.f32 %v3094_v63, %v3058_v24  ;;  %v2819_v43 = vadd.f32 %v5263_v54, %v2446_v14  ;;  %v5347_v56 = vpop.f32.mrf.mxu3  ;;  %v2619_v30 = vsel %vm2485_vm4, %v2609_v5, %v2618_v20 }
 0x23d   : > { %3167 = vst.msk [vmem:[#allocation2 + $0x18] sm:$0xff] %vm273_vm7, %v3130_v15 }
 0x240   : > { %v2364_v0 = vpop.f32.mrf.mxu2  ;;  %v2975_v40 = vpop.f32.mrf.mxu0 }
 0x241   : > { %v3059_v48 = vadd.f32 %v2975_v40, %v2819_v43  ;;  %v2002_v57 = vpop.f32.mrf.mxu1  ;;  %v2447_v63 = vadd.f32 %v2364_v0, %v2082_v27  ;;  %v4122_v43 = vld [vmem:[%s4302_s13 + $0x70] sm:$0xff] }
 0x242   : > { %3941 = vmatmul.msk.bf16.gmra.mxu3 %vm600_vm1, %v2619_v30  ;;  %v2083_v24 = vadd.f32 %v2002_v57, %v4742_v18  ;;  %v1906_v11 = vrot.slane %v4122_v43, 2  ;;  %v2271_v18 = vrot.slane %v5309_v29, 2  ;;  %v2883_v57 = vsel %vm2858_vm6, %v2880_v17, %v2882_v58 }
 0x243   : > { %v3131_v54 = vadd.f32 %v3095_v3, %v3059_v48  ;;  %3962 = vmatmul.msk.bf16.gmra.mxu0 %vm600_vm1, %v2881_v32  ;;  %v2820_v25 = vadd.f32 %v5293_v53, %v2447_v63  ;;  %v5358_v15 = vpop.f32.mrf.mxu3  ;;  %v2621_v53 = vshrl.u32 %v5361_v45, 16  ;;  %v2626_v3 = vrot.slane %v2624_v46, 3  ;;  %v3097_v48 = vld [vmem:[#allocation2 + $0x30] sm:$0xff] }
 0x244   : > { %3823 = vmatmul.msk.bf16.gmra.mxu1 %vm600_vm1, %v1905_v55  ;;  %v1907_v63 = vsel %vm1880_vm5, %v1904_v26, %v1906_v11  ;;  %v2884_v43 = vrot.slane %v5309_v29, 3 }
 0x245   : > { %3168 = vst.msk [vmem:[#allocation2 + $0x20] sm:$0xff] %vm273_vm7, %v3131_v54  ;;  %3915 = vmatmul.msk.bf16.gmra.mxu2 %vm600_vm1, %v2270_v10  ;;  %v2623_v40 = vrot.slane %v2621_v53, 2  ;;  %v4123_v53 = vld [vmem:[%s4302_s13 + $0x78] sm:$0xff] }
 0x246   : > { %v1908_v46 = vrot.slane %v4123_v53, 2  ;;  %v2275_v53 = vrot.slane %v5361_v45, 2 }
 0x247   : > { %v2627_v30 = vor.u32 %v2626_v3, %v2623_v40 }
 0x248   : > { %v2367_v60 = vpop.f32.mrf.mxu2  ;;  %v2977_v8 = vpop.f32.mrf.mxu0 }
 0x249   : > { %v3060_v34 = vadd.f32 %v2977_v8, %v2820_v25  ;;  %v2004_v14 = vpop.f32.mrf.mxu1  ;;  %v2448_v5 = vadd.f32 %v2367_v60, %v2083_v24  ;;  %v2272_v25 = vsel %vm1880_vm5, %v2269_v12, %v2271_v18  ;;  %v2628_v8 = vsel %vm2485_vm4, %v2618_v20, %v2627_v30  ;;  %v3098_v12 = vld [vmem:[#allocation2 + $0x38] sm:$0xff] }
 0x24a   : > { %v2084_v52 = vadd.f32 %v2004_v14, %v4758_v36 }
 0x24b   : > { %v3132_v13 = vadd.f32 %v3096_v50, %v3060_v34  ;;  %v2821_v0 = vadd.f32 %v5306_v9, %v2448_v5  ;;  %v5373_v54 = vpop.f32.mrf.mxu3 }
 0x24d   : > { %3169 = vst.msk [vmem:[#allocation2 + $0x28] sm:$0xff] %vm273_vm7, %v3132_v13  ;;  %v5387_v13 = vld [vmem:[%s4302_s13 + $0x90] sm:$0xff] }
 0x250   : > { %v2369_v32 = vpop.f32.mrf.mxu2  ;;  %v2980_v27 = vpop.f32.mrf.mxu0 }
 0x251   : > { %v3061_v55 = vadd.f32 %v2980_v27, %v2821_v0  ;;  %v2007_v10 = vpop.f32.mrf.mxu1  ;;  %v2449_v60 = vadd.f32 %v2369_v32, %v2084_v52  ;;  %v2633_v0 = vshll.u32 %v5387_v13, 16  ;;  %v2885_v52 = vsel %vm2858_vm6, %v2882_v58, %v2884_v43 }
 0x252   : > { %3942 = vmatmul.msk.bf16.gmra.mxu3 %vm600_vm1, %v2628_v8  ;;  %v2085_v50 = vadd.f32 %v2007_v10, %v4769_v19  ;;  %v2273_v19 = vrot.slane %v5335_v39, 2 }
 0x253   : > { %v3133_v9 = vadd.f32 %v3097_v48, %v3061_v55  ;;  %3963 = vmatmul.msk.bf16.gmra.mxu0 %vm600_vm1, %v2883_v57  ;;  %v2822_v36 = vadd.f32 %v5321_v28, %v2449_v60  ;;  %v5384_v14 = vpop.f32.mrf.mxu3  ;;  %v2630_v28 = vshrl.u32 %v5387_v13, 16  ;;  %v2635_v32 = vrot.slane %v2633_v0, 3  ;;  %v3099_v57 = vld [vmem:[#allocation2 + $0x40] sm:$0xff] }
 0x254   : > { %3824 = vmatmul.msk.bf16.gmra.mxu1 %vm600_vm1, %v1907_v63  ;;  %v1909_v63 = vsel %vm1880_vm5, %v1906_v11, %v1908_v46 }
 0x255   : > { %3170 = vst.msk [vmem:[#allocation2 + $0x30] sm:$0xff] %vm273_vm7, %v3133_v9  ;;  %3916 = vmatmul.msk.bf16.gmra.mxu2 %vm600_vm1, %v2272_v25  ;;  %v2632_v3 = vrot.slane %v2630_v28, 2  ;;  %v2274_v9 = vsel %vm1880_vm5, %v2271_v18, %v2273_v19  ;;  %v3100_v18 = vld [vmem:[#allocation2 + $0x48] sm:$0xff] }
 0x257   : > { %v2636_v60 = vor.u32 %v2635_v32, %v2632_v3 }
 0x258   : > { %v2372_v17 = vpop.f32.mrf.mxu2  ;;  %v2982_v26 = vpop.f32.mrf.mxu0 }
 0x259   : > { %v3062_v24 = vadd.f32 %v2982_v26, %v2822_v36  ;;  %v2009_v34 = vpop.f32.mrf.mxu1  ;;  %v2450_v20 = vadd.f32 %v2372_v17, %v2085_v50  ;;  %v2637_v36 = vsel %vm2485_vm4, %v2627_v30, %v2636_v60 }
 0x25a   : > { %v2086_v29 = vadd.f32 %v2009_v34, %v4785_v41  ;;  %v2886_v34 = vrot.slane %v5335_v39, 3 }
 0x25b   : > { %v3134_v5 = vadd.f32 %v3098_v12, %v3062_v24  ;;  %v2823_v40 = vadd.f32 %v5332_v23, %v2450_v20  ;;  %v5399_v25 = vpop.f32.mrf.mxu3  ;;  %v4124_v20 = vld [vmem:[%s4302_s13 + $0x80] sm:$0xff] }
 0x25c   : > { %v2887_v3 = vsel %vm2858_vm6, %v2884_v43, %v2886_v34 }
 0x25d   : > { %3171 = vst.msk [vmem:[#allocation2 + $0x38] sm:$0xff] %vm273_vm7, %v3134_v5  ;;  %v1910_v5 = vrot.slane %v4124_v20, 2 }
 0x260   : > { %v2374_v27 = vpop.f32.mrf.mxu2  ;;  %v2985_v48 = vpop.f32.mrf.mxu0 }
 0x261   : > { %v3063_v55 = vadd.f32 %v2985_v48, %v2823_v40  ;;  %v2012_v10 = vpop.f32.mrf.mxu1  ;;  %v2451_v8 = vadd.f32 %v2374_v27, %v2086_v29  ;;  %v3101_v40 = vld [vmem:[#allocation2 + $0x50] sm:$0xff] }
 0x262   : > { %3943 = vmatmul.msk.bf16.gmra.mxu3 %vm600_vm1, %v2637_v36  ;;  %v2087_v17 = vadd.f32 %v2012_v10, %v4796_v1 }
 0x263   : > { %v3135_v23 = vadd.f32 %v3099_v57, %v3063_v55  ;;  %3964 = vmatmul.msk.bf16.gmra.mxu0 %vm600_vm1, %v2885_v52  ;;  %v2824_v41 = vadd.f32 %v5347_v56, %v2451_v8  ;;  %v5410_v30 = vpop.f32.mrf.mxu3  ;;  %v5417_v56 = vld [vmem:[%s4302_s13 + $0x98] sm:$0xff]  ;;  %v1911_v52 = vsel %vm1880_vm5, %v1908_v46, %v1910_v5  ;;  %v2276_v55 = vsel %vm1880_vm5, %v2273_v19, %v2275_v53 }
 0x264   : > { %3825 = vmatmul.msk.bf16.gmra.mxu1 %vm600_vm1, %v1909_v63  ;;  %v2639_v32 = vshrl.u32 %v5417_v56, 16  ;;  %v2642_v27 = vshll.u32 %v5417_v56, 16 }
 0x265   : > { %3172 = vst.msk [vmem:[#allocation2 + $0x40] sm:$0xff] %vm273_vm7, %v3135_v23  ;;  %3917 = vmatmul.msk.bf16.gmra.mxu2 %vm600_vm1, %v2274_v9  ;;  %v3102_v23 = vld [vmem:[#allocation2 + $0x58] sm:$0xff] }
 0x266   : > { %v2644_v10 = vrot.slane %v2642_v27, 3 }
 0x268   : > { %v2377_v58 = vpop.f32.mrf.mxu2  ;;  %v2987_v11 = vpop.f32.mrf.mxu0 }
 0x269   : > { %v3064_v26 = vadd.f32 %v2987_v11, %v2824_v41  ;;  %v2014_v12 = vpop.f32.mrf.mxu1  ;;  %v2452_v50 = vadd.f32 %v2377_v58, %v2087_v17 }
 0x26a   : > { %v2088_v39 = vadd.f32 %v2014_v12, %v4812_v47  ;;  %v2888_v12 = vrot.slane %v5361_v45, 3 }
 0x26b   : > { %v3136_v24 = vadd.f32 %v3100_v18, %v3064_v26  ;;  %v2825_v28 = vadd.f32 %v5358_v15, %v2452_v50  ;;  %v5425_v29 = vpop.f32.mrf.mxu3  ;;  %v2641_v15 = vrot.slane %v2639_v32, 2  ;;  %v2478_v26 = vld [vmem:[%s4302_s13 + $0xa0] sm:$0x7] }
 0x26d   : > { %3173 = vst.msk [vmem:[#allocation2 + $0x48] sm:$0xff] %vm273_vm7, %v3136_v24  ;;  %v2645_v43 = vor.u32 %v2644_v10, %v2641_v15  ;;  %v2277_v24 = vrot.slane %v5387_v13, 2 }
 0x26f   : > { %v2646_v47 = vsel %vm2485_vm4, %v2636_v60, %v2645_v43  ;;  %v2483_v60 = vunpack.c.l.b16 %v2478_v26 }
 0x270   : > { %v2379_v0 = vpop.f32.mrf.mxu2  ;;  %v2990_v1 = vpop.f32.mrf.mxu0 }
 0x271   : > { %v3065_v48 = vadd.f32 %v2990_v1, %v2825_v28  ;;  %v2017_v57 = vpop.f32.mrf.mxu1  ;;  %v2453_v63 = vadd.f32 %v2379_v0, %v2088_v39  ;;  %v5443_v20 = vpack.c.b16 %v2483_v60, %v2483_v60  ;;  %v3103_v1 = vld [vmem:[#allocation2 + $0x60] sm:$0xff] }
 0x272   : > { %3944 = vmatmul.msk.bf16.gmra.mxu3 %vm600_vm1, %v2646_v47  ;;  %v2089_v36 = vadd.f32 %v2017_v57, %v4830_v44 }
 0x273   : > { %v3137_v9 = vadd.f32 %v3101_v40, %v3065_v48  ;;  %3965 = vmatmul.msk.bf16.gmra.mxu0 %vm600_vm1, %v2887_v3  ;;  %v2826_v46 = vadd.f32 %v5373_v54, %v2453_v63  ;;  %v5436_v11 = vpop.f32.mrf.mxu3  ;;  %v4125_v54 = vld [vmem:[%s4302_s13 + $0x88] sm:$0xff]  ;;  %v2889_v40 = vsel %vm2858_vm6, %v2886_v34, %v2888_v12  ;;  %v2648_v3 = vshrl.u32 %v5443_v20, 16 }
 0x274   : > { %3826 = vmatmul.msk.bf16.gmra.mxu1 %vm600_vm1, %v1911_v52  ;;  %v1912_v50 = vrot.slane %v4125_v54, 2  ;;  %v2651_v45 = vshll.u32 %v5443_v20, 16  ;;  %v2278_v52 = vsel %vm1880_vm5, %v2275_v53, %v2277_v24 }
 0x275   : > { %3174 = vst.msk [vmem:[#allocation2 + $0x50] sm:$0xff] %vm273_vm7, %v3137_v9  ;;  %3918 = vmatmul.msk.bf16.gmra.mxu2 %vm600_vm1, %v2276_v55  ;;  %v3104_v9 = vld [vmem:[#allocation2 + $0x68] sm:$0xff] }
 0x276   : > { %v1913_v48 = vsel %vm1880_vm5, %v1910_v5, %v1912_v50  ;;  %v2653_v55 = vrot.slane %v2651_v45, 3 }
 0x278   : > { %v2382_v19 = vpop.f32.mrf.mxu2  ;;  %v2992_v8 = vpop.f32.mrf.mxu0 }
 0x279   : > { %v3066_v41 = vadd.f32 %v2992_v8, %v2826_v46  ;;  %v2019_v58 = vpop.f32.mrf.mxu1  ;;  %v2454_v18 = vadd.f32 %v2382_v19, %v2089_v36 }
 0x27a   : > { %v2090_v32 = vadd.f32 %v2019_v58, %v4852_v42  ;;  %v2279_v58 = vrot.slane %v5417_v56, 2 }
 0x27b   : > { %v3138_v17 = vadd.f32 %v3102_v23, %v3066_v41  ;;  %v2827_v44 = vadd.f32 %v5384_v14, %v2454_v18  ;;  %v5451_v57 = vpop.f32.mrf.mxu3  ;;  %v2650_v14 = vrot.slane %v2648_v3, 2  ;;  %v2890_v41 = vrot.slane %v5387_v13, 3  ;;  %v2149_v3 = vld [vmem:[%s4302_s13 + $0xa0] sm:$0x3] }
 0x27d   : > { %3175 = vst.msk [vmem:[#allocation2 + $0x58] sm:$0xff] %vm273_vm7, %v3138_v17  ;;  %v2654_v34 = vor.u32 %v2653_v55, %v2650_v14  ;;  %v2891_v60 = vsel %vm2858_vm6, %v2888_v12, %v2890_v41  ;;  %v2892_v55 = vrot.slane %v5417_v56, 3 }
 0x27f   : > { %v2655_v42 = vsel %vm2485_vm4, %v2645_v43, %v2654_v34  ;;  %v4126_v43 = vld [vmem:[%s4302_s13 + $0x90] sm:$0xff]  ;;  %s3441_s13 = scalar_lea.sflag [#allocation4], %s251_s29 }
 0x280   : > { %v2384_v28 = vpop.f32.mrf.mxu2  ;;  %v2995_v0 = vpop.f32.mrf.mxu0 }
 0x281   : > { %v3067_v27 = vadd.f32 %v2995_v0, %v2827_v44  ;;  %v2022_v39 = vpop.f32.mrf.mxu1  ;;  %v2455_v15 = vadd.f32 %v2384_v28, %v2090_v32  ;;  %v2280_v0 = vsel %vm1880_vm5, %v2277_v24, %v2279_v58  ;;  %v3106_v32 = vld [vmem:[#allocation2 + $0x78] sm:$0xff] }
 0x282   : > { %3945 = vmatmul.msk.bf16.gmra.mxu3 %vm600_vm1, %v2655_v42  ;;  %v2091_v47 = vadd.f32 %v2022_v39, %v4875_v33  ;;  %v3105_v33 = vld [vmem:[#allocation2 + $0x70] sm:$0xff] }
 0x283   : > { %v3139_v10 = vadd.f32 %v3103_v1, %v3067_v27  ;;  %3966 = vmatmul.msk.bf16.gmra.mxu0 %vm600_vm1, %v2889_v40  ;;  %v2828_v5 = vadd.f32 %v5399_v25, %v2455_v15  ;;  %v1914_v25 = vrot.slane %v4126_v43, 2  ;;  %v1916_v15 = vrot.slane %v4904_v61, 2  ;;  %v5494_v61 = vld [vmem:[%s5653_s2] ss:$0 sm:$0xff] }
 0x284   : > { %3827 = vmatmul.msk.bf16.gmra.mxu1 %vm600_vm1, %v1913_v48 }
 0x285   : > { %3176 = vst.msk [vmem:[#allocation2 + $0x60] sm:$0xff] %vm273_vm7, %v3139_v10  ;;  %3919 = vmatmul.msk.bf16.gmra.mxu2 %vm600_vm1, %v2278_v52  ;;  %v5462_v36 = vpop.f32.mrf.mxu3  ;;  %v1915_v13 = vsel %vm1880_vm5, %v1912_v50, %v1914_v25  ;;  %v1917_v56 = vsel %vm1880_vm5, %v1914_v25, %v1916_v15 }
 0x288   : > { %v2387_v53 = vpop.f32.mrf.mxu2  ;;  %v2997_v63 = vpop.f32.mrf.mxu0 }
 0x289   : > { %v3068_v46 = vadd.f32 %v2997_v63, %v2828_v5  ;;  %v2024_v19 = vpop.f32.mrf.mxu1  ;;  %v2456_v8 = vadd.f32 %v2387_v53, %v2091_v47  ;;  %v3107_v53 = vld [vmem:[#allocation2 + $0x80] sm:$0xff] }
 0x28a   : > { %v2092_v54 = vadd.f32 %v2024_v19, %v4890_v2  ;;  %v2226_v2 = vunpack.c.l.b16 %v2149_v3 }
 0x28b   : > { %v3140_v23 = vadd.f32 %v3104_v9, %v3068_v46  ;;  %v2829_v18 = vadd.f32 %v5410_v30, %v2456_v8 }
 0x28c   : > { %v2245_v48 = vpack.c.b16 %v2226_v2, %v2226_v2  ;;  %v3215_v25 = vld [vmem:[#allocation2 + $0x60] sm:$0xff] }
 0x28d   : > { %3177 = vst.msk [vmem:[#allocation2 + $0x68] sm:$0xff] %vm273_vm7, %v3140_v23  ;;  %v5478_v30 = vpop.f32.mrf.mxu3 }
 0x28e   : > { %v2281_v10 = vrot.slane %v2245_v48, 2 }
 0x290   : > { %v2389_v17 = vpop.f32.mrf.mxu2  ;;  %v3000_v26 = vpop.f32.mrf.mxu0 }
 0x291   : > { %v3069_v44 = vadd.f32 %v3000_v26, %v2829_v18  ;;  %v2027_v28 = vpop.f32.mrf.mxu1  ;;  %v2457_v1 = vadd.f32 %v2389_v17, %v2092_v54  ;;  %v3108_v54 = vld [vmem:[#allocation2 + $0x88] sm:$0xff] }
 0x292   : > { %v2093_v24 = vadd.f32 %v2027_v28, %v4906_v59  ;;  %v2893_v59 = vsel %vm2858_vm6, %v2890_v41, %v2892_v55 }
 0x293   : > { %v3141_v40 = vadd.f32 %v3105_v33, %v3069_v44  ;;  %3967 = vmatmul.msk.bf16.gmra.mxu0 %vm600_vm1, %v2891_v60  ;;  %v2830_v12 = vadd.f32 %v5425_v29, %v2457_v1  ;;  %v3255_v1 = vadd.f32 %v5494_v61, %v3215_v25 }
 0x294   : > { %3828 = vmatmul.msk.bf16.gmra.mxu1 %vm600_vm1, %v1915_v13  ;;  %v3216_v41 = vld [vmem:[#allocation2 + $0x68] sm:$0xff] }
 0x295   : > { %3178 = vst.msk [vmem:[#allocation2 + $0x70] sm:$0xff] %vm273_vm7, %v3141_v40  ;;  %3920 = vmatmul.msk.bf16.gmra.mxu2 %vm600_vm1, %v2280_v0  ;;  %v5486_v29 = vpop.f32.mrf.mxu3  ;;  %v3256_v26 = vadd.f32 %v5494_v61, %v3216_v41 }
 0x298   : > { %v2392_v45 = vpop.f32.mrf.mxu2  ;;  %v3002_v50 = vpop.f32.mrf.mxu0 }
 0x299   : > { %v3070_v27 = vadd.f32 %v3002_v50, %v2830_v12  ;;  %v2029_v39 = vpop.f32.mrf.mxu1  ;;  %v2458_v52 = vadd.f32 %v2392_v45, %v2093_v24  ;;  %v3292_v12 = vmax.f32 %v3256_v26, 0.0  ;;  %v2894_v45 = vrot.slane %v5443_v20, 3  ;;  %v3214_v50 = vld [vmem:[#allocation2 + $0x58] sm:$0xff] }
 0x29a   : > { %v2094_v9 = vadd.f32 %v2029_v39, %v4922_v16  ;;  %v3254_v39 = vadd.f32 %v5494_v61, %v3214_v50  ;;  %v3210_v26 = vld [vmem:[#allocation2 + $0x38] sm:$0xff] }
 0x29b   : > { %v3142_v14 = vadd.f32 %v3106_v32, %v3070_v27  ;;  %v2831_v34 = vadd.f32 %v5436_v11, %v2458_v52  ;;  %v2282_v11 = vsel %vm1880_vm5, %v2279_v58, %v2281_v10  ;;  %v3291_v32 = vmax.f32 %v3255_v1, 0.0 }
 0x29c   : > { %v3217_v63 = vld [vmem:[#allocation2 + $0x70] sm:$0xff]  ;;  %v2895_v15 = vsel %vm2858_vm6, %v2892_v55, %v2894_v45 }
 0x29d   : > { %3179 = vst.msk [vmem:[#allocation2 + $0x78] sm:$0xff] %vm273_vm7, %v3142_v14  ;;  %v3257_v23 = vadd.f32 %v5494_v61, %v3217_v63  ;;  %v5507_v40 = vpop.f32.mrf.mxu3  ;;  %v3322_v27 = vpack.c.bf16 %v3292_v12, %v3291_v32  ;;  %v3109_v14 = vld [vmem:[#allocation2 + $0x90] sm:$0xff] }
 0x29f   : > { %v3293_v58 = vmax.f32 %v3257_v23, 0.0 }
 0x2a0   : > { %v2394_v42 = vpop.f32.mrf.mxu2  ;;  %v3005_v5 = vpop.f32.mrf.mxu0 }
 0x2a1   : > { %v3071_v47 = vadd.f32 %v3005_v5, %v2831_v34  ;;  %v2032_v46 = vpop.f32.mrf.mxu1  ;;  %v2459_v19 = vadd.f32 %v2394_v42, %v2094_v9  ;;  %v3212_v9 = vld [vmem:[#allocation2 + $0x48] sm:$0xff] }
 0x2a2   : > { %v2095_v44 = vadd.f32 %v2032_v46, %v4939_v6  ;;  %v3213_v6 = vld [vmem:[#allocation2 + $0x50] sm:$0xff] }
 0x2a3   : > { %v3143_v8 = vadd.f32 %v3107_v53, %v3071_v47  ;;  %3968 = vmatmul.msk.bf16.gmra.mxu0 %vm600_vm1, %v2893_v59  ;;  %v2832_v18 = vadd.f32 %v5451_v57, %v2459_v19  ;;  %v3253_v20 = vadd.f32 %v5494_v61, %v3213_v6  ;;  %v3290_v59 = vmax.f32 %v3254_v39, 0.0  ;;  %v3211_v47 = vld [vmem:[#allocation2 + $0x40] sm:$0xff]  ;;  %v3208_v6 = vld [vmem:[#allocation2 + $0x28] sm:$0xff] }
 0x2a4   : > { %3829 = vmatmul.msk.bf16.gmra.mxu1 %vm600_vm1, %v1917_v56  ;;  %v3218_v16 = vld [vmem:[#allocation2 + $0x78] sm:$0xff]  ;;  %v3252_v56 = vadd.f32 %v5494_v61, %v3212_v9 }
 0x2a5   : > { %3180 = vst.msk [vmem:[#allocation2 + $0x80] sm:$0xff] %vm273_vm7, %v3143_v8  ;;  %3921 = vmatmul.msk.bf16.gmra.mxu2 %vm600_vm1, %v2282_v11  ;;  %v3258_v43 = vadd.f32 %v5494_v61, %v3218_v16  ;;  %v5519_v63 = vpop.f32.mrf.mxu3  ;;  %v3289_v55 = vmax.f32 %v3253_v20, 0.0  ;;  %v3110_v8 = vld [vmem:[#allocation2 + $0x98] sm:$0xff] }
 0x2a7   : > { %v3294_v17 = vmax.f32 %v3258_v43, 0.0  ;;  %v3321_v46 = vpack.c.bf16 %v3290_v59, %v3289_v55  ;;  %v3251_v43 = vadd.f32 %v5494_v61, %v3211_v47  ;;  %v3205_v55 = vld [vmem:[#allocation2 + $0x10] sm:$0xff] }
 0x2a8   : > { %v2397_v33 = vpop.f32.mrf.mxu2  ;;  %v3007_v60 = vpop.f32.mrf.mxu0 }
 0x2a9   : > { %v3072_v28 = vadd.f32 %v3007_v60, %v2832_v18  ;;  %v2034_v13 = vpop.f32.mrf.mxu1  ;;  %v3323_v0 = vpack.c.bf16 %v3294_v17, %v3293_v58  ;;  %v2460_v3 = vadd.f32 %v2397_v33, %v2095_v44  ;;  %v3359_v58 = vsel %vm273_vm7, %v3321_v46, 0  ;;  %v3209_v60 = vld [vmem:[#allocation2 + $0x30] sm:$0xff] }
 0x2aa   : > { %v2096_v10 = vadd.f32 %v2034_v13, %v4955_v21  ;;  %v3288_v17 = vmax.f32 %v3252_v56, 0.0 }
 0x2ab   : > { %v3144_v2 = vadd.f32 %v3108_v54, %v3072_v28  ;;  %v3365_v57 = vsel %vm273_vm7, %v3323_v0, 0  ;;  %v2833_v24 = vadd.f32 %v5462_v36, %v2460_v3  ;;  %v3362_v36 = vsel %vm273_vm7, %v3322_v27, 0  ;;  %v3111_v0 = vld [vmem:[#allocation2 + $0xa0] sm:$0xff] }
 0x2ac   : > { %3397 = vmatpush.bf16.xpose.msrb.mxu1 %v3365_v57  ;;  %v3249_v57 = vadd.f32 %v5494_v61, %v3209_v60 }
 0x2ad   : > { %3181 = vst.msk [vmem:[#allocation2 + $0x88] sm:$0xff] %vm273_vm7, %v3144_v2  ;;  %v2782_v33 = vpop.f32.mrf.mxu3 }
 0x2b0   : > { %v2399_v48 = vpop.f32.mrf.mxu2  ;;  %v3010_v52 = vpop.f32.mrf.mxu0 }
 0x2b1   : > { %v3073_v34 = vadd.f32 %v3010_v52, %v2833_v24  ;;  %v2037_v42 = vpop.f32.mrf.mxu1  ;;  %v2461_v5 = vadd.f32 %v2399_v48, %v2096_v10  ;;  %v3207_v24 = vld [vmem:[#allocation2 + $0x20] sm:$0xff] }
 0x2b2   : > { %v2097_v23 = vadd.f32 %v2037_v42, %v4970_v22  ;;  %v3250_v22 = vadd.f32 %v5494_v61, %v3210_v26  ;;  %v3247_v20 = vadd.f32 %v5494_v61, %v3207_v24  ;;  %v3203_v26 = vld [vmem:[#allocation2] sm:$0xff] }
 0x2b3   : > { %v3145_v53 = vadd.f32 %v3109_v14, %v3073_v34  ;;  %3969 = vmatmul.msk.bf16.gmra.mxu0 %vm600_vm1, %v2895_v15  ;;  %v2834_v21 = vadd.f32 %v5478_v30, %v2461_v5  ;;  %v3287_v30 = vmax.f32 %v3251_v43, 0.0  ;;  %v3112_v15 = vld [vmem:[#allocation2 + $0xa8] sm:$0xff]  ;;  %v3115_v24 = vld [vmem:[#allocation2 + $0xc0] sm:$0xff] }
 0x2b4   : > { %3398 = vmatpush.bf16.xpose.msrb.mxu1 %v3362_v36  ;;  %v3286_v32 = vmax.f32 %v3250_v22, 0.0  ;;  %v3283_v9 = vmax.f32 %v3247_v20, 0.0  ;;  %v3114_v22 = vld [vmem:[#allocation2 + $0xb8] sm:$0xff] }
 0x2b5   : > { %3182 = vst.msk [vmem:[#allocation2 + $0x90] sm:$0xff] %vm273_vm7, %v3145_v53  ;;  %v3320_v44 = vpack.c.bf16 %v3288_v17, %v3287_v30  ;;  %v2785_v48 = vpop.f32.mrf.mxu3 }
 0x2b7   : > { %v3356_v50 = vsel %vm273_vm7, %v3320_v44, 0 }
 0x2b8   : > { %v2402_v11 = vpop.f32.mrf.mxu2  ;;  %v3012_v19 = vpop.f32.mrf.mxu0 }
 0x2b9   : > { %v3074_v16 = vadd.f32 %v3012_v19, %v2834_v21  ;;  %v2039_v41 = vpop.f32.mrf.mxu1  ;;  %v2462_v25 = vadd.f32 %v2402_v11, %v2097_v23  ;;  %v3113_v11 = vld [vmem:[#allocation2 + $0xb0] sm:$0xff] }
 0x2ba   : > { %v2098_v1 = vadd.f32 %v2039_v41, %v4983_v62  ;;  %v3248_v62 = vadd.f32 %v5494_v61, %v3208_v6 }
 0x2bb   : > { %v3146_v18 = vadd.f32 %v3110_v8, %v3074_v16  ;;  %v2835_v54 = vadd.f32 %v5486_v29, %v2462_v25  ;;  %v3285_v29 = vmax.f32 %v3249_v57, 0.0  ;;  %v3245_v16 = vadd.f32 %v5494_v61, %v3205_v55 }
 0x2bc   : > { %3399 = vmatpush.bf16.xpose.msrb.mxu1 %v3359_v58  ;;  %v3284_v59 = vmax.f32 %v3248_v62, 0.0 }
 0x2bd   : > { %3183 = vst.msk [vmem:[#allocation2 + $0x98] sm:$0xff] %vm273_vm7, %v3146_v18  ;;  %v3319_v39 = vpack.c.bf16 %v3286_v32, %v3285_v29  ;;  %v2787_v41 = vpop.f32.mrf.mxu3  ;;  %v3281_v17 = vmax.f32 %v3245_v16, 0.0 }
 0x2be   : > { %v3318_v21 = vpack.c.bf16 %v3284_v59, %v3283_v9 }
 0x2bf   : > { %v3353_v36 = vsel %vm273_vm7, %v3319_v39, 0 }
 0x2c0   : > { %v2404_v28 = vpop.f32.mrf.mxu2  ;;  %v3015_v13 = vpop.f32.mrf.mxu0  ;;  %v3350_v18 = vsel %vm273_vm7, %v3318_v21, 0 }
 0x2c1   : > { %v3075_v3 = vadd.f32 %v3015_v13, %v2835_v54  ;;  %v2042_v2 = vpop.f32.mrf.mxu1  ;;  %v2463_v12 = vadd.f32 %v2404_v28, %v2098_v1  ;;  %v3243_v1 = vadd.f32 %v5494_v61, %v3203_v26  ;;  %v3119_v26 = vld [vmem:[#allocation2 + $0xe0] sm:$0xff] }
 0x2c2   : > { %v2099_v10 = vadd.f32 %v2042_v2, %v4998_v37 }
 0x2c3   : > { %v3147_v45 = vadd.f32 %v3111_v0, %v3075_v3  ;;  %v2836_v27 = vadd.f32 %v5507_v40, %v2463_v12  ;;  %v3206_v40 = vld [vmem:[#allocation2 + $0x18] sm:$0xff] }
 0x2c4   : > { %3400 = vmatpush.bf16.xpose.msrb.mxu1 %v3356_v50  ;;  %v3246_v37 = vadd.f32 %v5494_v61, %v3206_v40 }
 0x2c5   : > { %3184 = vst.msk [vmem:[#allocation2 + $0xa0] sm:$0xff] %vm273_vm7, %v3147_v45  ;;  %v2790_v45 = vpop.f32.mrf.mxu3 }
 0x2c6   : > { %v3282_v58 = vmax.f32 %v3246_v37, 0.0 }
 0x2c8   : > { %v2407_v52 = vpop.f32.mrf.mxu2  ;;  %v3017_v14 = vpop.f32.mrf.mxu0  ;;  %v3317_v60 = vpack.c.bf16 %v3282_v58, %v3281_v17 }
 0x2c9   : > { %v3076_v34 = vadd.f32 %v3017_v14, %v2836_v27  ;;  %v2044_v42 = vpop.f32.mrf.mxu1  ;;  %v2464_v5 = vadd.f32 %v2407_v52, %v2099_v10 }
 0x2ca   : > { %v2100_v19 = vadd.f32 %v2044_v42, %v5011_v38  ;;  %v3347_v57 = vsel %vm273_vm7, %v3317_v60, 0 }
 0x2cb   : > { %v3148_v53 = vadd.f32 %v3112_v15, %v3076_v34  ;;  %v2837_v47 = vadd.f32 %v5519_v63, %v2464_v5  ;;  %v3204_v63 = vld [vmem:[#allocation2 + $0x8] sm:$0xff] }
 0x2cc   : > { %3401 = vmatpush.bf16.xpose.msrb.mxu1 %v3353_v36  ;;  %v3244_v38 = vadd.f32 %v5494_v61, %v3204_v63 }
 0x2cd   : > { %3185 = vst.msk [vmem:[#allocation2 + $0xa8] sm:$0xff] %vm273_vm7, %v3148_v53  ;;  %v2792_v15 = vpop.f32.mrf.mxu3 }
 0x2ce   : > { %v3280_v12 = vmax.f32 %v3244_v38, 0.0 }
 0x2d0   : > { %v2409_v46 = vpop.f32.mrf.mxu2  ;;  %v3020_v56 = vpop.f32.mrf.mxu0 }
 0x2d1   : > { %v3077_v8 = vadd.f32 %v3020_v56, %v2837_v47  ;;  %v2047_v23 = vpop.f32.mrf.mxu1  ;;  %v2465_v43 = vadd.f32 %v2409_v46, %v2100_v19  ;;  %v3117_v47 = vld [vmem:[#allocation2 + $0xd0] sm:$0xff] }
 0x2d2   : > { %v2101_v28 = vadd.f32 %v2047_v23, %v5026_v51  ;;  %v3118_v23 = vld [vmem:[#allocation2 + $0xd8] sm:$0xff] }
 0x2d3   : > { %v3149_v25 = vadd.f32 %v3113_v11, %v3077_v8  ;;  %v2838_v30 = vadd.f32 %v2782_v33, %v2465_v43  ;;  %v3279_v33 = vmax.f32 %v3243_v1, 0.0  ;;  %v5697_v1 = vld [vmem:[#allocation9_spill] sm:$0xff] }
 0x2d4   : > { %3402 = vmatpush.bf16.xpose.msrb.mxu1 %v3350_v18 }
 0x2d5   : > { %3186 = vst.msk [vmem:[#allocation2 + $0xb0] sm:$0xff] %vm273_vm7, %v3149_v25  ;;  %v3316_v32 = vpack.c.bf16 %v3280_v12, %v3279_v33  ;;  %v2795_v40 = vpop.f32.mrf.mxu3 }
 0x2d7   : > { %v3344_v14 = vsel %vm273_vm7, %v3316_v32, 0 }
 0x2d8   : > { %v2412_v54 = vpop.f32.mrf.mxu2  ;;  %v3022_v44 = vpop.f32.mrf.mxu0 }
 0x2d9   : > { %v3078_v13 = vadd.f32 %v3022_v44, %v2838_v30  ;;  %v2049_v0 = vpop.f32.mrf.mxu1  ;;  %v2466_v3 = vadd.f32 %v2412_v54, %v2101_v28 }
 0x2da   : > { %v2102_v51 = vadd.f32 %v2049_v0, %v5039_v4  ;;  %v3120_v0 = vld [vmem:[#allocation2 + $0xe8] sm:$0xff] }
 0x2db   : > { %v3150_v2 = vadd.f32 %v3114_v22, %v3078_v13  ;;  %v2839_v50 = vadd.f32 %v2785_v48, %v2466_v3  ;;  %v3116_v48 = vld [vmem:[#allocation2 + $0xc8] sm:$0xff] }
 0x2dc   : > { %3403 = vmatpush.bf16.xpose.msrb.mxu1 %v3347_v57 }
 0x2dd   : > { %3187 = vst.msk [vmem:[#allocation2 + $0xb8] sm:$0xff] %vm273_vm7, %v3150_v2  ;;  %v2797_v25 = vpop.f32.mrf.mxu3 }
 0x2e0   : > { %v2414_v6 = vpop.f32.mrf.mxu2  ;;  %v3025_v29 = vpop.f32.mrf.mxu0 }
 0x2e1   : > { %v3079_v27 = vadd.f32 %v3025_v29, %v2839_v50  ;;  %v2052_v39 = vpop.f32.mrf.mxu1  ;;  %v2467_v62 = vadd.f32 %v2414_v6, %v2102_v51  ;;  %v3121_v6 = vld [vmem:[#allocation2 + $0xf0] sm:$0xff]  ;;  %v5698_v29 = vld [vmem:[#allocation11_spill] sm:$0xff] }
 0x2e2   : > { %v2103_v20 = vadd.f32 %v2052_v39, %v5054_v7 }
 0x2e3   : > { %v3151_v52 = vadd.f32 %v3115_v24, %v3079_v27  ;;  %v2840_v10 = vadd.f32 %v2787_v41, %v2467_v62 }
 0x2e4   : > { %3404 = vmatpush.bf16.xpose.msrb.mxu1 %v3344_v14 }
 0x2e5   : > { %3188 = vst.msk [vmem:[#allocation2 + $0xc0] sm:$0xff] %vm273_vm7, %v3151_v52  ;;  %v2800_v22 = vpop.f32.mrf.mxu3 }
 0x2e8   : > { %v2417_v34 = vpop.f32.mrf.mxu2  ;;  %v3027_v42 = vpop.f32.mrf.mxu0 }
 0x2e9   : > { %v3080_v5 = vadd.f32 %v3027_v42, %v2840_v10  ;;  %v2054_v53 = vpop.f32.mrf.mxu1  ;;  %v2468_v36 = vadd.f32 %v2417_v34, %v2103_v20  ;;  %v3122_v34 = vld [vmem:[#allocation2 + $0xf8] sm:$0xff]  ;;  %v5699_v42 = vld [vmem:[#allocation12_spill] sm:$0xff] }
 0x2ea   : > { %v2104_v21 = vadd.f32 %v2054_v53, %v5067_v35 }
 0x2eb   : > { %v3152_v4 = vadd.f32 %v3116_v48, %v3080_v5  ;;  %v2841_v59 = vadd.f32 %v2790_v45, %v2468_v36 }
 0x2ed   : > { %3189 = vst.msk [vmem:[#allocation2 + $0xc8] sm:$0xff] %vm273_vm7, %v3152_v4 }
 0x2f0   : > { %v2419_v9 = vpop.f32.mrf.mxu2  ;;  %v3030_v55 = vpop.f32.mrf.mxu0 }
 0x2f1   : > { %v3081_v37 = vadd.f32 %v3030_v55, %v2841_v59  ;;  %v2057_v46 = vpop.f32.mrf.mxu1  ;;  %v2469_v56 = vadd.f32 %v2419_v9, %v2104_v21  ;;  %v3123_v55 = vld [vmem:[#allocation2 + $0x100] sm:$0xff]  ;;  %v5700_v21 = vld [vmem:[#allocation13_spill] sm:$0xff] }
 0x2f2   : > { %v2105_v16 = vadd.f32 %v2057_v46, %v5082_v49 }
 0x2f3   : > { %v3153_v11 = vadd.f32 %v3117_v47, %v3081_v37  ;;  %v2842_v7 = vadd.f32 %v2792_v15, %v2469_v56 }
 0x2f5   : > { %3190 = vst.msk [vmem:[#allocation2 + $0xd0] sm:$0xff] %vm273_vm7, %v3153_v11 }
 0x2f8   : > { %v2422_v19 = vpop.f32.mrf.mxu2  ;;  %v3032_v8 = vpop.f32.mrf.mxu0 }
 0x2f9   : > { %v3082_v41 = vadd.f32 %v3032_v8, %v2842_v7  ;;  %v2059_v43 = vpop.f32.mrf.mxu1  ;;  %v2470_v18 = vadd.f32 %v2422_v19, %v2105_v16 }
 0x2fa   : > { %v2106_v30 = vadd.f32 %v2059_v43, %v5095_v31  ;;  %v2802_v31 = vpop.f32.mrf.mxu3 }
 0x2fb   : > { %v3154_v58 = vadd.f32 %v3118_v23, %v3082_v41  ;;  %v2843_v35 = vadd.f32 %v2795_v40, %v2470_v18 }
 0x2fd   : > { %3191 = vst.msk [vmem:[#allocation2 + $0xd8] sm:$0xff] %vm273_vm7, %v3154_v58 }
 0x300   : > { %v2424_v63 = vpop.f32.mrf.mxu2  ;;  %v3035_v17 = vpop.f32.mrf.mxu0 }
 0x301   : > { %v3083_v60 = vadd.f32 %v3035_v17, %v2843_v35  ;;  %v2062_v38 = vpop.f32.mrf.mxu1  ;;  %v2471_v54 = vadd.f32 %v2424_v63, %v2106_v30  ;;  %v3124_v17 = vld [vmem:[#allocation2 + $0x108] sm:$0xff] }
 0x302   : > { %v2107_v3 = vadd.f32 %v2062_v38, %v5697_v1  ;;  %v2805_v52 = vpop.f32.mrf.mxu3 }
 0x303   : > { %v3155_v44 = vadd.f32 %v3119_v26, %v3083_v60  ;;  %v2844_v49 = vadd.f32 %v2797_v25, %v2471_v54  ;;  %v5701_v26 = vld [vmem:[#allocation14_spill] sm:$0xff] }
 0x305   : > { %3192 = vst.msk [vmem:[#allocation2 + $0xe0] sm:$0xff] %vm273_vm7, %v3155_v44 }
 0x308   : > { %v2427_v28 = vpop.f32.mrf.mxu2  ;;  %v3037_v13 = vpop.f32.mrf.mxu0 }
 0x309   : > { %v3084_v2 = vadd.f32 %v3037_v13, %v2844_v49  ;;  %v2064_v57 = vpop.f32.mrf.mxu1  ;;  %v2472_v12 = vadd.f32 %v2427_v28, %v2107_v3 }
 0x30a   : > { %v2108_v24 = vadd.f32 %v2064_v57, %v5698_v29  ;;  %v2807_v4 = vpop.f32.mrf.mxu3 }
 0x30b   : > { %v3156_v45 = vadd.f32 %v3120_v0, %v3084_v2  ;;  %v2845_v33 = vadd.f32 %v2800_v22, %v2472_v12  ;;  %v3230_v0 = vld [vmem:[#allocation2 + $0xd8] sm:$0xff]  ;;  %v3229_v2 = vld [vmem:[#allocation2 + $0xd0] sm:$0xff] }
 0x30c   : > { %v3231_v41 = vld [vmem:[#allocation2 + $0xe0] sm:$0xff] }
 0x30d   : > { %3193 = vst.msk [vmem:[#allocation2 + $0xe8] sm:$0xff] %vm273_vm7, %v3156_v45  ;;  %v3271_v54 = vadd.f32 %v5494_v61, %v3231_v41  ;;  %v3270_v45 = vadd.f32 %v5494_v61, %v3230_v0  ;;  %v3222_v0 = vld [vmem:[#allocation2 + $0x98] sm:$0xff] }
 0x30f   : > { %v3307_v1 = vmax.f32 %v3271_v54, 0.0 }
 0x310   : > { %v2429_v50 = vpop.f32.mrf.mxu2  ;;  %v3040_v32 = vpop.f32.mrf.mxu0 }
 0x311   : > { %v3085_v51 = vadd.f32 %v3040_v32, %v2845_v33  ;;  %v2067_v27 = vpop.f32.mrf.mxu1  ;;  %v2473_v39 = vadd.f32 %v2429_v50, %v2108_v24  ;;  %v3125_v50 = vld [vmem:[#allocation2 + $0x110] sm:$0xff]  ;;  %v5702_v32 = vld [vmem:[#allocation15_spill] sm:$0xff]  ;;  %v3269_v24 = vadd.f32 %v5494_v61, %v3229_v2  ;;  %v4208_v2 = vmov 0  }
 0x312   : > { %v2109_v48 = vadd.f32 %v2067_v27, %v5699_v42  ;;  %v2810_v44 = vpop.f32.mrf.mxu3  ;;  %4106 = vset.pattern.permute.xlu0 %v4208_v2 }
 0x313   : > { %v3157_v62 = vadd.f32 %v3121_v6, %v3085_v51  ;;  %v2846_v14 = vadd.f32 %v2802_v31, %v2473_v39 }
 0x314   : > { %v3232_v23 = vld [vmem:[#allocation2 + $0xe8] sm:$0xff] }
 0x315   : > { %3194 = vst.msk [vmem:[#allocation2 + $0xf0] sm:$0xff] %vm273_vm7, %v3157_v62  ;;  %v3272_v58 = vadd.f32 %v5494_v61, %v3232_v23  ;;  %v3306_v62 = vmax.f32 %v3270_v45, 0.0  ;;  %v3315_v23 = vld [vmem:[%s5654_s3] sm:$0xf] }
 0x316   : > { %3970 = vmatmul.msk.bf16.vlgmr.msrb.gmra.mxu1 %vm273_vm7, %v3315_v23 }
 0x317   : > { %v3308_v13 = vmax.f32 %v3272_v58, 0.0 }
 0x318   : > { %v2432_v15 = vpop.f32.mrf.mxu2  ;;  %v3042_v10 = vpop.f32.mrf.mxu0 }
 0x319   : > { %v3086_v20 = vadd.f32 %v3042_v10, %v2846_v14  ;;  %v2069_v5 = vpop.f32.mrf.mxu1  ;;  %v2474_v53 = vadd.f32 %v2432_v15, %v2109_v48  ;;  %v3330_v12 = vpack.c.bf16 %v3308_v13, %v3307_v1  ;;  %v3228_v14 = vld [vmem:[#allocation2 + $0xc8] sm:$0xff]  ;;  %v3305_v15 = vmax.f32 %v3269_v24, 0.0  ;;  %v3227_v10 = vld [vmem:[#allocation2 + $0xc0] sm:$0xff] }
 0x31a   : > { %v2110_v37 = vadd.f32 %v2069_v5, %v5700_v21  ;;  %v3268_v48 = vadd.f32 %v5494_v61, %v3228_v14  ;;  %v3126_v5 = vld [vmem:[#allocation2 + $0x118] sm:$0xff]  ;;  %v3334_v13 = vld [vmem:[%s5655_s4] sm:$0xff] }
 0x31b   : > { %v3158_v36 = vadd.f32 %v3122_v34, %v3086_v20  ;;  %v2847_v59 = vadd.f32 %v2805_v52, %v2474_v53  ;;  %v3386_v39 = vsel %vm273_vm7, %v3330_v12, 0  ;;  %v2812_v52 = vpop.f32.mrf.mxu3  ;;  %v3329_v42 = vpack.c.bf16 %v3306_v62, %v3305_v15  ;;  %3337 = vperm.xlu0 %4106, %v3334_v13  }
 0x31c   : > { %v3233_v47 = vld [vmem:[#allocation2 + $0xf0] sm:$0xff] }
 0x31d   : > { %3195 = vst.msk [vmem:[#allocation2 + $0xf8] sm:$0xff] %vm273_vm7, %v3158_v36  ;;  %v3273_v7 = vadd.f32 %v5494_v61, %v3233_v47  ;;  %v3267_v36 = vadd.f32 %v5494_v61, %v3227_v10  ;;  %v3225_v47 = vld [vmem:[#allocation2 + $0xb0] sm:$0xff] }
 0x31f   : > { %v3309_v25 = vmax.f32 %v3273_v7, 0.0 }
 0x320   : > { %v2434_v40 = vpop.f32.mrf.mxu2  ;;  %v3045_v9 = vpop.f32.mrf.mxu0 }
 0x321   : > { %v3087_v46 = vadd.f32 %v3045_v9, %v2847_v59  ;;  %v2475_v56 = vadd.f32 %v2434_v40, %v2110_v37  ;;  %v2072_v19 = vpop.f32.mrf.mxu1  ;;  %v3383_v59 = vsel %vm273_vm7, %v3329_v42, 0  ;;  %v3304_v40 = vmax.f32 %v3268_v48, 0.0  ;;  %v3226_v9 = vld [vmem:[#allocation2 + $0xb8] sm:$0xff] }
 0x322   : > { %v2111_v30 = vadd.f32 %v2072_v19, %v5701_v26  ;;  %v3266_v37 = vadd.f32 %v5494_v61, %v3226_v9 }
 0x323   : > { %v3159_v11 = vadd.f32 %v3123_v55, %v3087_v46  ;;  %v2848_v43 = vadd.f32 %v2807_v4, %v2475_v56  ;;  %v3303_v55 = vmax.f32 %v3267_v36, 0.0  ;;  %v3265_v56 = vadd.f32 %v5494_v61, %v3225_v47 }
 0x324   : > { %v3234_v8 = vld [vmem:[#allocation2 + $0xf8] sm:$0xff]  ;;  %v3302_v7 = vmax.f32 %v3266_v37, 0.0 }
 0x325   : > { %3196 = vst.msk [vmem:[#allocation2 + $0x100] sm:$0xff] %vm273_vm7, %v3159_v11  ;;  %v3274_v16 = vadd.f32 %v5494_v61, %v3234_v8  ;;  %v3328_v21 = vpack.c.bf16 %v3304_v40, %v3303_v55  ;;  %v3224_v8 = vld [vmem:[#allocation2 + $0xa8] sm:$0xff] }
 0x326   : > { %v3264_v58 = vadd.f32 %v5494_v61, %v3224_v8 }
 0x327   : > { %v3310_v18 = vmax.f32 %v3274_v16, 0.0  ;;  %v3380_v11 = vsel %vm273_vm7, %v3328_v21, 0 }
 0x328   : > { %v2437_v35 = vpop.f32.mrf.mxu2  ;;  %v3047_v63 = vpop.f32.mrf.mxu0 }
 0x329   : > { %v3088_v60 = vadd.f32 %v3047_v63, %v2848_v43  ;;  %v3331_v38 = vpack.c.bf16 %v3310_v18, %v3309_v25  ;;  %v2476_v22 = vadd.f32 %v2437_v35, %v2111_v30  ;;  %v2074_v3 = vpop.f32.mrf.mxu1  ;;  %v3301_v43 = vmax.f32 %v3265_v56, 0.0  ;;  %v3223_v18 = vld [vmem:[#allocation2 + $0xa0] sm:$0xff] }
 0x32a   : > { %v2112_v6 = vadd.f32 %v2074_v3, %v5702_v32 }
 0x32b   : > { %v3160_v49 = vadd.f32 %v3124_v17, %v3088_v60  ;;  %v3389_v28 = vsel %vm273_vm7, %v3331_v38, 0  ;;  %v2849_v57 = vadd.f32 %v2810_v44, %v2476_v22  ;;  %v3327_v63 = vpack.c.bf16 %v3302_v7, %v3301_v43 }
 0x32c   : > { %3410 = vmatpush.bf16.xpose.msrb.mxu2 %v3389_v28  ;;  %v3235_v35 = vld [vmem:[#allocation2 + $0x100] sm:$0xff]  ;;  %v3263_v38 = vadd.f32 %v5494_v61, %v3223_v18  ;;  %v3300_v44 = vmax.f32 %v3264_v58, 0.0 }
 0x32d   : > { %3197 = vst.msk [vmem:[#allocation2 + $0x108] sm:$0xff] %vm273_vm7, %v3160_v49  ;;  %v3275_v54 = vadd.f32 %v5494_v61, %v3235_v35  ;;  %v3377_v22 = vsel %vm273_vm7, %v3327_v63, 0 }
 0x32e   : > { %v3299_v1 = vmax.f32 %v3263_v38, 0.0 }
 0x32f   : > { %v3311_v3 = vmax.f32 %v3275_v54, 0.0 }
 0x330   : > { %v2439_v31 = vpop.f32.mrf.mxu2  ;;  %v3050_v33 = vpop.f32.mrf.mxu0  ;;  %v3326_v12 = vpack.c.bf16 %v3300_v44, %v3299_v1 }
 0x331   : > { %v3089_v29 = vadd.f32 %v3050_v33, %v2849_v57  ;;  %v2477_v51 = vadd.f32 %v2439_v31, %v2112_v6  ;;  %v3221_v57 = vld [vmem:[#allocation2 + $0x90] sm:$0xff]  ;;  %v3262_v31 = vadd.f32 %v5494_v61, %v3222_v0 }
 0x332   : > { %v3261_v33 = vadd.f32 %v5494_v61, %v3221_v57 }
 0x333   : > { %v3161_v27 = vadd.f32 %v3125_v50, %v3089_v29  ;;  %v2850_v34 = vadd.f32 %v2812_v52, %v2477_v51  ;;  %v3374_v50 = vsel %vm273_vm7, %v3326_v12, 0  ;;  %v3298_v6 = vmax.f32 %v3262_v31, 0.0  ;;  %v3220_v29 = vld [vmem:[#allocation2 + $0x88] sm:$0xff]  ;;  %v3219_v51 = vld [vmem:[#allocation2 + $0x80] sm:$0xff] }
 0x334   : > { %3411 = vmatpush.bf16.xpose.msrb.mxu2 %v3386_v39  ;;  %v3236_v41 = vld [vmem:[#allocation2 + $0x108] sm:$0xff]  ;;  %v3297_v24 = vmax.f32 %v3261_v33, 0.0  ;;  %v3260_v39 = vadd.f32 %v5494_v61, %v3220_v29  ;;  %v3259_v62 = vadd.f32 %v5494_v61, %v3219_v51 }
 0x335   : > { %3198 = vst.msk [vmem:[#allocation2 + $0x110] sm:$0xff] %vm273_vm7, %v3161_v27  ;;  %v3276_v30 = vadd.f32 %v5494_v61, %v3236_v41 }
 0x336   : > { %v3325_v27 = vpack.c.bf16 %v3298_v6, %v3297_v24  ;;  %v3296_v14 = vmax.f32 %v3260_v39, 0.0  ;;  %v3295_v15 = vmax.f32 %v3259_v62, 0.0 }
 0x337   : > { %v3312_v28 = vmax.f32 %v3276_v30, 0.0 }
 0x338   : > { %v3052_v20 = vpop.f32.mrf.mxu0  ;;  %v3371_v52 = vsel %vm273_vm7, %v3325_v27, 0  ;;  %v3324_v10 = vpack.c.bf16 %v3296_v14, %v3295_v15 }
 0x339   : > { %v3090_v53 = vadd.f32 %v3052_v20, %v2850_v34  ;;  %v3332_v45 = vpack.c.bf16 %v3312_v28, %v3311_v3 }
 0x33a   : > { %v3368_v34 = vsel %vm273_vm7, %v3324_v10, 0 }
 0x33b   : > { %v3162_v4 = vadd.f32 %v3126_v5, %v3090_v53  ;;  %v3392_v32 = vsel %vm273_vm7, %v3332_v45, 0 }
 0x33c   : > { %3412 = vmatpush.bf16.xpose.msrb.mxu2 %v3383_v59  ;;  %v3237_v46 = vld [vmem:[#allocation2 + $0x110] sm:$0xff] }
 0x33d   : > { %3199 = vst.msk [vmem:[#allocation2 + $0x118] sm:$0xff] %vm273_vm7, %v3162_v4  ;;  %v3277_v19 = vadd.f32 %v5494_v61, %v3237_v46 }
 0x33f   : > { %v3313_v17 = vmax.f32 %v3277_v19, 0.0 }
 0x344   : > { %3413 = vmatpush.bf16.xpose.msrb.mxu2 %v3380_v11  ;;  %v3238_v16 = vld [vmem:[#allocation2 + $0x118] sm:$0xff] }
 0x345   : > { %v3278_v25 = vadd.f32 %v5494_v61, %v3238_v16 }
 0x347   : > { %v3314_v26 = vmax.f32 %v3278_v25, 0.0 }
 0x349   : > { %v3333_v60 = vpack.c.bf16 %v3314_v26, %v3313_v17 }
 0x34b   : > { %v3395_v49 = vsel %vm273_vm7, %v3333_v60, 0 }
 0x34c   : > { %3414 = vmatpush.bf16.xpose.msrb.mxu2 %v3377_v22  ;;  %3429 = vmatpush.bf16.xpose.msrb.mxu3 %v3395_v49 }
 0x354   : > { %3415 = vmatpush.bf16.xpose.msrb.mxu2 %v3374_v50  ;;  %3430 = vmatpush.bf16.xpose.msrb.mxu3 %v3392_v32 }
 0x35b   : > { %3972 = vmatmul.msk.bf16.vlgmr.msrb.gmra.mxu3 %vm273_vm7, %v3315_v23 }
 0x35c   : > { %3416 = vmatpush.bf16.xpose.msrb.mxu2 %v3371_v52 }
 0x364   : > { %3417 = vmatpush.bf16.xpose.msrb.mxu2 %v3368_v34 }
 0x36b   : > { %3971 = vmatmul.msk.bf16.vlgmr.msrb.gmra.mxu2 %vm273_vm7, %v3315_v23 }
 0x38d   : > { %v3338_v20 = vpop.permute.xlu0 %3337 }
 0x393   : > { %v3406_v42 = vpop.f32.mrf.mxu1 }
 0x394   : > { %v3407_v61 = vadd.f32 %v3406_v42, %v3338_v20 }
 0x396   : > { %3436 = vst [vmem:[%s253_s8] sm:$0xff] %v3407_v61 }
 0x39b   : > { %v3408_v48 = vpop.f32.mrf.mxu1 }
 0x3de   : > { %v3432_v5 = vpop.f32.mrf.mxu3 }
 0x3df   : > { %v3433_v53 = vadd.f32 %v3432_v5, %v3338_v20 }
 0x3e1   : > { %3439 = vst.msk [vmem:[%s253_s8 + $0x10] sm:$0xff] %vm3438_vm8, %v3433_v53 }
 0x3e6   : > { %v3434_v36 = vpop.f32.mrf.mxu3 }
 0x3ee   : > { %v3419_v4 = vpop.f32.mrf.mxu2 }
 0x3ef   : > { %v3420_v59 = vadd.f32 %v3419_v4, %v3338_v20 }
 0x3f1   : > { %3437 = vst [vmem:[%s253_s8 + $0x8] sm:$0xff] %v3420_v59 }
 0x3f2   : > { %4154 = shalt.err (!%p4151_p5)
}
 0x3f3   : > { %4049 = dma.vmem_to_hbm [thread:$0]  (%p4279_p4), %s3455_s14, 384, %s3457_s15, %s3441_s13  }
 0x3f6   : > { %v3421_v40 = vpop.f32.mrf.mxu2 }
 0x3f7 PF: > { %p4055_p6 = scmp.ge.s32.totalorder %s4205_s23, 2  ;;  %s3468_s29 = sand.u32 1, %s4185_s18  }
 0x3f8   : > { %s3469_s8 = scalar_lea.sflag [#allocation4], %s3468_s29 }
 0x3f9   : > { %p4052_p7 = pnand %p4055_p6, %p4286_p8 }
 0x3fb   : > { %p4053_p9 = pneg %p4052_p7 }
 0x3fd   : > { %4180 = dma.done.wait (%p4053_p9), %s3469_s8, 384  }
 0x3fe   : > { %4182 = vsyncadd (%p4053_p9), %s3469_s8, 4294966912  ;;  %s18_s23 = sadd.s32 1, %s4205_s23   ;;  %s5703_s18 = smov %s4189_s19 }
 0x3ff   : > { %p15_p10 = scmp.ge.s32.totalorder %s18_s23, 4   ;;  %s5704_s19 = smov %s4193_s20 }
 0x400   : > { %s5705_s20 = smov %s4292_s6  ;;  %s5706_s21 = smov %s4201_s22 }
 0x401   : > { %s5707_s22 = smov %s5709_s26  ;;  %17 = sbr.rel (!%p15_p10) target bundleno = 4 (0x4), region = 94 }
 0x406   :  { %3475 = vsyncpa [#allocation4], 1 }
 0x407   :  { %3477 = vsyncpa [#allocation4 + $0x1], 1 }

</bundles_post_ra>
